<compile_context>
chip_gen: v5e
topology: v5e:2x2
jax: 0.10.0
libtpu: 0.0.40
codegen_flags: <defaults>
</compile_context>

<pallas_src>
import functools

import jax
import jax.numpy as jnp
from jax.experimental import pallas as pl
from jax.experimental.pallas import tpu as pltpu


# ---------------------------- small helpers ----------------------------

def _round_up(x, m):
    return ((x + m - 1) // m) * m


def _choose_tm(mp):
    """Row-tile size. mp is a multiple of 8. Prefer 2 grid steps (v7x megacore)
    when the problem is big enough; otherwise one exact-size tile (no zero rows)."""
    if mp >= 64 and mp % 16 == 0 and mp // 2 <= 256:
        return mp // 2
    if mp <= 256:
        return mp
    for tm in range(256, 7, -8):
        if mp % tm == 0:
            return tm
    return 8


def _apply_act(y, act):
    if act == "relu":
        return jnp.maximum(y, 0.0)
    if act == "gelu":
        return jax.nn.gelu(y)
    return y


# ---------------------------- Pallas kernels ----------------------------

def _mm_kernel(a_ref, w_ref, b_ref, o_ref, *, act):
    # fused matmul + bias + activation epilogue
    y = jnp.dot(a_ref[...], w_ref[...], preferred_element_type=jnp.float32) + b_ref[...]
    o_ref[...] = _apply_act(y, act)


def _mm_res_kernel(a_ref, w_ref, b_ref, r_ref, o_ref, *, act):
    # fused matmul + bias + activation + post-activation residual add
    y = jnp.dot(a_ref[...], w_ref[...], preferred_element_type=jnp.float32) + b_ref[...]
    o_ref[...] = _apply_act(y, act) + r_ref[...]


def matmul_fused(a, w, bias, act="none", residual=None):
    """a: (M,K) f32, w: (K,N), bias: (N,) -> act(a@w + bias) [+ residual (M,N)]."""
    m, k = a.shape
    n = w.shape[1]
    mp = _round_up(m, 8)
    a_p = jnp.pad(a, ((0, mp - m), (0, 0))) if mp != m else a
    tm = _choose_tm(mp)

    in_specs = [pl.BlockSpec((tm, k), lambda i: (i, 0)),
                pl.BlockSpec((k, n), lambda i: (0, 0)),
                pl.BlockSpec((1, n), lambda i: (0, 0))]
    args = [a_p, w, bias.reshape(1, n)]
    if residual is None:
        kernel = functools.partial(_mm_kernel, act=act)
    else:
        r_p = jnp.pad(residual, ((0, mp - m), (0, 0))) if mp != m else residual
        in_specs.append(pl.BlockSpec((tm, n), lambda i: (i, 0)))
        args.append(r_p)
        kernel = functools.partial(_mm_res_kernel, act=act)

    out = pl.pallas_call(
        kernel,
        out_shape=jax.ShapeDtypeStruct((mp, n), jnp.float32),
        grid=(mp // tm,),
        in_specs=in_specs,
        out_specs=pl.BlockSpec((tm, n), lambda i: (i, 0)),
        compiler_params=pltpu.CompilerParams(dimension_semantics=("parallel",)),
    )(*args)
    return out if mp == m else out[:m]


def _transformer_layer_kernel(x_ref, ln1g_ref, ln1b_ref, wqkv_ref, bqkv_ref,
                              wo_ref, bo_ref, ln2g_ref, ln2b_ref,
                              w1_ref, b1_ref, w2_ref, b2_ref,
                              lnfg_ref, lnfb_ref, o_ref, *, num_heads, apply_final_ln):
    """One full pre-LN transformer encoder layer for one batch element, fully in VMEM."""
    x = x_ref[0]                       # (T, D)
    t, d = x.shape
    dh = d // num_heads
    scale = 1.0 / (dh ** 0.5)

    def ln(z, g, b):
        mu = jnp.mean(z, axis=-1, keepdims=True)
        var = jnp.mean(jnp.square(z - mu), axis=-1, keepdims=True)
        return (z - mu) * jax.lax.rsqrt(var + 1e-6) * g + b

    # --- attention block ---
    hn = ln(x, ln1g_ref[...], ln1b_ref[...])
    qkv = jnp.dot(hn, wqkv_ref[...], preferred_element_type=jnp.float32) + bqkv_ref[...]  # (T, 3D)
    w_o = wo_ref[...]                  # (D, D), sliced per head below (sum == concat @ wo)

    proj = None
    for hi in range(num_heads):        # static unroll over 4 heads; all 2-D MXU dots
        qh = qkv[:, hi * dh:(hi + 1) * dh]
        kh = qkv[:, d + hi * dh:d + (hi + 1) * dh]
        vh = qkv[:, 2 * d + hi * dh:2 * d + (hi + 1) * dh]
        s = jnp.dot(qh, kh.T, preferred_element_type=jnp.float32) * scale
        s = s - jnp.max(s, axis=-1, keepdims=True)
        p = jnp.exp(s)
        p = p * pl.reciprocal(jnp.sum(p, axis=-1, keepdims=True), approx=True)
        oh = jnp.dot(p, vh, preferred_element_type=jnp.float32)
        contrib = jnp.dot(oh, w_o[hi * dh:(hi + 1) * dh, :],
                          preferred_element_type=jnp.float32)
        proj = contrib if proj is None else proj + contrib

    h = x + proj + bo_ref[...]

    # --- MLP block ---
    hn2 = ln(h, ln2g_ref[...], ln2b_ref[...])
    m = jnp.dot(hn2, w1_ref[...], preferred_element_type=jnp.float32) + b1_ref[...]
    m = jax.nn.gelu(m)
    m = jnp.dot(m, w2_ref[...], preferred_element_type=jnp.float32) + b2_ref[...]
    h = h + m

    if apply_final_ln:                 # fold encoder-final LayerNorm into the last layer
        h = ln(h, lnfg_ref[...], lnfb_ref[...])
    o_ref[0] = h


def transformer_layer(h, lp, lnf_g, lnf_b, *, num_heads, final):
    b, t, d = h.shape
    dm = lp["w1"].shape[1]
    vec = lambda v: v.reshape(1, -1)
    full = lambda shape: pl.BlockSpec(shape, lambda i: (0, 0))

    in_specs = [
        pl.BlockSpec((1, t, d), lambda i: (i, 0, 0)),      # tokens
        full((1, d)), full((1, d)),                        # ln1
        full((d, 3 * d)), full((1, 3 * d)),                # packed QKV
        full((d, d)), full((1, d)),                        # out proj
        full((1, d)), full((1, d)),                        # ln2
        full((d, dm)), full((1, dm)),                      # mlp fc1
        full((dm, d)), full((1, d)),                       # mlp fc2
        full((1, d)), full((1, d)),                        # final ln (gated)
    ]
    kernel = functools.partial(_transformer_layer_kernel,
                               num_heads=num_heads, apply_final_ln=final)
    return pl.pallas_call(
        kernel,
        out_shape=jax.ShapeDtypeStruct((b, t, d), jnp.float32),
        grid=(b,),
        in_specs=in_specs,
        out_specs=pl.BlockSpec((1, t, d), lambda i: (i, 0, 0)),
        compiler_params=pltpu.CompilerParams(dimension_semantics=("parallel",)),
    )(h, vec(lp["ln1_g"]), vec(lp["ln1_b"]),
      lp["wqkv"], vec(lp["bqkv"]),
      lp["wo"], vec(lp["bo"]),
      vec(lp["ln2_g"]), vec(lp["ln2_b"]),
      lp["w1"], vec(lp["b1"]),
      lp["w2"], vec(lp["b2"]),
      vec(lnf_g), vec(lnf_b))


# ---------------------------- JAX glue: im2col convs / upsample ----------------------------

def _im2col(x, kh, kw, stride, padding):
    b, h, w, c = x.shape
    if padding:
        x = jnp.pad(x, ((0, 0), (padding, padding), (padding, padding), (0, 0)))
    ho = (h + 2 * padding - kh) // stride + 1
    wo = (w + 2 * padding - kw) // stride + 1
    cols = []
    for i in range(kh):
        for j in range(kw):
            cols.append(x[:, i:i + stride * ho:stride, j:j + stride * wo:stride, :])
    return jnp.concatenate(cols, axis=-1), ho, wo


def conv2d(x, w, b, kh, kw, stride=1, padding=0, act="none", residual=None):
    """x: NHWC; w: (kh*kw*Cin, Cout) with (ki, kj, cin) row ordering. One pallas_call."""
    patches, ho, wo = _im2col(x, kh, kw, stride, padding)
    bsz = x.shape[0]
    flat = patches.reshape(bsz * ho * wo, -1)
    y = matmul_fused(flat, w, b, act=act, residual=residual)
    return y.reshape(bsz, ho, wo, -1)


def _upsample2x(x):
    return jnp.repeat(jnp.repeat(x, 2, axis=1), 2, axis=2)


# ---------------------------- parameters ----------------------------

def make_params(key):
    keys = iter(jax.random.split(key, 64))

    def p(shape, scale=0.05):
        return scale * jax.random.normal(next(keys), shape, dtype=jnp.float32)

    z = lambda n: jnp.zeros((n,), jnp.float32)
    o = lambda n: jnp.ones((n,), jnp.float32)

    params = {
        # RedNet backbone (simplified: conv stem + 3 stages)
        "stem_w": p((3 * 3 * 3, 8)), "stem_b": z(8),
        "s1_w": p((3 * 3 * 8, 8)), "s1_b": z(8),
        "s2_w": p((3 * 3 * 8, 16)), "s2_b": z(16),
        "s3_w": p((3 * 3 * 16, 32)), "s3_b": z(32),
        # Transformer: 4x4 patch embed, hidden=32, 2 layers, 4 heads, mlp=64
        "patch_w": p((4 * 4 * 3, 32)), "patch_b": z(32),
        "pos_emb": p((1, 16, 32)),
        "lnf_g": o(32), "lnf_b": z(32),
        # Decoder
        "dec_t_w": p((32, 16)), "dec_t_b": z(16),
        "dec_f3_w": p((32, 16)), "dec_f3_b": z(16),
        "dec_f2_w": p((16, 16)), "dec_f2_b": z(16),
        "dec_f1_w": p((8, 16)), "dec_f1_b": z(16),
        "fuse2_w": p((3 * 3 * 16, 16)), "fuse2_b": z(16),
        "fuse1_w": p((3 * 3 * 16, 16)), "fuse1_b": z(16),
        "fuse0_w": p((3 * 3 * 16, 16)), "fuse0_b": z(16),
        "head_w": p((3 * 3 * 16, 1)), "head_b": z(1),
    }
    layers = []
    for _ in range(2):
        wq, wk, wv = p((32, 32)), p((32, 32)), p((32, 32))
        layers.append({
            "ln1_g": o(32), "ln1_b": z(32),
            "wqkv": jnp.concatenate([wq, wk, wv], axis=1),   # packed (D, 3D) for lane density
            "bqkv": z(96),
            "wo": p((32, 32)), "bo": z(32),
            "ln2_g": o(32), "ln2_b": z(32),
            "w1": p((32, 64)), "b1": z(64),
            "w2": p((64, 32)), "b2": z(32),
        })
    params["layers"] = layers
    return params


# ---------------------------- model forward ----------------------------

def rednet_forward(params, x):
    h = conv2d(x, params["stem_w"], params["stem_b"], 3, 3, stride=2, padding=1, act="relu")
    f1 = conv2d(h, params["s1_w"], params["s1_b"], 3, 3, 1, 1, act="relu")    # (B,8,8,8)
    f2 = conv2d(f1, params["s2_w"], params["s2_b"], 3, 3, 2, 1, act="relu")   # (B,4,4,16)
    f3 = conv2d(f2, params["s3_w"], params["s3_b"], 3, 3, 2, 1, act="relu")   # (B,2,2,32)
    return [f1, f2, f3]


def transformer_forward(params, x, num_heads=4):
    b = x.shape[0]
    patches, gh, gw = _im2col(x, 4, 4, 4, 0)                      # 4x4 patch embedding
    d = params["patch_w"].shape[1]
    pos = jnp.broadcast_to(params["pos_emb"], (b, gh * gw, d)).reshape(b * gh * gw, d)
    # patch-embed matmul with the positional embedding fused in as a residual add
    tok = matmul_fused(patches.reshape(b * gh * gw, -1),
                       params["patch_w"], params["patch_b"], act="none", residual=pos)
    h = tok.reshape(b, gh * gw, d)
    n_layers = len(params["layers"])
    for li, lp in enumerate(params["layers"]):
        h = transformer_layer(h, lp, params["lnf_g"], params["lnf_b"],
                              num_heads=num_heads, final=(li == n_layers - 1))
    return h.reshape(b, gh, gw, d)                                # (B, 4, 4, 32)


def decoder_forward(params, rednet_outs, trans_out):
    f1, f2, f3 = rednet_outs
    b, th, tw, _ = trans_out.shape

    # 1x1 projections (relu), with cross-scale adds fused into the matmul epilogue
    t = matmul_fused(trans_out.reshape(-1, trans_out.shape[-1]),
                     params["dec_t_w"], params["dec_t_b"], act="relu").reshape(b, th, tw, -1)
    r3 = matmul_fused(f3.reshape(-1, f3.shape[-1]),
                      params["dec_f3_w"], params["dec_f3_b"],
                      act="relu").reshape(b, f3.shape[1], f3.shape[2], -1)
    res2 = (t + _upsample2x(r3)).reshape(-1, t.shape[-1])
    m2 = matmul_fused(f2.reshape(-1, f2.shape[-1]),
                      params["dec_f2_w"], params["dec_f2_b"], act="relu",
                      residual=res2).reshape(b, f2.shape[1], f2.shape[2], -1)
    m2 = conv2d(m2, params["fuse2_w"], params["fuse2_b"], 3, 3, 1, 1, act="relu")

    res1 = _upsample2x(m2).reshape(-1, m2.shape[-1])
    m1 = matmul_fused(f1.reshape(-1, f1.shape[-1]),
                      params["dec_f1_w"], params["dec_f1_b"], act="relu",
                      residual=res1).reshape(b, f1.shape[1], f1.shape[2], -1)
    m1 = conv2d(m1, params["fuse1_w"], params["fuse1_b"], 3, 3, 1, 1, act="relu")

    m0 = _upsample2x(m1)
    m0 = conv2d(m0, params["fuse0_w"], params["fuse0_b"], 3, 3, 1, 1, act="relu")
    out = conv2d(m0, params["head_w"], params["head_b"], 3, 3, 1, 1, act="none")  # (B,16,16,1)
    return out


def transinvnet_forward(params, x_nchw):
    x = jnp.transpose(x_nchw, (0, 2, 3, 1)).astype(jnp.float32)   # NCHW -> NHWC
    rednet_outs = rednet_forward(params, x)
    trans_out = transformer_forward(params, x)
    out_nhwc = decoder_forward(params, rednet_outs, trans_out)
    return jnp.transpose(out_nhwc, (0, 3, 1, 2))                  # NHWC -> NCHW (B,1,H,W)


if __name__ == "__main__":
    kx, kp = jax.random.split(jax.random.PRNGKey(0))
    x = jax.random.normal(kx, (2, 3, 16, 16), dtype=jnp.float32)  # NCHW like PyTorch
    params = make_params(kp)
    fwd = jax.jit(transinvnet_forward)
    out = fwd(params, x)
    jax.block_until_ready(out)
    assert out.shape == (2, 1, 16, 16), out.shape
    assert bool(jnp.all(jnp.isfinite(out)))
    print("KERNEL_OK")
</pallas_src>

<mosaic_0001>
module attributes {stable_mosaic.version = 11 : i64} {
  func.func @_mm_kernel(%arg0: i32, %arg1: memref<64x27xf32, #tpu.memory_space<vmem>>, %arg2: memref<27x8xf32, #tpu.memory_space<vmem>>, %arg3: memref<1x8xf32, #tpu.memory_space<vmem>>, %arg4: memref<64x8xf32, #tpu.memory_space<vmem>>) attributes {dimension_semantics = [#tpu.dimension_semantics<parallel>], iteration_bounds = array<i64: 2>, scalar_prefetch = 0 : i64, scratch_operands = 0 : i64, tpu.core_type = #tpu.core_type<tc>, window_params = [{transform_indices = @transform_0, window_bounds = array<i64: 64, 27>}, {pipeline_mode = #tpu.pipeline_mode<synchronous>, transform_indices = @transform_1, window_bounds = array<i64: 27, 8>}, {pipeline_mode = #tpu.pipeline_mode<synchronous>, transform_indices = @transform_2, window_bounds = array<i64: 1, 8>}, {transform_indices = @transform_3, window_bounds = array<i64: 64, 8>}]} {
    %c0 = arith.constant 0 : index
    %c0_0 = arith.constant 0 : index
    %0 = vector.load %arg1[%c0, %c0_0] : memref<64x27xf32, #tpu.memory_space<vmem>>, vector<64x27xf32>
    %c0_1 = arith.constant 0 : index
    %c0_2 = arith.constant 0 : index
    %1 = vector.load %arg2[%c0_1, %c0_2] : memref<27x8xf32, #tpu.memory_space<vmem>>, vector<27x8xf32>
    %cst = arith.constant dense<0.000000e+00> : vector<64x8xf32>
    %2 = tpu.matmul %0, %1, %cst {dimension_numbers = #tpu.dot_dimension_numbers<[1], [0], [0], [1], [0, 0, 1, 1], [], []>} : vector<64x27xf32>, vector<27x8xf32>, vector<64x8xf32> -> vector<64x8xf32>
    %c0_3 = arith.constant 0 : index
    %c0_4 = arith.constant 0 : index
    %3 = vector.load %arg3[%c0_3, %c0_4] : memref<1x8xf32, #tpu.memory_space<vmem>>, vector<1x8xf32>
    %4 = vector.broadcast %3 : vector<1x8xf32> to vector<64x8xf32>
    %5 = arith.addf %2, %4 : vector<64x8xf32>
    %cst_5 = arith.constant 0.000000e+00 : f32
    %6 = vector.broadcast %cst_5 : f32 to vector<64x8xf32>
    %7 = arith.maximumf %5, %6 : vector<64x8xf32>
    %c0_6 = arith.constant 0 : index
    %c0_7 = arith.constant 0 : index
    %8 = vector.load %arg4[%c0_6, %c0_7] : memref<64x8xf32, #tpu.memory_space<vmem>>, vector<64x8xf32>
    tpu.vector_store %arg4[%c0_6, %c0_7], %7 {strides = array<i32>} : memref<64x8xf32, #tpu.memory_space<vmem>>, vector<64x8xf32>,
    return
  }
  func.func @transform_0(%arg0: i32) -> (i32, i32) {
    %c0_i32 = arith.constant 0 : i32
    %c0_i32_0 = arith.constant 0 : i32
    return %arg0, %c0_i32 : i32, i32
  }
  func.func @transform_1(%arg0: i32) -> (i32, i32) {
    %c0_i32 = arith.constant 0 : i32
    %c0_i32_0 = arith.constant 0 : i32
    %c0_i32_1 = arith.constant 0 : i32
    return %c0_i32, %c0_i32_0 : i32, i32
  }
  func.func @transform_2(%arg0: i32) -> (i32, i32) {
    %c0_i32 = arith.constant 0 : i32
    %c0_i32_0 = arith.constant 0 : i32
    %c0_i32_1 = arith.constant 0 : i32
    return %c0_i32, %c0_i32_0 : i32, i32
  }
  func.func @transform_3(%arg0: i32) -> (i32, i32) {
    %c0_i32 = arith.constant 0 : i32
    %c0_i32_0 = arith.constant 0 : i32
    return %arg0, %c0_i32 : i32, i32
  }
}

module attributes {stable_mosaic.version = 11 : i64} {
  func.func @_mm_kernel(%arg0: i32, %arg1: memref<64x72xf32, #tpu.memory_space<vmem>>, %arg2: memref<72x8xf32, #tpu.memory_space<vmem>>, %arg3: memref<1x8xf32, #tpu.memory_space<vmem>>, %arg4: memref<64x8xf32, #tpu.memory_space<vmem>>) attributes {dimension_semantics = [#tpu.dimension_semantics<parallel>], iteration_bounds = array<i64: 2>, scalar_prefetch = 0 : i64, scratch_operands = 0 : i64, tpu.core_type = #tpu.core_type<tc>, window_params = [{transform_indices = @transform_0, window_bounds = array<i64: 64, 72>}, {pipeline_mode = #tpu.pipeline_mode<synchronous>, transform_indices = @transform_1, window_bounds = array<i64: 72, 8>}, {pipeline_mode = #tpu.pipeline_mode<synchronous>, transform_indices = @transform_2, window_bounds = array<i64: 1, 8>}, {transform_indices = @transform_3, window_bounds = array<i64: 64, 8>}]} {
    %c0 = arith.constant 0 : index
    %c0_0 = arith.constant 0 : index
    %0 = vector.load %arg1[%c0, %c0_0] : memref<64x72xf32, #tpu.memory_space<vmem>>, vector<64x72xf32>
    %c0_1 = arith.constant 0 : index
    %c0_2 = arith.constant 0 : index
    %1 = vector.load %arg2[%c0_1, %c0_2] : memref<72x8xf32, #tpu.memory_space<vmem>>, vector<72x8xf32>
    %cst = arith.constant dense<0.000000e+00> : vector<64x8xf32>
    %2 = tpu.matmul %0, %1, %cst {dimension_numbers = #tpu.dot_dimension_numbers<[1], [0], [0], [1], [0, 0, 1, 1], [], []>} : vector<64x72xf32>, vector<72x8xf32>, vector<64x8xf32> -> vector<64x8xf32>
    %c0_3 = arith.constant 0 : index
    %c0_4 = arith.constant 0 : index
    %3 = vector.load %arg3[%c0_3, %c0_4] : memref<1x8xf32, #tpu.memory_space<vmem>>, vector<1x8xf32>
    %4 = vector.broadcast %3 : vector<1x8xf32> to vector<64x8xf32>
    %5 = arith.addf %2, %4 : vector<64x8xf32>
    %cst_5 = arith.constant 0.000000e+00 : f32
    %6 = vector.broadcast %cst_5 : f32 to vector<64x8xf32>
    %7 = arith.maximumf %5, %6 : vector<64x8xf32>
    %c0_6 = arith.constant 0 : index
    %c0_7 = arith.constant 0 : index
    %8 = vector.load %arg4[%c0_6, %c0_7] : memref<64x8xf32, #tpu.memory_space<vmem>>, vector<64x8xf32>
    tpu.vector_store %arg4[%c0_6, %c0_7], %7 {strides = array<i32>} : memref<64x8xf32, #tpu.memory_space<vmem>>, vector<64x8xf32>,
    return
  }
  func.func @transform_0(%arg0: i32) -> (i32, i32) {
    %c0_i32 = arith.constant 0 : i32
    %c0_i32_0 = arith.constant 0 : i32
    return %arg0, %c0_i32 : i32, i32
  }
  func.func @transform_1(%arg0: i32) -> (i32, i32) {
    %c0_i32 = arith.constant 0 : i32
    %c0_i32_0 = arith.constant 0 : i32
    %c0_i32_1 = arith.constant 0 : i32
    return %c0_i32, %c0_i32_0 : i32, i32
  }
  func.func @transform_2(%arg0: i32) -> (i32, i32) {
    %c0_i32 = arith.constant 0 : i32
    %c0_i32_0 = arith.constant 0 : i32
    %c0_i32_1 = arith.constant 0 : i32
    return %c0_i32, %c0_i32_0 : i32, i32
  }
  func.func @transform_3(%arg0: i32) -> (i32, i32) {
    %c0_i32 = arith.constant 0 : i32
    %c0_i32_0 = arith.constant 0 : i32
    return %arg0, %c0_i32 : i32, i32
  }
}

module attributes {stable_mosaic.version = 11 : i64} {
  func.func @_mm_kernel(%arg0: i32, %arg1: memref<32x72xf32, #tpu.memory_space<vmem>>, %arg2: memref<72x16xf32, #tpu.memory_space<vmem>>, %arg3: memref<1x16xf32, #tpu.memory_space<vmem>>, %arg4: memref<32x16xf32, #tpu.memory_space<vmem>>) attributes {dimension_semantics = [#tpu.dimension_semantics<parallel>], iteration_bounds = array<i64: 1>, scalar_prefetch = 0 : i64, scratch_operands = 0 : i64, tpu.core_type = #tpu.core_type<tc>, window_params = [{transform_indices = @transform_0, window_bounds = array<i64: 32, 72>}, {pipeline_mode = #tpu.pipeline_mode<synchronous>, transform_indices = @transform_1, window_bounds = array<i64: 72, 16>}, {pipeline_mode = #tpu.pipeline_mode<synchronous>, transform_indices = @transform_2, window_bounds = array<i64: 1, 16>}, {transform_indices = @transform_3, window_bounds = array<i64: 32, 16>}]} {
    %c0 = arith.constant 0 : index
    %c0_0 = arith.constant 0 : index
    %0 = vector.load %arg1[%c0, %c0_0] : memref<32x72xf32, #tpu.memory_space<vmem>>, vector<32x72xf32>
    %c0_1 = arith.constant 0 : index
    %c0_2 = arith.constant 0 : index
    %1 = vector.load %arg2[%c0_1, %c0_2] : memref<72x16xf32, #tpu.memory_space<vmem>>, vector<72x16xf32>
    %cst = arith.constant dense<0.000000e+00> : vector<32x16xf32>
    %2 = tpu.matmul %0, %1, %cst {dimension_numbers = #tpu.dot_dimension_numbers<[1], [0], [0], [1], [0, 0, 1, 1], [], []>} : vector<32x72xf32>, vector<72x16xf32>, vector<32x16xf32> -> vector<32x16xf32>
    %c0_3 = arith.constant 0 : index
    %c0_4 = arith.constant 0 : index
    %3 = vector.load %arg3[%c0_3, %c0_4] : memref<1x16xf32, #tpu.memory_space<vmem>>, vector<1x16xf32>
    %4 = vector.broadcast %3 : vector<1x16xf32> to vector<32x16xf32>
    %5 = arith.addf %2, %4 : vector<32x16xf32>
    %cst_5 = arith.constant 0.000000e+00 : f32
    %6 = vector.broadcast %cst_5 : f32 to vector<32x16xf32>
    %7 = arith.maximumf %5, %6 : vector<32x16xf32>
    %c0_6 = arith.constant 0 : index
    %c0_7 = arith.constant 0 : index
    %8 = vector.load %arg4[%c0_6, %c0_7] : memref<32x16xf32, #tpu.memory_space<vmem>>, vector<32x16xf32>
    tpu.vector_store %arg4[%c0_6, %c0_7], %7 {strides = array<i32>} : memref<32x16xf32, #tpu.memory_space<vmem>>, vector<32x16xf32>,
    return
  }
  func.func @transform_0(%arg0: i32) -> (i32, i32) {
    %c0_i32 = arith.constant 0 : i32
    %c0_i32_0 = arith.constant 0 : i32
    return %arg0, %c0_i32 : i32, i32
  }
  func.func @transform_1(%arg0: i32) -> (i32, i32) {
    %c0_i32 = arith.constant 0 : i32
    %c0_i32_0 = arith.constant 0 : i32
    %c0_i32_1 = arith.constant 0 : i32
    return %c0_i32, %c0_i32_0 : i32, i32
  }
  func.func @transform_2(%arg0: i32) -> (i32, i32) {
    %c0_i32 = arith.constant 0 : i32
    %c0_i32_0 = arith.constant 0 : i32
    %c0_i32_1 = arith.constant 0 : i32
    return %c0_i32, %c0_i32_0 : i32, i32
  }
  func.func @transform_3(%arg0: i32) -> (i32, i32) {
    %c0_i32 = arith.constant 0 : i32
    %c0_i32_0 = arith.constant 0 : i32
    return %arg0, %c0_i32 : i32, i32
  }
}

module attributes {stable_mosaic.version = 11 : i64} {
  func.func @_mm_kernel(%arg0: i32, %arg1: memref<8x144xf32, #tpu.memory_space<vmem>>, %arg2: memref<144x32xf32, #tpu.memory_space<vmem>>, %arg3: memref<1x32xf32, #tpu.memory_space<vmem>>, %arg4: memref<8x32xf32, #tpu.memory_space<vmem>>) attributes {dimension_semantics = [#tpu.dimension_semantics<parallel>], iteration_bounds = array<i64: 1>, scalar_prefetch = 0 : i64, scratch_operands = 0 : i64, tpu.core_type = #tpu.core_type<tc>, window_params = [{transform_indices = @transform_0, window_bounds = array<i64: 8, 144>}, {pipeline_mode = #tpu.pipeline_mode<synchronous>, transform_indices = @transform_1, window_bounds = array<i64: 144, 32>}, {pipeline_mode = #tpu.pipeline_mode<synchronous>, transform_indices = @transform_2, window_bounds = array<i64: 1, 32>}, {transform_indices = @transform_3, window_bounds = array<i64: 8, 32>}]} {
    %c0 = arith.constant 0 : index
    %c0_0 = arith.constant 0 : index
    %0 = vector.load %arg1[%c0, %c0_0] : memref<8x144xf32, #tpu.memory_space<vmem>>, vector<8x144xf32>
    %c0_1 = arith.constant 0 : index
    %c0_2 = arith.constant 0 : index
    %1 = vector.load %arg2[%c0_1, %c0_2] : memref<144x32xf32, #tpu.memory_space<vmem>>, vector<144x32xf32>
    %cst = arith.constant dense<0.000000e+00> : vector<8x32xf32>
    %2 = tpu.matmul %0, %1, %cst {dimension_numbers = #tpu.dot_dimension_numbers<[1], [0], [0], [1], [0, 0, 1, 1], [], []>} : vector<8x144xf32>, vector<144x32xf32>, vector<8x32xf32> -> vector<8x32xf32>
    %c0_3 = arith.constant 0 : index
    %c0_4 = arith.constant 0 : index
    %3 = vector.load %arg3[%c0_3, %c0_4] : memref<1x32xf32, #tpu.memory_space<vmem>>, vector<1x32xf32>
    %4 = vector.broadcast %3 : vector<1x32xf32> to vector<8x32xf32>
    %5 = arith.addf %2, %4 : vector<8x32xf32>
    %cst_5 = arith.constant 0.000000e+00 : f32
    %6 = vector.broadcast %cst_5 : f32 to vector<8x32xf32>
    %7 = arith.maximumf %5, %6 : vector<8x32xf32>
    %c0_6 = arith.constant 0 : index
    %c0_7 = arith.constant 0 : index
    %8 = vector.load %arg4[%c0_6, %c0_7] : memref<8x32xf32, #tpu.memory_space<vmem>>, vector<8x32xf32>
    tpu.vector_store %arg4[%c0_6, %c0_7], %7 {strides = array<i32>} : memref<8x32xf32, #tpu.memory_space<vmem>>, vector<8x32xf32>,
    return
  }
  func.func @transform_0(%arg0: i32) -> (i32, i32) {
    %c0_i32 = arith.constant 0 : i32
    %c0_i32_0 = arith.constant 0 : i32
    return %arg0, %c0_i32 : i32, i32
  }
  func.func @transform_1(%arg0: i32) -> (i32, i32) {
    %c0_i32 = arith.constant 0 : i32
    %c0_i32_0 = arith.constant 0 : i32
    %c0_i32_1 = arith.constant 0 : i32
    return %c0_i32, %c0_i32_0 : i32, i32
  }
  func.func @transform_2(%arg0: i32) -> (i32, i32) {
    %c0_i32 = arith.constant 0 : i32
    %c0_i32_0 = arith.constant 0 : i32
    %c0_i32_1 = arith.constant 0 : i32
    return %c0_i32, %c0_i32_0 : i32, i32
  }
  func.func @transform_3(%arg0: i32) -> (i32, i32) {
    %c0_i32 = arith.constant 0 : i32
    %c0_i32_0 = arith.constant 0 : i32
    return %arg0, %c0_i32 : i32, i32
  }
}

module attributes {stable_mosaic.version = 11 : i64} {
  func.func @_mm_kernel(%arg0: i32, %arg1: memref<8x32xf32, #tpu.memory_space<vmem>>, %arg2: memref<32x16xf32, #tpu.memory_space<vmem>>, %arg3: memref<1x16xf32, #tpu.memory_space<vmem>>, %arg4: memref<8x16xf32, #tpu.memory_space<vmem>>) attributes {dimension_semantics = [#tpu.dimension_semantics<parallel>], iteration_bounds = array<i64: 1>, scalar_prefetch = 0 : i64, scratch_operands = 0 : i64, tpu.core_type = #tpu.core_type<tc>, window_params = [{transform_indices = @transform_0, window_bounds = array<i64: 8, 32>}, {pipeline_mode = #tpu.pipeline_mode<synchronous>, transform_indices = @transform_1, window_bounds = array<i64: 32, 16>}, {pipeline_mode = #tpu.pipeline_mode<synchronous>, transform_indices = @transform_2, window_bounds = array<i64: 1, 16>}, {transform_indices = @transform_3, window_bounds = array<i64: 8, 16>}]} {
    %c0 = arith.constant 0 : index
    %c0_0 = arith.constant 0 : index
    %0 = vector.load %arg1[%c0, %c0_0] : memref<8x32xf32, #tpu.memory_space<vmem>>, vector<8x32xf32>
    %c0_1 = arith.constant 0 : index
    %c0_2 = arith.constant 0 : index
    %1 = vector.load %arg2[%c0_1, %c0_2] : memref<32x16xf32, #tpu.memory_space<vmem>>, vector<32x16xf32>
    %cst = arith.constant dense<0.000000e+00> : vector<8x16xf32>
    %2 = tpu.matmul %0, %1, %cst {dimension_numbers = #tpu.dot_dimension_numbers<[1], [0], [0], [1], [0, 0, 1, 1], [], []>} : vector<8x32xf32>, vector<32x16xf32>, vector<8x16xf32> -> vector<8x16xf32>
    %c0_3 = arith.constant 0 : index
    %c0_4 = arith.constant 0 : index
    %3 = vector.load %arg3[%c0_3, %c0_4] : memref<1x16xf32, #tpu.memory_space<vmem>>, vector<1x16xf32>
    %4 = vector.broadcast %3 : vector<1x16xf32> to vector<8x16xf32>
    %5 = arith.addf %2, %4 : vector<8x16xf32>
    %cst_5 = arith.constant 0.000000e+00 : f32
    %6 = vector.broadcast %cst_5 : f32 to vector<8x16xf32>
    %7 = arith.maximumf %5, %6 : vector<8x16xf32>
    %c0_6 = arith.constant 0 : index
    %c0_7 = arith.constant 0 : index
    %8 = vector.load %arg4[%c0_6, %c0_7] : memref<8x16xf32, #tpu.memory_space<vmem>>, vector<8x16xf32>
    tpu.vector_store %arg4[%c0_6, %c0_7], %7 {strides = array<i32>} : memref<8x16xf32, #tpu.memory_space<vmem>>, vector<8x16xf32>,
    return
  }
  func.func @transform_0(%arg0: i32) -> (i32, i32) {
    %c0_i32 = arith.constant 0 : i32
    %c0_i32_0 = arith.constant 0 : i32
    return %arg0, %c0_i32 : i32, i32
  }
  func.func @transform_1(%arg0: i32) -> (i32, i32) {
    %c0_i32 = arith.constant 0 : i32
    %c0_i32_0 = arith.constant 0 : i32
    %c0_i32_1 = arith.constant 0 : i32
    return %c0_i32, %c0_i32_0 : i32, i32
  }
  func.func @transform_2(%arg0: i32) -> (i32, i32) {
    %c0_i32 = arith.constant 0 : i32
    %c0_i32_0 = arith.constant 0 : i32
    %c0_i32_1 = arith.constant 0 : i32
    return %c0_i32, %c0_i32_0 : i32, i32
  }
  func.func @transform_3(%arg0: i32) -> (i32, i32) {
    %c0_i32 = arith.constant 0 : i32
    %c0_i32_0 = arith.constant 0 : i32
    return %arg0, %c0_i32 : i32, i32
  }
}

module attributes {stable_mosaic.version = 11 : i64} {
  func.func @_mm_res_kernel(%arg0: i32, %arg1: memref<32x48xf32, #tpu.memory_space<vmem>>, %arg2: memref<48x32xf32, #tpu.memory_space<vmem>>, %arg3: memref<1x32xf32, #tpu.memory_space<vmem>>, %arg4: memref<32x32xf32, #tpu.memory_space<vmem>>, %arg5: memref<32x32xf32, #tpu.memory_space<vmem>>) attributes {dimension_semantics = [#tpu.dimension_semantics<parallel>], iteration_bounds = array<i64: 1>, scalar_prefetch = 0 : i64, scratch_operands = 0 : i64, tpu.core_type = #tpu.core_type<tc>, window_params = [{transform_indices = @transform_0, window_bounds = array<i64: 32, 48>}, {pipeline_mode = #tpu.pipeline_mode<synchronous>, transform_indices = @transform_1, window_bounds = array<i64: 48, 32>}, {pipeline_mode = #tpu.pipeline_mode<synchronous>, transform_indices = @transform_2, window_bounds = array<i64: 1, 32>}, {transform_indices = @transform_3, window_bounds = array<i64: 32, 32>}, {transform_indices = @transform_4, window_bounds = array<i64: 32, 32>}]} {
    %c0 = arith.constant 0 : index
    %c0_0 = arith.constant 0 : index
    %0 = vector.load %arg1[%c0, %c0_0] : memref<32x48xf32, #tpu.memory_space<vmem>>, vector<32x48xf32>
    %c0_1 = arith.constant 0 : index
    %c0_2 = arith.constant 0 : index
    %1 = vector.load %arg2[%c0_1, %c0_2] : memref<48x32xf32, #tpu.memory_space<vmem>>, vector<48x32xf32>
    %cst = arith.constant dense<0.000000e+00> : vector<32x32xf32>
    %2 = tpu.matmul %0, %1, %cst {dimension_numbers = #tpu.dot_dimension_numbers<[1], [0], [0], [1], [0, 0, 1, 1], [], []>} : vector<32x48xf32>, vector<48x32xf32>, vector<32x32xf32> -> vector<32x32xf32>
    %c0_3 = arith.constant 0 : index
    %c0_4 = arith.constant 0 : index
    %3 = vector.load %arg3[%c0_3, %c0_4] : memref<1x32xf32, #tpu.memory_space<vmem>>, vector<1x32xf32>
    %4 = vector.broadcast %3 : vector<1x32xf32> to vector<32x32xf32>
    %5 = arith.addf %2, %4 : vector<32x32xf32>
    %c0_5 = arith.constant 0 : index
    %c0_6 = arith.constant 0 : index
    %6 = vector.load %arg4[%c0_5, %c0_6] : memref<32x32xf32, #tpu.memory_space<vmem>>, vector<32x32xf32>
    %7 = arith.addf %5, %6 : vector<32x32xf32>
    %c0_7 = arith.constant 0 : index
    %c0_8 = arith.constant 0 : index
    %8 = vector.load %arg5[%c0_7, %c0_8] : memref<32x32xf32, #tpu.memory_space<vmem>>, vector<32x32xf32>
    tpu.vector_store %arg5[%c0_7, %c0_8], %7 {strides = array<i32>} : memref<32x32xf32, #tpu.memory_space<vmem>>, vector<32x32xf32>,
    return
  }
  func.func @transform_0(%arg0: i32) -> (i32, i32) {
    %c0_i32 = arith.constant 0 : i32
    %c0_i32_0 = arith.constant 0 : i32
    return %arg0, %c0_i32 : i32, i32
  }
  func.func @transform_1(%arg0: i32) -> (i32, i32) {
    %c0_i32 = arith.constant 0 : i32
    %c0_i32_0 = arith.constant 0 : i32
    %c0_i32_1 = arith.constant 0 : i32
    return %c0_i32, %c0_i32_0 : i32, i32
  }
  func.func @transform_2(%arg0: i32) -> (i32, i32) {
    %c0_i32 = arith.constant 0 : i32
    %c0_i32_0 = arith.constant 0 : i32
    %c0_i32_1 = arith.constant 0 : i32
    return %c0_i32, %c0_i32_0 : i32, i32
  }
  func.func @transform_3(%arg0: i32) -> (i32, i32) {
    %c0_i32 = arith.constant 0 : i32
    %c0_i32_0 = arith.constant 0 : i32
    return %arg0, %c0_i32 : i32, i32
  }
  func.func @transform_4(%arg0: i32) -> (i32, i32) {
    %c0_i32 = arith.constant 0 : i32
    %c0_i32_0 = arith.constant 0 : i32
    return %arg0, %c0_i32 : i32, i32
  }
}

module attributes {stable_mosaic.version = 11 : i64} {
  func.func @_transformer_layer_kernel(%arg0: i32, %arg1: memref<1x16x32xf32, #tpu.memory_space<vmem>>, %arg2: memref<1x32xf32, #tpu.memory_space<vmem>>, %arg3: memref<1x32xf32, #tpu.memory_space<vmem>>, %arg4: memref<32x96xf32, #tpu.memory_space<vmem>>, %arg5: memref<1x96xf32, #tpu.memory_space<vmem>>, %arg6: memref<32x32xf32, #tpu.memory_space<vmem>>, %arg7: memref<1x32xf32, #tpu.memory_space<vmem>>, %arg8: memref<1x32xf32, #tpu.memory_space<vmem>>, %arg9: memref<1x32xf32, #tpu.memory_space<vmem>>, %arg10: memref<32x64xf32, #tpu.memory_space<vmem>>, %arg11: memref<1x64xf32, #tpu.memory_space<vmem>>, %arg12: memref<64x32xf32, #tpu.memory_space<vmem>>, %arg13: memref<1x32xf32, #tpu.memory_space<vmem>>, %arg14: memref<1x32xf32, #tpu.memory_space<vmem>>, %arg15: memref<1x32xf32, #tpu.memory_space<vmem>>, %arg16: memref<1x16x32xf32, #tpu.memory_space<vmem>>) attributes {dimension_semantics = [#tpu.dimension_semantics<parallel>], iteration_bounds = array<i64: 2>, scalar_prefetch = 0 : i64, scratch_operands = 0 : i64, tpu.core_type = #tpu.core_type<tc>, window_params = [{transform_indices = @transform_0, window_bounds = array<i64: 1, 16, 32>}, {pipeline_mode = #tpu.pipeline_mode<synchronous>, transform_indices = @transform_1, window_bounds = array<i64: 1, 32>}, {pipeline_mode = #tpu.pipeline_mode<synchronous>, transform_indices = @transform_2, window_bounds = array<i64: 1, 32>}, {pipeline_mode = #tpu.pipeline_mode<synchronous>, transform_indices = @transform_3, window_bounds = array<i64: 32, 96>}, {pipeline_mode = #tpu.pipeline_mode<synchronous>, transform_indices = @transform_4, window_bounds = array<i64: 1, 96>}, {pipeline_mode = #tpu.pipeline_mode<synchronous>, transform_indices = @transform_5, window_bounds = array<i64: 32, 32>}, {pipeline_mode = #tpu.pipeline_mode<synchronous>, transform_indices = @transform_6, window_bounds = array<i64: 1, 32>}, {pipeline_mode = #tpu.pipeline_mode<synchronous>, transform_indices = @transform_7, window_bounds = array<i64: 1, 32>}, {pipeline_mode = #tpu.pipeline_mode<synchronous>, transform_indices = @transform_8, window_bounds = array<i64: 1, 32>}, {pipeline_mode = #tpu.pipeline_mode<synchronous>, transform_indices = @transform_9, window_bounds = array<i64: 32, 64>}, {pipeline_mode = #tpu.pipeline_mode<synchronous>, transform_indices = @transform_10, window_bounds = array<i64: 1, 64>}, {pipeline_mode = #tpu.pipeline_mode<synchronous>, transform_indices = @transform_11, window_bounds = array<i64: 64, 32>}, {pipeline_mode = #tpu.pipeline_mode<synchronous>, transform_indices = @transform_12, window_bounds = array<i64: 1, 32>}, {pipeline_mode = #tpu.pipeline_mode<synchronous>, transform_indices = @transform_13, window_bounds = array<i64: 1, 32>}, {pipeline_mode = #tpu.pipeline_mode<synchronous>, transform_indices = @transform_14, window_bounds = array<i64: 1, 32>}, {transform_indices = @transform_15, window_bounds = array<i64: 1, 16, 32>}]} {
    %c0 = arith.constant 0 : index
    %c0_0 = arith.constant 0 : index
    %c0_1 = arith.constant 0 : index
    %0 = vector.load %arg1[%c0, %c0_0, %c0_1] : memref<1x16x32xf32, #tpu.memory_space<vmem>>, vector<1x16x32xf32>
    %1 = vector.shape_cast %0 : vector<1x16x32xf32> to vector<16x32xf32>
    %c0_2 = arith.constant 0 : index
    %c0_3 = arith.constant 0 : index
    %2 = vector.load %arg2[%c0_2, %c0_3] : memref<1x32xf32, #tpu.memory_space<vmem>>, vector<1x32xf32>
    %c0_4 = arith.constant 0 : index
    %c0_5 = arith.constant 0 : index
    %3 = vector.load %arg3[%c0_4, %c0_5] : memref<1x32xf32, #tpu.memory_space<vmem>>, vector<1x32xf32>
    %cst = arith.constant dense<0.000000e+00> : vector<16xf32>
    %4 = vector.multi_reduction <add>, %1, %cst [1] : vector<16x32xf32> to vector<16xf32>
    %5 = vector.shape_cast %4 : vector<16xf32> to vector<16x1xf32>
    %cst_6 = arith.constant 3.200000e+01 : f32
    %6 = vector.broadcast %cst_6 : f32 to vector<16x1xf32>
    %7 = arith.divf %5, %6 : vector<16x1xf32>
    %8 = vector.broadcast %7 : vector<16x1xf32> to vector<16x32xf32>
    %9 = arith.subf %1, %8 : vector<16x32xf32>
    %10 = arith.mulf %9, %9 : vector<16x32xf32>
    %cst_7 = arith.constant dense<0.000000e+00> : vector<16xf32>
    %11 = vector.multi_reduction <add>, %10, %cst_7 [1] : vector<16x32xf32> to vector<16xf32>
    %12 = vector.shape_cast %11 : vector<16xf32> to vector<16x1xf32>
    %cst_8 = arith.constant 3.200000e+01 : f32
    %13 = vector.broadcast %cst_8 : f32 to vector<16x1xf32>
    %14 = arith.divf %12, %13 : vector<16x1xf32>
    %15 = vector.broadcast %7 : vector<16x1xf32> to vector<16x32xf32>
    %16 = arith.subf %1, %15 : vector<16x32xf32>
    %cst_9 = arith.constant 9.99999997E-7 : f32
    %17 = vector.broadcast %cst_9 : f32 to vector<16x1xf32>
    %18 = arith.addf %14, %17 : vector<16x1xf32>
    %19 = math.rsqrt %18 : vector<16x1xf32>
    %20 = vector.broadcast %19 : vector<16x1xf32> to vector<16x32xf32>
    %21 = arith.mulf %16, %20 : vector<16x32xf32>
    %22 = vector.broadcast %2 : vector<1x32xf32> to vector<16x32xf32>
    %23 = arith.mulf %21, %22 : vector<16x32xf32>
    %24 = vector.broadcast %3 : vector<1x32xf32> to vector<16x32xf32>
    %25 = arith.addf %23, %24 : vector<16x32xf32>
    %c0_10 = arith.constant 0 : index
    %c0_11 = arith.constant 0 : index
    %26 = vector.load %arg4[%c0_10, %c0_11] : memref<32x96xf32, #tpu.memory_space<vmem>>, vector<32x96xf32>
    %cst_12 = arith.constant dense<0.000000e+00> : vector<16x96xf32>
    %27 = tpu.matmul %25, %26, %cst_12 {dimension_numbers = #tpu.dot_dimension_numbers<[1], [0], [0], [1], [0, 0, 1, 1], [], []>} : vector<16x32xf32>, vector<32x96xf32>, vector<16x96xf32> -> vector<16x96xf32>
    %c0_13 = arith.constant 0 : index
    %c0_14 = arith.constant 0 : index
    %28 = vector.load %arg5[%c0_13, %c0_14] : memref<1x96xf32, #tpu.memory_space<vmem>>, vector<1x96xf32>
    %29 = vector.broadcast %28 : vector<1x96xf32> to vector<16x96xf32>
    %30 = arith.addf %27, %29 : vector<16x96xf32>
    %c0_15 = arith.constant 0 : index
    %c0_16 = arith.constant 0 : index
    %31 = vector.load %arg6[%c0_15, %c0_16] : memref<32x32xf32, #tpu.memory_space<vmem>>, vector<32x32xf32>
    %32 = vector.extract_strided_slice %30 {offsets = [0, 0], sizes = [16, 8], strides = [1, 1]} : vector<16x96xf32> to vector<16x8xf32>
    %33 = vector.extract_strided_slice %30 {offsets = [0, 32], sizes = [16, 8], strides = [1, 1]} : vector<16x96xf32> to vector<16x8xf32>
    %34 = vector.extract_strided_slice %30 {offsets = [0, 64], sizes = [16, 8], strides = [1, 1]} : vector<16x96xf32> to vector<16x8xf32>
    %35 = tpu.transpose %33, [1, 0] : vector<16x8xf32> -> vector<8x16xf32>
    %cst_17 = arith.constant dense<0.000000e+00> : vector<16x16xf32>
    %36 = tpu.matmul %32, %35, %cst_17 {dimension_numbers = #tpu.dot_dimension_numbers<[1], [0], [0], [1], [0, 0, 1, 1], [], []>} : vector<16x8xf32>, vector<8x16xf32>, vector<16x16xf32> -> vector<16x16xf32>
    %cst_18 = arith.constant 0.353553385 : f32
    %37 = vector.broadcast %cst_18 : f32 to vector<16x16xf32>
    %38 = arith.mulf %36, %37 : vector<16x16xf32>
    %cst_19 = arith.constant dense<0xFF800000> : vector<16xf32>
    %39 = vector.multi_reduction <maximumf>, %38, %cst_19 [1] : vector<16x16xf32> to vector<16xf32>
    %40 = vector.shape_cast %39 : vector<16xf32> to vector<16x1xf32>
    %41 = vector.broadcast %40 : vector<16x1xf32> to vector<16x16xf32>
    %42 = arith.subf %38, %41 : vector<16x16xf32>
    %43 = math.exp %42 : vector<16x16xf32>
    %cst_20 = arith.constant dense<0.000000e+00> : vector<16xf32>
    %44 = vector.multi_reduction <add>, %43, %cst_20 [1] : vector<16x16xf32> to vector<16xf32>
    %45 = vector.shape_cast %44 : vector<16xf32> to vector<16x1xf32>
    %46 = tpu.reciprocal %45 {approx = true} : vector<16x1xf32> -> vector<16x1xf32>
    %47 = vector.broadcast %46 : vector<16x1xf32> to vector<16x16xf32>
    %48 = arith.mulf %43, %47 : vector<16x16xf32>
    %cst_21 = arith.constant dense<0.000000e+00> : vector<16x8xf32>
    %49 = tpu.matmul %48, %34, %cst_21 {dimension_numbers = #tpu.dot_dimension_numbers<[1], [0], [0], [1], [0, 0, 1, 1], [], []>} : vector<16x16xf32>, vector<16x8xf32>, vector<16x8xf32> -> vector<16x8xf32>
    %50 = vector.extract_strided_slice %31 {offsets = [0, 0], sizes = [8, 32], strides = [1, 1]} : vector<32x32xf32> to vector<8x32xf32>
    %cst_22 = arith.constant dense<0.000000e+00> : vector<16x32xf32>
    %51 = tpu.matmul %49, %50, %cst_22 {dimension_numbers = #tpu.dot_dimension_numbers<[1], [0], [0], [1], [0, 0, 1, 1], [], []>} : vector<16x8xf32>, vector<8x32xf32>, vector<16x32xf32> -> vector<16x32xf32>
    %52 = vector.extract_strided_slice %30 {offsets = [0, 8], sizes = [16, 8], strides = [1, 1]} : vector<16x96xf32> to vector<16x8xf32>
    %53 = vector.extract_strided_slice %30 {offsets = [0, 40], sizes = [16, 8], strides = [1, 1]} : vector<16x96xf32> to vector<16x8xf32>
    %54 = vector.extract_strided_slice %30 {offsets = [0, 72], sizes = [16, 8], strides = [1, 1]} : vector<16x96xf32> to vector<16x8xf32>
    %55 = tpu.transpose %53, [1, 0] : vector<16x8xf32> -> vector<8x16xf32>
    %cst_23 = arith.constant dense<0.000000e+00> : vector<16x16xf32>
    %56 = tpu.matmul %52, %55, %cst_23 {dimension_numbers = #tpu.dot_dimension_numbers<[1], [0], [0], [1], [0, 0, 1, 1], [], []>} : vector<16x8xf32>, vector<8x16xf32>, vector<16x16xf32> -> vector<16x16xf32>
    %cst_24 = arith.constant 0.353553385 : f32
    %57 = vector.broadcast %cst_24 : f32 to vector<16x16xf32>
    %58 = arith.mulf %56, %57 : vector<16x16xf32>
    %cst_25 = arith.constant dense<0xFF800000> : vector<16xf32>
    %59 = vector.multi_reduction <maximumf>, %58, %cst_25 [1] : vector<16x16xf32> to vector<16xf32>
    %60 = vector.shape_cast %59 : vector<16xf32> to vector<16x1xf32>
    %61 = vector.broadcast %60 : vector<16x1xf32> to vector<16x16xf32>
    %62 = arith.subf %58, %61 : vector<16x16xf32>
    %63 = math.exp %62 : vector<16x16xf32>
    %cst_26 = arith.constant dense<0.000000e+00> : vector<16xf32>
    %64 = vector.multi_reduction <add>, %63, %cst_26 [1] : vector<16x16xf32> to vector<16xf32>
    %65 = vector.shape_cast %64 : vector<16xf32> to vector<16x1xf32>
    %66 = tpu.reciprocal %65 {approx = true} : vector<16x1xf32> -> vector<16x1xf32>
    %67 = vector.broadcast %66 : vector<16x1xf32> to vector<16x16xf32>
    %68 = arith.mulf %63, %67 : vector<16x16xf32>
    %cst_27 = arith.constant dense<0.000000e+00> : vector<16x8xf32>
    %69 = tpu.matmul %68, %54, %cst_27 {dimension_numbers = #tpu.dot_dimension_numbers<[1], [0], [0], [1], [0, 0, 1, 1], [], []>} : vector<16x16xf32>, vector<16x8xf32>, vector<16x8xf32> -> vector<16x8xf32>
    %70 = vector.extract_strided_slice %31 {offsets = [8, 0], sizes = [8, 32], strides = [1, 1]} : vector<32x32xf32> to vector<8x32xf32>
    %cst_28 = arith.constant dense<0.000000e+00> : vector<16x32xf32>
    %71 = tpu.matmul %69, %70, %cst_28 {dimension_numbers = #tpu.dot_dimension_numbers<[1], [0], [0], [1], [0, 0, 1, 1], [], []>} : vector<16x8xf32>, vector<8x32xf32>, vector<16x32xf32> -> vector<16x32xf32>
    %72 = arith.addf %51, %71 : vector<16x32xf32>
    %73 = vector.extract_strided_slice %30 {offsets = [0, 16], sizes = [16, 8], strides = [1, 1]} : vector<16x96xf32> to vector<16x8xf32>
    %74 = vector.extract_strided_slice %30 {offsets = [0, 48], sizes = [16, 8], strides = [1, 1]} : vector<16x96xf32> to vector<16x8xf32>
    %75 = vector.extract_strided_slice %30 {offsets = [0, 80], sizes = [16, 8], strides = [1, 1]} : vector<16x96xf32> to vector<16x8xf32>
    %76 = tpu.transpose %74, [1, 0] : vector<16x8xf32> -> vector<8x16xf32>
    %cst_29 = arith.constant dense<0.000000e+00> : vector<16x16xf32>
    %77 = tpu.matmul %73, %76, %cst_29 {dimension_numbers = #tpu.dot_dimension_numbers<[1], [0], [0], [1], [0, 0, 1, 1], [], []>} : vector<16x8xf32>, vector<8x16xf32>, vector<16x16xf32> -> vector<16x16xf32>
    %cst_30 = arith.constant 0.353553385 : f32
    %78 = vector.broadcast %cst_30 : f32 to vector<16x16xf32>
    %79 = arith.mulf %77, %78 : vector<16x16xf32>
    %cst_31 = arith.constant dense<0xFF800000> : vector<16xf32>
    %80 = vector.multi_reduction <maximumf>, %79, %cst_31 [1] : vector<16x16xf32> to vector<16xf32>
    %81 = vector.shape_cast %80 : vector<16xf32> to vector<16x1xf32>
    %82 = vector.broadcast %81 : vector<16x1xf32> to vector<16x16xf32>
    %83 = arith.subf %79, %82 : vector<16x16xf32>
    %84 = math.exp %83 : vector<16x16xf32>
    %cst_32 = arith.constant dense<0.000000e+00> : vector<16xf32>
    %85 = vector.multi_reduction <add>, %84, %cst_32 [1] : vector<16x16xf32> to vector<16xf32>
    %86 = vector.shape_cast %85 : vector<16xf32> to vector<16x1xf32>
    %87 = tpu.reciprocal %86 {approx = true} : vector<16x1xf32> -> vector<16x1xf32>
    %88 = vector.broadcast %87 : vector<16x1xf32> to vector<16x16xf32>
    %89 = arith.mulf %84, %88 : vector<16x16xf32>
    %cst_33 = arith.constant dense<0.000000e+00> : vector<16x8xf32>
    %90 = tpu.matmul %89, %75, %cst_33 {dimension_numbers = #tpu.dot_dimension_numbers<[1], [0], [0], [1], [0, 0, 1, 1], [], []>} : vector<16x16xf32>, vector<16x8xf32>, vector<16x8xf32> -> vector<16x8xf32>
    %91 = vector.extract_strided_slice %31 {offsets = [16, 0], sizes = [8, 32], strides = [1, 1]} : vector<32x32xf32> to vector<8x32xf32>
    %cst_34 = arith.constant dense<0.000000e+00> : vector<16x32xf32>
    %92 = tpu.matmul %90, %91, %cst_34 {dimension_numbers = #tpu.dot_dimension_numbers<[1], [0], [0], [1], [0, 0, 1, 1], [], []>} : vector<16x8xf32>, vector<8x32xf32>, vector<16x32xf32> -> vector<16x32xf32>
    %93 = arith.addf %72, %92 : vector<16x32xf32>
    %94 = vector.extract_strided_slice %30 {offsets = [0, 24], sizes = [16, 8], strides = [1, 1]} : vector<16x96xf32> to vector<16x8xf32>
    %95 = vector.extract_strided_slice %30 {offsets = [0, 56], sizes = [16, 8], strides = [1, 1]} : vector<16x96xf32> to vector<16x8xf32>
    %96 = vector.extract_strided_slice %30 {offsets = [0, 88], sizes = [16, 8], strides = [1, 1]} : vector<16x96xf32> to vector<16x8xf32>
    %97 = tpu.transpose %95, [1, 0] : vector<16x8xf32> -> vector<8x16xf32>
    %cst_35 = arith.constant dense<0.000000e+00> : vector<16x16xf32>
    %98 = tpu.matmul %94, %97, %cst_35 {dimension_numbers = #tpu.dot_dimension_numbers<[1], [0], [0], [1], [0, 0, 1, 1], [], []>} : vector<16x8xf32>, vector<8x16xf32>, vector<16x16xf32> -> vector<16x16xf32>
    %cst_36 = arith.constant 0.353553385 : f32
    %99 = vector.broadcast %cst_36 : f32 to vector<16x16xf32>
    %100 = arith.mulf %98, %99 : vector<16x16xf32>
    %cst_37 = arith.constant dense<0xFF800000> : vector<16xf32>
    %101 = vector.multi_reduction <maximumf>, %100, %cst_37 [1] : vector<16x16xf32> to vector<16xf32>
    %102 = vector.shape_cast %101 : vector<16xf32> to vector<16x1xf32>
    %103 = vector.broadcast %102 : vector<16x1xf32> to vector<16x16xf32>
    %104 = arith.subf %100, %103 : vector<16x16xf32>
    %105 = math.exp %104 : vector<16x16xf32>
    %cst_38 = arith.constant dense<0.000000e+00> : vector<16xf32>
    %106 = vector.multi_reduction <add>, %105, %cst_38 [1] : vector<16x16xf32> to vector<16xf32>
    %107 = vector.shape_cast %106 : vector<16xf32> to vector<16x1xf32>
    %108 = tpu.reciprocal %107 {approx = true} : vector<16x1xf32> -> vector<16x1xf32>
    %109 = vector.broadcast %108 : vector<16x1xf32> to vector<16x16xf32>
    %110 = arith.mulf %105, %109 : vector<16x16xf32>
    %cst_39 = arith.constant dense<0.000000e+00> : vector<16x8xf32>
    %111 = tpu.matmul %110, %96, %cst_39 {dimension_numbers = #tpu.dot_dimension_numbers<[1], [0], [0], [1], [0, 0, 1, 1], [], []>} : vector<16x16xf32>, vector<16x8xf32>, vector<16x8xf32> -> vector<16x8xf32>
    %112 = vector.extract_strided_slice %31 {offsets = [24, 0], sizes = [8, 32], strides = [1, 1]} : vector<32x32xf32> to vector<8x32xf32>
    %cst_40 = arith.constant dense<0.000000e+00> : vector<16x32xf32>
    %113 = tpu.matmul %111, %112, %cst_40 {dimension_numbers = #tpu.dot_dimension_numbers<[1], [0], [0], [1], [0, 0, 1, 1], [], []>} : vector<16x8xf32>, vector<8x32xf32>, vector<16x32xf32> -> vector<16x32xf32>
    %114 = arith.addf %93, %113 : vector<16x32xf32>
    %115 = arith.addf %1, %114 : vector<16x32xf32>
    %c0_41 = arith.constant 0 : index
    %c0_42 = arith.constant 0 : index
    %116 = vector.load %arg7[%c0_41, %c0_42] : memref<1x32xf32, #tpu.memory_space<vmem>>, vector<1x32xf32>
    %117 = vector.broadcast %116 : vector<1x32xf32> to vector<16x32xf32>
    %118 = arith.addf %115, %117 : vector<16x32xf32>
    %c0_43 = arith.constant 0 : index
    %c0_44 = arith.constant 0 : index
    %119 = vector.load %arg8[%c0_43, %c0_44] : memref<1x32xf32, #tpu.memory_space<vmem>>, vector<1x32xf32>
    %c0_45 = arith.constant 0 : index
    %c0_46 = arith.constant 0 : index
    %120 = vector.load %arg9[%c0_45, %c0_46] : memref<1x32xf32, #tpu.memory_space<vmem>>, vector<1x32xf32>
    %cst_47 = arith.constant dense<0.000000e+00> : vector<16xf32>
    %121 = vector.multi_reduction <add>, %118, %cst_47 [1] : vector<16x32xf32> to vector<16xf32>
    %122 = vector.shape_cast %121 : vector<16xf32> to vector<16x1xf32>
    %cst_48 = arith.constant 3.200000e+01 : f32
    %123 = vector.broadcast %cst_48 : f32 to vector<16x1xf32>
    %124 = arith.divf %122, %123 : vector<16x1xf32>
    %125 = vector.broadcast %124 : vector<16x1xf32> to vector<16x32xf32>
    %126 = arith.subf %118, %125 : vector<16x32xf32>
    %127 = arith.mulf %126, %126 : vector<16x32xf32>
    %cst_49 = arith.constant dense<0.000000e+00> : vector<16xf32>
    %128 = vector.multi_reduction <add>, %127, %cst_49 [1] : vector<16x32xf32> to vector<16xf32>
    %129 = vector.shape_cast %128 : vector<16xf32> to vector<16x1xf32>
    %cst_50 = arith.constant 3.200000e+01 : f32
    %130 = vector.broadcast %cst_50 : f32 to vector<16x1xf32>
    %131 = arith.divf %129, %130 : vector<16x1xf32>
    %132 = vector.broadcast %124 : vector<16x1xf32> to vector<16x32xf32>
    %133 = arith.subf %118, %132 : vector<16x32xf32>
    %cst_51 = arith.constant 9.99999997E-7 : f32
    %134 = vector.broadcast %cst_51 : f32 to vector<16x1xf32>
    %135 = arith.addf %131, %134 : vector<16x1xf32>
    %136 = math.rsqrt %135 : vector<16x1xf32>
    %137 = vector.broadcast %136 : vector<16x1xf32> to vector<16x32xf32>
    %138 = arith.mulf %133, %137 : vector<16x32xf32>
    %139 = vector.broadcast %119 : vector<1x32xf32> to vector<16x32xf32>
    %140 = arith.mulf %138, %139 : vector<16x32xf32>
    %141 = vector.broadcast %120 : vector<1x32xf32> to vector<16x32xf32>
    %142 = arith.addf %140, %141 : vector<16x32xf32>
    %c0_52 = arith.constant 0 : index
    %c0_53 = arith.constant 0 : index
    %143 = vector.load %arg10[%c0_52, %c0_53] : memref<32x64xf32, #tpu.memory_space<vmem>>, vector<32x64xf32>
    %cst_54 = arith.constant dense<0.000000e+00> : vector<16x64xf32>
    %144 = tpu.matmul %142, %143, %cst_54 {dimension_numbers = #tpu.dot_dimension_numbers<[1], [0], [0], [1], [0, 0, 1, 1], [], []>} : vector<16x32xf32>, vector<32x64xf32>, vector<16x64xf32> -> vector<16x64xf32>
    %c0_55 = arith.constant 0 : index
    %c0_56 = arith.constant 0 : index
    %145 = vector.load %arg11[%c0_55, %c0_56] : memref<1x64xf32, #tpu.memory_space<vmem>>, vector<1x64xf32>
    %146 = vector.broadcast %145 : vector<1x64xf32> to vector<16x64xf32>
    %147 = arith.addf %144, %146 : vector<16x64xf32>
    %148 = arith.mulf %147, %147 : vector<16x64xf32>
    %149 = arith.mulf %147, %148 : vector<16x64xf32>
    %cst_57 = arith.constant 4.471500e-02 : f32
    %150 = vector.broadcast %cst_57 : f32 to vector<16x64xf32>
    %151 = arith.mulf %150, %149 : vector<16x64xf32>
    %152 = arith.addf %147, %151 : vector<16x64xf32>
    %cst_58 = arith.constant 0.797884583 : f32
    %153 = vector.broadcast %cst_58 : f32 to vector<16x64xf32>
    %154 = arith.mulf %153, %152 : vector<16x64xf32>
    %155 = math.tanh %154 : vector<16x64xf32>
    %cst_59 = arith.constant 1.000000e+00 : f32
    %156 = vector.broadcast %cst_59 : f32 to vector<16x64xf32>
    %157 = arith.addf %156, %155 : vector<16x64xf32>
    %cst_60 = arith.constant 5.000000e-01 : f32
    %158 = vector.broadcast %cst_60 : f32 to vector<16x64xf32>
    %159 = arith.mulf %158, %157 : vector<16x64xf32>
    %160 = arith.mulf %147, %159 : vector<16x64xf32>
    %c0_61 = arith.constant 0 : index
    %c0_62 = arith.constant 0 : index
    %161 = vector.load %arg12[%c0_61, %c0_62] : memref<64x32xf32, #tpu.memory_space<vmem>>, vector<64x32xf32>
    %cst_63 = arith.constant dense<0.000000e+00> : vector<16x32xf32>
    %162 = tpu.matmul %160, %161, %cst_63 {dimension_numbers = #tpu.dot_dimension_numbers<[1], [0], [0], [1], [0, 0, 1, 1], [], []>} : vector<16x64xf32>, vector<64x32xf32>, vector<16x32xf32> -> vector<16x32xf32>
    %c0_64 = arith.constant 0 : index
    %c0_65 = arith.constant 0 : index
    %163 = vector.load %arg13[%c0_64, %c0_65] : memref<1x32xf32, #tpu.memory_space<vmem>>, vector<1x32xf32>
    %164 = vector.broadcast %163 : vector<1x32xf32> to vector<16x32xf32>
    %165 = arith.addf %162, %164 : vector<16x32xf32>
    %166 = arith.addf %118, %165 : vector<16x32xf32>
    %c0_66 = arith.constant 0 : index
    %c0_67 = arith.constant 0 : index
    %167 = vector.load %arg14[%c0_66, %c0_67] : memref<1x32xf32, #tpu.memory_space<vmem>>, vector<1x32xf32>
    %c0_68 = arith.constant 0 : index
    %c0_69 = arith.constant 0 : index
    %168 = vector.load %arg15[%c0_68, %c0_69] : memref<1x32xf32, #tpu.memory_space<vmem>>, vector<1x32xf32>
    %cst_70 = arith.constant dense<0.000000e+00> : vector<16xf32>
    %169 = vector.multi_reduction <add>, %166, %cst_70 [1] : vector<16x32xf32> to vector<16xf32>
    %170 = vector.shape_cast %169 : vector<16xf32> to vector<16x1xf32>
    %cst_71 = arith.constant 3.200000e+01 : f32
    %171 = vector.broadcast %cst_71 : f32 to vector<16x1xf32>
    %172 = arith.divf %170, %171 : vector<16x1xf32>
    %173 = vector.broadcast %172 : vector<16x1xf32> to vector<16x32xf32>
    %174 = arith.subf %166, %173 : vector<16x32xf32>
    %175 = arith.mulf %174, %174 : vector<16x32xf32>
    %cst_72 = arith.constant dense<0.000000e+00> : vector<16xf32>
    %176 = vector.multi_reduction <add>, %175, %cst_72 [1] : vector<16x32xf32> to vector<16xf32>
    %177 = vector.shape_cast %176 : vector<16xf32> to vector<16x1xf32>
    %cst_73 = arith.constant 3.200000e+01 : f32
    %178 = vector.broadcast %cst_73 : f32 to vector<16x1xf32>
    %179 = arith.divf %177, %178 : vector<16x1xf32>
    %180 = vector.broadcast %172 : vector<16x1xf32> to vector<16x32xf32>
    %181 = arith.subf %166, %180 : vector<16x32xf32>
    %cst_74 = arith.constant 9.99999997E-7 : f32
    %182 = vector.broadcast %cst_74 : f32 to vector<16x1xf32>
    %183 = arith.addf %179, %182 : vector<16x1xf32>
    %184 = math.rsqrt %183 : vector<16x1xf32>
    %185 = vector.broadcast %184 : vector<16x1xf32> to vector<16x32xf32>
    %186 = arith.mulf %181, %185 : vector<16x32xf32>
    %187 = vector.broadcast %167 : vector<1x32xf32> to vector<16x32xf32>
    %188 = arith.mulf %186, %187 : vector<16x32xf32>
    %189 = vector.broadcast %168 : vector<1x32xf32> to vector<16x32xf32>
    %190 = arith.addf %188, %189 : vector<16x32xf32>
    %c0_75 = arith.constant 0 : index
    %c0_76 = arith.constant 0 : index
    %c0_77 = arith.constant 0 : index
    %191 = vector.load %arg16[%c0_75, %c0_76, %c0_77] : memref<1x16x32xf32, #tpu.memory_space<vmem>>, vector<1x16x32xf32>
    %192 = vector.shape_cast %191 : vector<1x16x32xf32> to vector<16x32xf32>
    %193 = vector.shape_cast %190 : vector<16x32xf32> to vector<1x16x32xf32>
    tpu.vector_store %arg16[%c0_75, %c0_76, %c0_77], %193 {strides = array<i32>} : memref<1x16x32xf32, #tpu.memory_space<vmem>>, vector<1x16x32xf32>,
    return
  }
  func.func @transform_0(%arg0: i32) -> (i32, i32, i32) {
    %c0_i32 = arith.constant 0 : i32
    %c0_i32_0 = arith.constant 0 : i32
    %c0_i32_1 = arith.constant 0 : i32
    return %arg0, %c0_i32, %c0_i32_0 : i32, i32, i32
  }
  func.func @transform_1(%arg0: i32) -> (i32, i32) {
    %c0_i32 = arith.constant 0 : i32
    %c0_i32_0 = arith.constant 0 : i32
    %c0_i32_1 = arith.constant 0 : i32
    return %c0_i32, %c0_i32_0 : i32, i32
  }
  func.func @transform_2(%arg0: i32) -> (i32, i32) {
    %c0_i32 = arith.constant 0 : i32
    %c0_i32_0 = arith.constant 0 : i32
    %c0_i32_1 = arith.constant 0 : i32
    return %c0_i32, %c0_i32_0 : i32, i32
  }
  func.func @transform_3(%arg0: i32) -> (i32, i32) {
    %c0_i32 = arith.constant 0 : i32
    %c0_i32_0 = arith.constant 0 : i32
    %c0_i32_1 = arith.constant 0 : i32
    return %c0_i32, %c0_i32_0 : i32, i32
  }
  func.func @transform_4(%arg0: i32) -> (i32, i32) {
    %c0_i32 = arith.constant 0 : i32
    %c0_i32_0 = arith.constant 0 : i32
    %c0_i32_1 = arith.constant 0 : i32
    return %c0_i32, %c0_i32_0 : i32, i32
  }
  func.func @transform_5(%arg0: i32) -> (i32, i32) {
    %c0_i32 = arith.constant 0 : i32
    %c0_i32_0 = arith.constant 0 : i32
    %c0_i32_1 = arith.constant 0 : i32
    return %c0_i32, %c0_i32_0 : i32, i32
  }
  func.func @transform_6(%arg0: i32) -> (i32, i32) {
    %c0_i32 = arith.constant 0 : i32
    %c0_i32_0 = arith.constant 0 : i32
    %c0_i32_1 = arith.constant 0 : i32
    return %c0_i32, %c0_i32_0 : i32, i32
  }
  func.func @transform_7(%arg0: i32) -> (i32, i32) {
    %c0_i32 = arith.constant 0 : i32
    %c0_i32_0 = arith.constant 0 : i32
    %c0_i32_1 = arith.constant 0 : i32
    return %c0_i32, %c0_i32_0 : i32, i32
  }
  func.func @transform_8(%arg0: i32) -> (i32, i32) {
    %c0_i32 = arith.constant 0 : i32
    %c0_i32_0 = arith.constant 0 : i32
    %c0_i32_1 = arith.constant 0 : i32
    return %c0_i32, %c0_i32_0 : i32, i32
  }
  func.func @transform_9(%arg0: i32) -> (i32, i32) {
    %c0_i32 = arith.constant 0 : i32
    %c0_i32_0 = arith.constant 0 : i32
    %c0_i32_1 = arith.constant 0 : i32
    return %c0_i32, %c0_i32_0 : i32, i32
  }
  func.func @transform_10(%arg0: i32) -> (i32, i32) {
    %c0_i32 = arith.constant 0 : i32
    %c0_i32_0 = arith.constant 0 : i32
    %c0_i32_1 = arith.constant 0 : i32
    return %c0_i32, %c0_i32_0 : i32, i32
  }
  func.func @transform_11(%arg0: i32) -> (i32, i32) {
    %c0_i32 = arith.constant 0 : i32
    %c0_i32_0 = arith.constant 0 : i32
    %c0_i32_1 = arith.constant 0 : i32
    return %c0_i32, %c0_i32_0 : i32, i32
  }
  func.func @transform_12(%arg0: i32) -> (i32, i32) {
    %c0_i32 = arith.constant 0 : i32
    %c0_i32_0 = arith.constant 0 : i32
    %c0_i32_1 = arith.constant 0 : i32
    return %c0_i32, %c0_i32_0 : i32, i32
  }
  func.func @transform_13(%arg0: i32) -> (i32, i32) {
    %c0_i32 = arith.constant 0 : i32
    %c0_i32_0 = arith.constant 0 : i32
    %c0_i32_1 = arith.constant 0 : i32
    return %c0_i32, %c0_i32_0 : i32, i32
  }
  func.func @transform_14(%arg0: i32) -> (i32, i32) {
    %c0_i32 = arith.constant 0 : i32
    %c0_i32_0 = arith.constant 0 : i32
    %c0_i32_1 = arith.constant 0 : i32
    return %c0_i32, %c0_i32_0 : i32, i32
  }
  func.func @transform_15(%arg0: i32) -> (i32, i32, i32) {
    %c0_i32 = arith.constant 0 : i32
    %c0_i32_0 = arith.constant 0 : i32
    %c0_i32_1 = arith.constant 0 : i32
    return %arg0, %c0_i32, %c0_i32_0 : i32, i32, i32
  }
}

module attributes {stable_mosaic.version = 11 : i64} {
  func.func @_transformer_layer_kernel(%arg0: i32, %arg1: memref<1x16x32xf32, #tpu.memory_space<vmem>>, %arg2: memref<1x32xf32, #tpu.memory_space<vmem>>, %arg3: memref<1x32xf32, #tpu.memory_space<vmem>>, %arg4: memref<32x96xf32, #tpu.memory_space<vmem>>, %arg5: memref<1x96xf32, #tpu.memory_space<vmem>>, %arg6: memref<32x32xf32, #tpu.memory_space<vmem>>, %arg7: memref<1x32xf32, #tpu.memory_space<vmem>>, %arg8: memref<1x32xf32, #tpu.memory_space<vmem>>, %arg9: memref<1x32xf32, #tpu.memory_space<vmem>>, %arg10: memref<32x64xf32, #tpu.memory_space<vmem>>, %arg11: memref<1x64xf32, #tpu.memory_space<vmem>>, %arg12: memref<64x32xf32, #tpu.memory_space<vmem>>, %arg13: memref<1x32xf32, #tpu.memory_space<vmem>>, %arg14: memref<1x32xf32, #tpu.memory_space<vmem>>, %arg15: memref<1x32xf32, #tpu.memory_space<vmem>>, %arg16: memref<1x16x32xf32, #tpu.memory_space<vmem>>) attributes {dimension_semantics = [#tpu.dimension_semantics<parallel>], iteration_bounds = array<i64: 2>, scalar_prefetch = 0 : i64, scratch_operands = 0 : i64, tpu.core_type = #tpu.core_type<tc>, window_params = [{transform_indices = @transform_0, window_bounds = array<i64: 1, 16, 32>}, {pipeline_mode = #tpu.pipeline_mode<synchronous>, transform_indices = @transform_1, window_bounds = array<i64: 1, 32>}, {pipeline_mode = #tpu.pipeline_mode<synchronous>, transform_indices = @transform_2, window_bounds = array<i64: 1, 32>}, {pipeline_mode = #tpu.pipeline_mode<synchronous>, transform_indices = @transform_3, window_bounds = array<i64: 32, 96>}, {pipeline_mode = #tpu.pipeline_mode<synchronous>, transform_indices = @transform_4, window_bounds = array<i64: 1, 96>}, {pipeline_mode = #tpu.pipeline_mode<synchronous>, transform_indices = @transform_5, window_bounds = array<i64: 32, 32>}, {pipeline_mode = #tpu.pipeline_mode<synchronous>, transform_indices = @transform_6, window_bounds = array<i64: 1, 32>}, {pipeline_mode = #tpu.pipeline_mode<synchronous>, transform_indices = @transform_7, window_bounds = array<i64: 1, 32>}, {pipeline_mode = #tpu.pipeline_mode<synchronous>, transform_indices = @transform_8, window_bounds = array<i64: 1, 32>}, {pipeline_mode = #tpu.pipeline_mode<synchronous>, transform_indices = @transform_9, window_bounds = array<i64: 32, 64>}, {pipeline_mode = #tpu.pipeline_mode<synchronous>, transform_indices = @transform_10, window_bounds = array<i64: 1, 64>}, {pipeline_mode = #tpu.pipeline_mode<synchronous>, transform_indices = @transform_11, window_bounds = array<i64: 64, 32>}, {pipeline_mode = #tpu.pipeline_mode<synchronous>, transform_indices = @transform_12, window_bounds = array<i64: 1, 32>}, {pipeline_mode = #tpu.pipeline_mode<synchronous>, transform_indices = @transform_13, window_bounds = array<i64: 1, 32>}, {pipeline_mode = #tpu.pipeline_mode<synchronous>, transform_indices = @transform_14, window_bounds = array<i64: 1, 32>}, {transform_indices = @transform_15, window_bounds = array<i64: 1, 16, 32>}]} {
    %c0 = arith.constant 0 : index
    %c0_0 = arith.constant 0 : index
    %c0_1 = arith.constant 0 : index
    %0 = vector.load %arg1[%c0, %c0_0, %c0_1] : memref<1x16x32xf32, #tpu.memory_space<vmem>>, vector<1x16x32xf32>
    %1 = vector.shape_cast %0 : vector<1x16x32xf32> to vector<16x32xf32>
    %c0_2 = arith.constant 0 : index
    %c0_3 = arith.constant 0 : index
    %2 = vector.load %arg2[%c0_2, %c0_3] : memref<1x32xf32, #tpu.memory_space<vmem>>, vector<1x32xf32>
    %c0_4 = arith.constant 0 : index
    %c0_5 = arith.constant 0 : index
    %3 = vector.load %arg3[%c0_4, %c0_5] : memref<1x32xf32, #tpu.memory_space<vmem>>, vector<1x32xf32>
    %cst = arith.constant dense<0.000000e+00> : vector<16xf32>
    %4 = vector.multi_reduction <add>, %1, %cst [1] : vector<16x32xf32> to vector<16xf32>
    %5 = vector.shape_cast %4 : vector<16xf32> to vector<16x1xf32>
    %cst_6 = arith.constant 3.200000e+01 : f32
    %6 = vector.broadcast %cst_6 : f32 to vector<16x1xf32>
    %7 = arith.divf %5, %6 : vector<16x1xf32>
    %8 = vector.broadcast %7 : vector<16x1xf32> to vector<16x32xf32>
    %9 = arith.subf %1, %8 : vector<16x32xf32>
    %10 = arith.mulf %9, %9 : vector<16x32xf32>
    %cst_7 = arith.constant dense<0.000000e+00> : vector<16xf32>
    %11 = vector.multi_reduction <add>, %10, %cst_7 [1] : vector<16x32xf32> to vector<16xf32>
    %12 = vector.shape_cast %11 : vector<16xf32> to vector<16x1xf32>
    %cst_8 = arith.constant 3.200000e+01 : f32
    %13 = vector.broadcast %cst_8 : f32 to vector<16x1xf32>
    %14 = arith.divf %12, %13 : vector<16x1xf32>
    %15 = vector.broadcast %7 : vector<16x1xf32> to vector<16x32xf32>
    %16 = arith.subf %1, %15 : vector<16x32xf32>
    %cst_9 = arith.constant 9.99999997E-7 : f32
    %17 = vector.broadcast %cst_9 : f32 to vector<16x1xf32>
    %18 = arith.addf %14, %17 : vector<16x1xf32>
    %19 = math.rsqrt %18 : vector<16x1xf32>
    %20 = vector.broadcast %19 : vector<16x1xf32> to vector<16x32xf32>
    %21 = arith.mulf %16, %20 : vector<16x32xf32>
    %22 = vector.broadcast %2 : vector<1x32xf32> to vector<16x32xf32>
    %23 = arith.mulf %21, %22 : vector<16x32xf32>
    %24 = vector.broadcast %3 : vector<1x32xf32> to vector<16x32xf32>
    %25 = arith.addf %23, %24 : vector<16x32xf32>
    %c0_10 = arith.constant 0 : index
    %c0_11 = arith.constant 0 : index
    %26 = vector.load %arg4[%c0_10, %c0_11] : memref<32x96xf32, #tpu.memory_space<vmem>>, vector<32x96xf32>
    %cst_12 = arith.constant dense<0.000000e+00> : vector<16x96xf32>
    %27 = tpu.matmul %25, %26, %cst_12 {dimension_numbers = #tpu.dot_dimension_numbers<[1], [0], [0], [1], [0, 0, 1, 1], [], []>} : vector<16x32xf32>, vector<32x96xf32>, vector<16x96xf32> -> vector<16x96xf32>
    %c0_13 = arith.constant 0 : index
    %c0_14 = arith.constant 0 : index
    %28 = vector.load %arg5[%c0_13, %c0_14] : memref<1x96xf32, #tpu.memory_space<vmem>>, vector<1x96xf32>
    %29 = vector.broadcast %28 : vector<1x96xf32> to vector<16x96xf32>
    %30 = arith.addf %27, %29 : vector<16x96xf32>
    %c0_15 = arith.constant 0 : index
    %c0_16 = arith.constant 0 : index
    %31 = vector.load %arg6[%c0_15, %c0_16] : memref<32x32xf32, #tpu.memory_space<vmem>>, vector<32x32xf32>
    %32 = vector.extract_strided_slice %30 {offsets = [0, 0], sizes = [16, 8], strides = [1, 1]} : vector<16x96xf32> to vector<16x8xf32>
    %33 = vector.extract_strided_slice %30 {offsets = [0, 32], sizes = [16, 8], strides = [1, 1]} : vector<16x96xf32> to vector<16x8xf32>
    %34 = vector.extract_strided_slice %30 {offsets = [0, 64], sizes = [16, 8], strides = [1, 1]} : vector<16x96xf32> to vector<16x8xf32>
    %35 = tpu.transpose %33, [1, 0] : vector<16x8xf32> -> vector<8x16xf32>
    %cst_17 = arith.constant dense<0.000000e+00> : vector<16x16xf32>
    %36 = tpu.matmul %32, %35, %cst_17 {dimension_numbers = #tpu.dot_dimension_numbers<[1], [0], [0], [1], [0, 0, 1, 1], [], []>} : vector<16x8xf32>, vector<8x16xf32>, vector<16x16xf32> -> vector<16x16xf32>
    %cst_18 = arith.constant 0.353553385 : f32
    %37 = vector.broadcast %cst_18 : f32 to vector<16x16xf32>
    %38 = arith.mulf %36, %37 : vector<16x16xf32>
    %cst_19 = arith.constant dense<0xFF800000> : vector<16xf32>
    %39 = vector.multi_reduction <maximumf>, %38, %cst_19 [1] : vector<16x16xf32> to vector<16xf32>
    %40 = vector.shape_cast %39 : vector<16xf32> to vector<16x1xf32>
    %41 = vector.broadcast %40 : vector<16x1xf32> to vector<16x16xf32>
    %42 = arith.subf %38, %41 : vector<16x16xf32>
    %43 = math.exp %42 : vector<16x16xf32>
    %cst_20 = arith.constant dense<0.000000e+00> : vector<16xf32>
    %44 = vector.multi_reduction <add>, %43, %cst_20 [1] : vector<16x16xf32> to vector<16xf32>
    %45 = vector.shape_cast %44 : vector<16xf32> to vector<16x1xf32>
    %46 = tpu.reciprocal %45 {approx = true} : vector<16x1xf32> -> vector<16x1xf32>
    %47 = vector.broadcast %46 : vector<16x1xf32> to vector<16x16xf32>
    %48 = arith.mulf %43, %47 : vector<16x16xf32>
    %cst_21 = arith.constant dense<0.000000e+00> : vector<16x8xf32>
    %49 = tpu.matmul %48, %34, %cst_21 {dimension_numbers = #tpu.dot_dimension_numbers<[1], [0], [0], [1], [0, 0, 1, 1], [], []>} : vector<16x16xf32>, vector<16x8xf32>, vector<16x8xf32> -> vector<16x8xf32>
    %50 = vector.extract_strided_slice %31 {offsets = [0, 0], sizes = [8, 32], strides = [1, 1]} : vector<32x32xf32> to vector<8x32xf32>
    %cst_22 = arith.constant dense<0.000000e+00> : vector<16x32xf32>
    %51 = tpu.matmul %49, %50, %cst_22 {dimension_numbers = #tpu.dot_dimension_numbers<[1], [0], [0], [1], [0, 0, 1, 1], [], []>} : vector<16x8xf32>, vector<8x32xf32>, vector<16x32xf32> -> vector<16x32xf32>
    %52 = vector.extract_strided_slice %30 {offsets = [0, 8], sizes = [16, 8], strides = [1, 1]} : vector<16x96xf32> to vector<16x8xf32>
    %53 = vector.extract_strided_slice %30 {offsets = [0, 40], sizes = [16, 8], strides = [1, 1]} : vector<16x96xf32> to vector<16x8xf32>
    %54 = vector.extract_strided_slice %30 {offsets = [0, 72], sizes = [16, 8], strides = [1, 1]} : vector<16x96xf32> to vector<16x8xf32>
    %55 = tpu.transpose %53, [1, 0] : vector<16x8xf32> -> vector<8x16xf32>
    %cst_23 = arith.constant dense<0.000000e+00> : vector<16x16xf32>
    %56 = tpu.matmul %52, %55, %cst_23 {dimension_numbers = #tpu.dot_dimension_numbers<[1], [0], [0], [1], [0, 0, 1, 1], [], []>} : vector<16x8xf32>, vector<8x16xf32>, vector<16x16xf32> -> vector<16x16xf32>
    %cst_24 = arith.constant 0.353553385 : f32
    %57 = vector.broadcast %cst_24 : f32 to vector<16x16xf32>
    %58 = arith.mulf %56, %57 : vector<16x16xf32>
    %cst_25 = arith.constant dense<0xFF800000> : vector<16xf32>
    %59 = vector.multi_reduction <maximumf>, %58, %cst_25 [1] : vector<16x16xf32> to vector<16xf32>
    %60 = vector.shape_cast %59 : vector<16xf32> to vector<16x1xf32>
    %61 = vector.broadcast %60 : vector<16x1xf32> to vector<16x16xf32>
    %62 = arith.subf %58, %61 : vector<16x16xf32>
    %63 = math.exp %62 : vector<16x16xf32>
    %cst_26 = arith.constant dense<0.000000e+00> : vector<16xf32>
    %64 = vector.multi_reduction <add>, %63, %cst_26 [1] : vector<16x16xf32> to vector<16xf32>
    %65 = vector.shape_cast %64 : vector<16xf32> to vector<16x1xf32>
    %66 = tpu.reciprocal %65 {approx = true} : vector<16x1xf32> -> vector<16x1xf32>
    %67 = vector.broadcast %66 : vector<16x1xf32> to vector<16x16xf32>
    %68 = arith.mulf %63, %67 : vector<16x16xf32>
    %cst_27 = arith.constant dense<0.000000e+00> : vector<16x8xf32>
    %69 = tpu.matmul %68, %54, %cst_27 {dimension_numbers = #tpu.dot_dimension_numbers<[1], [0], [0], [1], [0, 0, 1, 1], [], []>} : vector<16x16xf32>, vector<16x8xf32>, vector<16x8xf32> -> vector<16x8xf32>
    %70 = vector.extract_strided_slice %31 {offsets = [8, 0], sizes = [8, 32], strides = [1, 1]} : vector<32x32xf32> to vector<8x32xf32>
    %cst_28 = arith.constant dense<0.000000e+00> : vector<16x32xf32>
    %71 = tpu.matmul %69, %70, %cst_28 {dimension_numbers = #tpu.dot_dimension_numbers<[1], [0], [0], [1], [0, 0, 1, 1], [], []>} : vector<16x8xf32>, vector<8x32xf32>, vector<16x32xf32> -> vector<16x32xf32>
    %72 = arith.addf %51, %71 : vector<16x32xf32>
    %73 = vector.extract_strided_slice %30 {offsets = [0, 16], sizes = [16, 8], strides = [1, 1]} : vector<16x96xf32> to vector<16x8xf32>
    %74 = vector.extract_strided_slice %30 {offsets = [0, 48], sizes = [16, 8], strides = [1, 1]} : vector<16x96xf32> to vector<16x8xf32>
    %75 = vector.extract_strided_slice %30 {offsets = [0, 80], sizes = [16, 8], strides = [1, 1]} : vector<16x96xf32> to vector<16x8xf32>
    %76 = tpu.transpose %74, [1, 0] : vector<16x8xf32> -> vector<8x16xf32>
    %cst_29 = arith.constant dense<0.000000e+00> : vector<16x16xf32>
    %77 = tpu.matmul %73, %76, %cst_29 {dimension_numbers = #tpu.dot_dimension_numbers<[1], [0], [0], [1], [0, 0, 1, 1], [], []>} : vector<16x8xf32>, vector<8x16xf32>, vector<16x16xf32> -> vector<16x16xf32>
    %cst_30 = arith.constant 0.353553385 : f32
    %78 = vector.broadcast %cst_30 : f32 to vector<16x16xf32>
    %79 = arith.mulf %77, %78 : vector<16x16xf32>
    %cst_31 = arith.constant dense<0xFF800000> : vector<16xf32>
    %80 = vector.multi_reduction <maximumf>, %79, %cst_31 [1] : vector<16x16xf32> to vector<16xf32>
    %81 = vector.shape_cast %80 : vector<16xf32> to vector<16x1xf32>
    %82 = vector.broadcast %81 : vector<16x1xf32> to vector<16x16xf32>
    %83 = arith.subf %79, %82 : vector<16x16xf32>
    %84 = math.exp %83 : vector<16x16xf32>
    %cst_32 = arith.constant dense<0.000000e+00> : vector<16xf32>
    %85 = vector.multi_reduction <add>, %84, %cst_32 [1] : vector<16x16xf32> to vector<16xf32>
    %86 = vector.shape_cast %85 : vector<16xf32> to vector<16x1xf32>
    %87 = tpu.reciprocal %86 {approx = true} : vector<16x1xf32> -> vector<16x1xf32>
    %88 = vector.broadcast %87 : vector<16x1xf32> to vector<16x16xf32>
    %89 = arith.mulf %84, %88 : vector<16x16xf32>
    %cst_33 = arith.constant dense<0.000000e+00> : vector<16x8xf32>
    %90 = tpu.matmul %89, %75, %cst_33 {dimension_numbers = #tpu.dot_dimension_numbers<[1], [0], [0], [1], [0, 0, 1, 1], [], []>} : vector<16x16xf32>, vector<16x8xf32>, vector<16x8xf32> -> vector<16x8xf32>
    %91 = vector.extract_strided_slice %31 {offsets = [16, 0], sizes = [8, 32], strides = [1, 1]} : vector<32x32xf32> to vector<8x32xf32>
    %cst_34 = arith.constant dense<0.000000e+00> : vector<16x32xf32>
    %92 = tpu.matmul %90, %91, %cst_34 {dimension_numbers = #tpu.dot_dimension_numbers<[1], [0], [0], [1], [0, 0, 1, 1], [], []>} : vector<16x8xf32>, vector<8x32xf32>, vector<16x32xf32> -> vector<16x32xf32>
    %93 = arith.addf %72, %92 : vector<16x32xf32>
    %94 = vector.extract_strided_slice %30 {offsets = [0, 24], sizes = [16, 8], strides = [1, 1]} : vector<16x96xf32> to vector<16x8xf32>
    %95 = vector.extract_strided_slice %30 {offsets = [0, 56], sizes = [16, 8], strides = [1, 1]} : vector<16x96xf32> to vector<16x8xf32>
    %96 = vector.extract_strided_slice %30 {offsets = [0, 88], sizes = [16, 8], strides = [1, 1]} : vector<16x96xf32> to vector<16x8xf32>
    %97 = tpu.transpose %95, [1, 0] : vector<16x8xf32> -> vector<8x16xf32>
    %cst_35 = arith.constant dense<0.000000e+00> : vector<16x16xf32>
    %98 = tpu.matmul %94, %97, %cst_35 {dimension_numbers = #tpu.dot_dimension_numbers<[1], [0], [0], [1], [0, 0, 1, 1], [], []>} : vector<16x8xf32>, vector<8x16xf32>, vector<16x16xf32> -> vector<16x16xf32>
    %cst_36 = arith.constant 0.353553385 : f32
    %99 = vector.broadcast %cst_36 : f32 to vector<16x16xf32>
    %100 = arith.mulf %98, %99 : vector<16x16xf32>
    %cst_37 = arith.constant dense<0xFF800000> : vector<16xf32>
    %101 = vector.multi_reduction <maximumf>, %100, %cst_37 [1] : vector<16x16xf32> to vector<16xf32>
    %102 = vector.shape_cast %101 : vector<16xf32> to vector<16x1xf32>
    %103 = vector.broadcast %102 : vector<16x1xf32> to vector<16x16xf32>
    %104 = arith.subf %100, %103 : vector<16x16xf32>
    %105 = math.exp %104 : vector<16x16xf32>
    %cst_38 = arith.constant dense<0.000000e+00> : vector<16xf32>
    %106 = vector.multi_reduction <add>, %105, %cst_38 [1] : vector<16x16xf32> to vector<16xf32>
    %107 = vector.shape_cast %106 : vector<16xf32> to vector<16x1xf32>
    %108 = tpu.reciprocal %107 {approx = true} : vector<16x1xf32> -> vector<16x1xf32>
    %109 = vector.broadcast %108 : vector<16x1xf32> to vector<16x16xf32>
    %110 = arith.mulf %105, %109 : vector<16x16xf32>
    %cst_39 = arith.constant dense<0.000000e+00> : vector<16x8xf32>
    %111 = tpu.matmul %110, %96, %cst_39 {dimension_numbers = #tpu.dot_dimension_numbers<[1], [0], [0], [1], [0, 0, 1, 1], [], []>} : vector<16x16xf32>, vector<16x8xf32>, vector<16x8xf32> -> vector<16x8xf32>
    %112 = vector.extract_strided_slice %31 {offsets = [24, 0], sizes = [8, 32], strides = [1, 1]} : vector<32x32xf32> to vector<8x32xf32>
    %cst_40 = arith.constant dense<0.000000e+00> : vector<16x32xf32>
    %113 = tpu.matmul %111, %112, %cst_40 {dimension_numbers = #tpu.dot_dimension_numbers<[1], [0], [0], [1], [0, 0, 1, 1], [], []>} : vector<16x8xf32>, vector<8x32xf32>, vector<16x32xf32> -> vector<16x32xf32>
    %114 = arith.addf %93, %113 : vector<16x32xf32>
    %115 = arith.addf %1, %114 : vector<16x32xf32>
    %c0_41 = arith.constant 0 : index
    %c0_42 = arith.constant 0 : index
    %116 = vector.load %arg7[%c0_41, %c0_42] : memref<1x32xf32, #tpu.memory_space<vmem>>, vector<1x32xf32>
    %117 = vector.broadcast %116 : vector<1x32xf32> to vector<16x32xf32>
    %118 = arith.addf %115, %117 : vector<16x32xf32>
    %c0_43 = arith.constant 0 : index
    %c0_44 = arith.constant 0 : index
    %119 = vector.load %arg8[%c0_43, %c0_44] : memref<1x32xf32, #tpu.memory_space<vmem>>, vector<1x32xf32>
    %c0_45 = arith.constant 0 : index
    %c0_46 = arith.constant 0 : index
    %120 = vector.load %arg9[%c0_45, %c0_46] : memref<1x32xf32, #tpu.memory_space<vmem>>, vector<1x32xf32>
    %cst_47 = arith.constant dense<0.000000e+00> : vector<16xf32>
    %121 = vector.multi_reduction <add>, %118, %cst_47 [1] : vector<16x32xf32> to vector<16xf32>
    %122 = vector.shape_cast %121 : vector<16xf32> to vector<16x1xf32>
    %cst_48 = arith.constant 3.200000e+01 : f32
    %123 = vector.broadcast %cst_48 : f32 to vector<16x1xf32>
    %124 = arith.divf %122, %123 : vector<16x1xf32>
    %125 = vector.broadcast %124 : vector<16x1xf32> to vector<16x32xf32>
    %126 = arith.subf %118, %125 : vector<16x32xf32>
    %127 = arith.mulf %126, %126 : vector<16x32xf32>
    %cst_49 = arith.constant dense<0.000000e+00> : vector<16xf32>
    %128 = vector.multi_reduction <add>, %127, %cst_49 [1] : vector<16x32xf32> to vector<16xf32>
    %129 = vector.shape_cast %128 : vector<16xf32> to vector<16x1xf32>
    %cst_50 = arith.constant 3.200000e+01 : f32
    %130 = vector.broadcast %cst_50 : f32 to vector<16x1xf32>
    %131 = arith.divf %129, %130 : vector<16x1xf32>
    %132 = vector.broadcast %124 : vector<16x1xf32> to vector<16x32xf32>
    %133 = arith.subf %118, %132 : vector<16x32xf32>
    %cst_51 = arith.constant 9.99999997E-7 : f32
    %134 = vector.broadcast %cst_51 : f32 to vector<16x1xf32>
    %135 = arith.addf %131, %134 : vector<16x1xf32>
    %136 = math.rsqrt %135 : vector<16x1xf32>
    %137 = vector.broadcast %136 : vector<16x1xf32> to vector<16x32xf32>
    %138 = arith.mulf %133, %137 : vector<16x32xf32>
    %139 = vector.broadcast %119 : vector<1x32xf32> to vector<16x32xf32>
    %140 = arith.mulf %138, %139 : vector<16x32xf32>
    %141 = vector.broadcast %120 : vector<1x32xf32> to vector<16x32xf32>
    %142 = arith.addf %140, %141 : vector<16x32xf32>
    %c0_52 = arith.constant 0 : index
    %c0_53 = arith.constant 0 : index
    %143 = vector.load %arg10[%c0_52, %c0_53] : memref<32x64xf32, #tpu.memory_space<vmem>>, vector<32x64xf32>
    %cst_54 = arith.constant dense<0.000000e+00> : vector<16x64xf32>
    %144 = tpu.matmul %142, %143, %cst_54 {dimension_numbers = #tpu.dot_dimension_numbers<[1], [0], [0], [1], [0, 0, 1, 1], [], []>} : vector<16x32xf32>, vector<32x64xf32>, vector<16x64xf32> -> vector<16x64xf32>
    %c0_55 = arith.constant 0 : index
    %c0_56 = arith.constant 0 : index
    %145 = vector.load %arg11[%c0_55, %c0_56] : memref<1x64xf32, #tpu.memory_space<vmem>>, vector<1x64xf32>
    %146 = vector.broadcast %145 : vector<1x64xf32> to vector<16x64xf32>
    %147 = arith.addf %144, %146 : vector<16x64xf32>
    %148 = arith.mulf %147, %147 : vector<16x64xf32>
    %149 = arith.mulf %147, %148 : vector<16x64xf32>
    %cst_57 = arith.constant 4.471500e-02 : f32
    %150 = vector.broadcast %cst_57 : f32 to vector<16x64xf32>
    %151 = arith.mulf %150, %149 : vector<16x64xf32>
    %152 = arith.addf %147, %151 : vector<16x64xf32>
    %cst_58 = arith.constant 0.797884583 : f32
    %153 = vector.broadcast %cst_58 : f32 to vector<16x64xf32>
    %154 = arith.mulf %153, %152 : vector<16x64xf32>
    %155 = math.tanh %154 : vector<16x64xf32>
    %cst_59 = arith.constant 1.000000e+00 : f32
    %156 = vector.broadcast %cst_59 : f32 to vector<16x64xf32>
    %157 = arith.addf %156, %155 : vector<16x64xf32>
    %cst_60 = arith.constant 5.000000e-01 : f32
    %158 = vector.broadcast %cst_60 : f32 to vector<16x64xf32>
    %159 = arith.mulf %158, %157 : vector<16x64xf32>
    %160 = arith.mulf %147, %159 : vector<16x64xf32>
    %c0_61 = arith.constant 0 : index
    %c0_62 = arith.constant 0 : index
    %161 = vector.load %arg12[%c0_61, %c0_62] : memref<64x32xf32, #tpu.memory_space<vmem>>, vector<64x32xf32>
    %cst_63 = arith.constant dense<0.000000e+00> : vector<16x32xf32>
    %162 = tpu.matmul %160, %161, %cst_63 {dimension_numbers = #tpu.dot_dimension_numbers<[1], [0], [0], [1], [0, 0, 1, 1], [], []>} : vector<16x64xf32>, vector<64x32xf32>, vector<16x32xf32> -> vector<16x32xf32>
    %c0_64 = arith.constant 0 : index
    %c0_65 = arith.constant 0 : index
    %163 = vector.load %arg13[%c0_64, %c0_65] : memref<1x32xf32, #tpu.memory_space<vmem>>, vector<1x32xf32>
    %164 = vector.broadcast %163 : vector<1x32xf32> to vector<16x32xf32>
    %165 = arith.addf %162, %164 : vector<16x32xf32>
    %166 = arith.addf %118, %165 : vector<16x32xf32>
    %c0_66 = arith.constant 0 : index
    %c0_67 = arith.constant 0 : index
    %c0_68 = arith.constant 0 : index
    %167 = vector.load %arg16[%c0_66, %c0_67, %c0_68] : memref<1x16x32xf32, #tpu.memory_space<vmem>>, vector<1x16x32xf32>
    %168 = vector.shape_cast %167 : vector<1x16x32xf32> to vector<16x32xf32>
    %169 = vector.shape_cast %166 : vector<16x32xf32> to vector<1x16x32xf32>
    tpu.vector_store %arg16[%c0_66, %c0_67, %c0_68], %169 {strides = array<i32>} : memref<1x16x32xf32, #tpu.memory_space<vmem>>, vector<1x16x32xf32>,
    return
  }
  func.func @transform_0(%arg0: i32) -> (i32, i32, i32) {
    %c0_i32 = arith.constant 0 : i32
    %c0_i32_0 = arith.constant 0 : i32
    %c0_i32_1 = arith.constant 0 : i32
    return %arg0, %c0_i32, %c0_i32_0 : i32, i32, i32
  }
  func.func @transform_1(%arg0: i32) -> (i32, i32) {
    %c0_i32 = arith.constant 0 : i32
    %c0_i32_0 = arith.constant 0 : i32
    %c0_i32_1 = arith.constant 0 : i32
    return %c0_i32, %c0_i32_0 : i32, i32
  }
  func.func @transform_2(%arg0: i32) -> (i32, i32) {
    %c0_i32 = arith.constant 0 : i32
    %c0_i32_0 = arith.constant 0 : i32
    %c0_i32_1 = arith.constant 0 : i32
    return %c0_i32, %c0_i32_0 : i32, i32
  }
  func.func @transform_3(%arg0: i32) -> (i32, i32) {
    %c0_i32 = arith.constant 0 : i32
    %c0_i32_0 = arith.constant 0 : i32
    %c0_i32_1 = arith.constant 0 : i32
    return %c0_i32, %c0_i32_0 : i32, i32
  }
  func.func @transform_4(%arg0: i32) -> (i32, i32) {
    %c0_i32 = arith.constant 0 : i32
    %c0_i32_0 = arith.constant 0 : i32
    %c0_i32_1 = arith.constant 0 : i32
    return %c0_i32, %c0_i32_0 : i32, i32
  }
  func.func @transform_5(%arg0: i32) -> (i32, i32) {
    %c0_i32 = arith.constant 0 : i32
    %c0_i32_0 = arith.constant 0 : i32
    %c0_i32_1 = arith.constant 0 : i32
    return %c0_i32, %c0_i32_0 : i32, i32
  }
  func.func @transform_6(%arg0: i32) -> (i32, i32) {
    %c0_i32 = arith.constant 0 : i32
    %c0_i32_0 = arith.constant 0 : i32
    %c0_i32_1 = arith.constant 0 : i32
    return %c0_i32, %c0_i32_0 : i32, i32
  }
  func.func @transform_7(%arg0: i32) -> (i32, i32) {
    %c0_i32 = arith.constant 0 : i32
    %c0_i32_0 = arith.constant 0 : i32
    %c0_i32_1 = arith.constant 0 : i32
    return %c0_i32, %c0_i32_0 : i32, i32
  }
  func.func @transform_8(%arg0: i32) -> (i32, i32) {
    %c0_i32 = arith.constant 0 : i32
    %c0_i32_0 = arith.constant 0 : i32
    %c0_i32_1 = arith.constant 0 : i32
    return %c0_i32, %c0_i32_0 : i32, i32
  }
  func.func @transform_9(%arg0: i32) -> (i32, i32) {
    %c0_i32 = arith.constant 0 : i32
    %c0_i32_0 = arith.constant 0 : i32
    %c0_i32_1 = arith.constant 0 : i32
    return %c0_i32, %c0_i32_0 : i32, i32
  }
  func.func @transform_10(%arg0: i32) -> (i32, i32) {
    %c0_i32 = arith.constant 0 : i32
    %c0_i32_0 = arith.constant 0 : i32
    %c0_i32_1 = arith.constant 0 : i32
    return %c0_i32, %c0_i32_0 : i32, i32
  }
  func.func @transform_11(%arg0: i32) -> (i32, i32) {
    %c0_i32 = arith.constant 0 : i32
    %c0_i32_0 = arith.constant 0 : i32
    %c0_i32_1 = arith.constant 0 : i32
    return %c0_i32, %c0_i32_0 : i32, i32
  }
  func.func @transform_12(%arg0: i32) -> (i32, i32) {
    %c0_i32 = arith.constant 0 : i32
    %c0_i32_0 = arith.constant 0 : i32
    %c0_i32_1 = arith.constant 0 : i32
    return %c0_i32, %c0_i32_0 : i32, i32
  }
  func.func @transform_13(%arg0: i32) -> (i32, i32) {
    %c0_i32 = arith.constant 0 : i32
    %c0_i32_0 = arith.constant 0 : i32
    %c0_i32_1 = arith.constant 0 : i32
    return %c0_i32, %c0_i32_0 : i32, i32
  }
  func.func @transform_14(%arg0: i32) -> (i32, i32) {
    %c0_i32 = arith.constant 0 : i32
    %c0_i32_0 = arith.constant 0 : i32
    %c0_i32_1 = arith.constant 0 : i32
    return %c0_i32, %c0_i32_0 : i32, i32
  }
  func.func @transform_15(%arg0: i32) -> (i32, i32, i32) {
    %c0_i32 = arith.constant 0 : i32
    %c0_i32_0 = arith.constant 0 : i32
    %c0_i32_1 = arith.constant 0 : i32
    return %arg0, %c0_i32, %c0_i32_0 : i32, i32, i32
  }
}

module attributes {stable_mosaic.version = 11 : i64} {
  func.func @_mm_kernel(%arg0: i32, %arg1: memref<32x32xf32, #tpu.memory_space<vmem>>, %arg2: memref<32x16xf32, #tpu.memory_space<vmem>>, %arg3: memref<1x16xf32, #tpu.memory_space<vmem>>, %arg4: memref<32x16xf32, #tpu.memory_space<vmem>>) attributes {dimension_semantics = [#tpu.dimension_semantics<parallel>], iteration_bounds = array<i64: 1>, scalar_prefetch = 0 : i64, scratch_operands = 0 : i64, tpu.core_type = #tpu.core_type<tc>, window_params = [{transform_indices = @transform_0, window_bounds = array<i64: 32, 32>}, {pipeline_mode = #tpu.pipeline_mode<synchronous>, transform_indices = @transform_1, window_bounds = array<i64: 32, 16>}, {pipeline_mode = #tpu.pipeline_mode<synchronous>, transform_indices = @transform_2, window_bounds = array<i64: 1, 16>}, {transform_indices = @transform_3, window_bounds = array<i64: 32, 16>}]} {
    %c0 = arith.constant 0 : index
    %c0_0 = arith.constant 0 : index
    %0 = vector.load %arg1[%c0, %c0_0] : memref<32x32xf32, #tpu.memory_space<vmem>>, vector<32x32xf32>
    %c0_1 = arith.constant 0 : index
    %c0_2 = arith.constant 0 : index
    %1 = vector.load %arg2[%c0_1, %c0_2] : memref<32x16xf32, #tpu.memory_space<vmem>>, vector<32x16xf32>
    %cst = arith.constant dense<0.000000e+00> : vector<32x16xf32>
    %2 = tpu.matmul %0, %1, %cst {dimension_numbers = #tpu.dot_dimension_numbers<[1], [0], [0], [1], [0, 0, 1, 1], [], []>} : vector<32x32xf32>, vector<32x16xf32>, vector<32x16xf32> -> vector<32x16xf32>
    %c0_3 = arith.constant 0 : index
    %c0_4 = arith.constant 0 : index
    %3 = vector.load %arg3[%c0_3, %c0_4] : memref<1x16xf32, #tpu.memory_space<vmem>>, vector<1x16xf32>
    %4 = vector.broadcast %3 : vector<1x16xf32> to vector<32x16xf32>
    %5 = arith.addf %2, %4 : vector<32x16xf32>
    %cst_5 = arith.constant 0.000000e+00 : f32
    %6 = vector.broadcast %cst_5 : f32 to vector<32x16xf32>
    %7 = arith.maximumf %5, %6 : vector<32x16xf32>
    %c0_6 = arith.constant 0 : index
    %c0_7 = arith.constant 0 : index
    %8 = vector.load %arg4[%c0_6, %c0_7] : memref<32x16xf32, #tpu.memory_space<vmem>>, vector<32x16xf32>
    tpu.vector_store %arg4[%c0_6, %c0_7], %7 {strides = array<i32>} : memref<32x16xf32, #tpu.memory_space<vmem>>, vector<32x16xf32>,
    return
  }
  func.func @transform_0(%arg0: i32) -> (i32, i32) {
    %c0_i32 = arith.constant 0 : i32
    %c0_i32_0 = arith.constant 0 : i32
    return %arg0, %c0_i32 : i32, i32
  }
  func.func @transform_1(%arg0: i32) -> (i32, i32) {
    %c0_i32 = arith.constant 0 : i32
    %c0_i32_0 = arith.constant 0 : i32
    %c0_i32_1 = arith.constant 0 : i32
    return %c0_i32, %c0_i32_0 : i32, i32
  }
  func.func @transform_2(%arg0: i32) -> (i32, i32) {
    %c0_i32 = arith.constant 0 : i32
    %c0_i32_0 = arith.constant 0 : i32
    %c0_i32_1 = arith.constant 0 : i32
    return %c0_i32, %c0_i32_0 : i32, i32
  }
  func.func @transform_3(%arg0: i32) -> (i32, i32) {
    %c0_i32 = arith.constant 0 : i32
    %c0_i32_0 = arith.constant 0 : i32
    return %arg0, %c0_i32 : i32, i32
  }
}

module attributes {stable_mosaic.version = 11 : i64} {
  func.func @_mm_res_kernel(%arg0: i32, %arg1: memref<32x16xf32, #tpu.memory_space<vmem>>, %arg2: memref<16x16xf32, #tpu.memory_space<vmem>>, %arg3: memref<1x16xf32, #tpu.memory_space<vmem>>, %arg4: memref<32x16xf32, #tpu.memory_space<vmem>>, %arg5: memref<32x16xf32, #tpu.memory_space<vmem>>) attributes {dimension_semantics = [#tpu.dimension_semantics<parallel>], iteration_bounds = array<i64: 1>, scalar_prefetch = 0 : i64, scratch_operands = 0 : i64, tpu.core_type = #tpu.core_type<tc>, window_params = [{transform_indices = @transform_0, window_bounds = array<i64: 32, 16>}, {pipeline_mode = #tpu.pipeline_mode<synchronous>, transform_indices = @transform_1, window_bounds = array<i64: 16, 16>}, {pipeline_mode = #tpu.pipeline_mode<synchronous>, transform_indices = @transform_2, window_bounds = array<i64: 1, 16>}, {transform_indices = @transform_3, window_bounds = array<i64: 32, 16>}, {transform_indices = @transform_4, window_bounds = array<i64: 32, 16>}]} {
    %c0 = arith.constant 0 : index
    %c0_0 = arith.constant 0 : index
    %0 = vector.load %arg1[%c0, %c0_0] : memref<32x16xf32, #tpu.memory_space<vmem>>, vector<32x16xf32>
    %c0_1 = arith.constant 0 : index
    %c0_2 = arith.constant 0 : index
    %1 = vector.load %arg2[%c0_1, %c0_2] : memref<16x16xf32, #tpu.memory_space<vmem>>, vector<16x16xf32>
    %cst = arith.constant dense<0.000000e+00> : vector<32x16xf32>
    %2 = tpu.matmul %0, %1, %cst {dimension_numbers = #tpu.dot_dimension_numbers<[1], [0], [0], [1], [0, 0, 1, 1], [], []>} : vector<32x16xf32>, vector<16x16xf32>, vector<32x16xf32> -> vector<32x16xf32>
    %c0_3 = arith.constant 0 : index
    %c0_4 = arith.constant 0 : index
    %3 = vector.load %arg3[%c0_3, %c0_4] : memref<1x16xf32, #tpu.memory_space<vmem>>, vector<1x16xf32>
    %4 = vector.broadcast %3 : vector<1x16xf32> to vector<32x16xf32>
    %5 = arith.addf %2, %4 : vector<32x16xf32>
    %cst_5 = arith.constant 0.000000e+00 : f32
    %6 = vector.broadcast %cst_5 : f32 to vector<32x16xf32>
    %7 = arith.maximumf %5, %6 : vector<32x16xf32>
    %c0_6 = arith.constant 0 : index
    %c0_7 = arith.constant 0 : index
    %8 = vector.load %arg4[%c0_6, %c0_7] : memref<32x16xf32, #tpu.memory_space<vmem>>, vector<32x16xf32>
    %9 = arith.addf %7, %8 : vector<32x16xf32>
    %c0_8 = arith.constant 0 : index
    %c0_9 = arith.constant 0 : index
    %10 = vector.load %arg5[%c0_8, %c0_9] : memref<32x16xf32, #tpu.memory_space<vmem>>, vector<32x16xf32>
    tpu.vector_store %arg5[%c0_8, %c0_9], %9 {strides = array<i32>} : memref<32x16xf32, #tpu.memory_space<vmem>>, vector<32x16xf32>,
    return
  }
  func.func @transform_0(%arg0: i32) -> (i32, i32) {
    %c0_i32 = arith.constant 0 : i32
    %c0_i32_0 = arith.constant 0 : i32
    return %arg0, %c0_i32 : i32, i32
  }
  func.func @transform_1(%arg0: i32) -> (i32, i32) {
    %c0_i32 = arith.constant 0 : i32
    %c0_i32_0 = arith.constant 0 : i32
    %c0_i32_1 = arith.constant 0 : i32
    return %c0_i32, %c0_i32_0 : i32, i32
  }
  func.func @transform_2(%arg0: i32) -> (i32, i32) {
    %c0_i32 = arith.constant 0 : i32
    %c0_i32_0 = arith.constant 0 : i32
    %c0_i32_1 = arith.constant 0 : i32
    return %c0_i32, %c0_i32_0 : i32, i32
  }
  func.func @transform_3(%arg0: i32) -> (i32, i32) {
    %c0_i32 = arith.constant 0 : i32
    %c0_i32_0 = arith.constant 0 : i32
    return %arg0, %c0_i32 : i32, i32
  }
  func.func @transform_4(%arg0: i32) -> (i32, i32) {
    %c0_i32 = arith.constant 0 : i32
    %c0_i32_0 = arith.constant 0 : i32
    return %arg0, %c0_i32 : i32, i32
  }
}

module attributes {stable_mosaic.version = 11 : i64} {
  func.func @_mm_res_kernel(%arg0: i32, %arg1: memref<64x8xf32, #tpu.memory_space<vmem>>, %arg2: memref<8x16xf32, #tpu.memory_space<vmem>>, %arg3: memref<1x16xf32, #tpu.memory_space<vmem>>, %arg4: memref<64x16xf32, #tpu.memory_space<vmem>>, %arg5: memref<64x16xf32, #tpu.memory_space<vmem>>) attributes {dimension_semantics = [#tpu.dimension_semantics<parallel>], iteration_bounds = array<i64: 2>, scalar_prefetch = 0 : i64, scratch_operands = 0 : i64, tpu.core_type = #tpu.core_type<tc>, window_params = [{transform_indices = @transform_0, window_bounds = array<i64: 64, 8>}, {pipeline_mode = #tpu.pipeline_mode<synchronous>, transform_indices = @transform_1, window_bounds = array<i64: 8, 16>}, {pipeline_mode = #tpu.pipeline_mode<synchronous>, transform_indices = @transform_2, window_bounds = array<i64: 1, 16>}, {transform_indices = @transform_3, window_bounds = array<i64: 64, 16>}, {transform_indices = @transform_4, window_bounds = array<i64: 64, 16>}]} {
    %c0 = arith.constant 0 : index
    %c0_0 = arith.constant 0 : index
    %0 = vector.load %arg1[%c0, %c0_0] : memref<64x8xf32, #tpu.memory_space<vmem>>, vector<64x8xf32>
    %c0_1 = arith.constant 0 : index
    %c0_2 = arith.constant 0 : index
    %1 = vector.load %arg2[%c0_1, %c0_2] : memref<8x16xf32, #tpu.memory_space<vmem>>, vector<8x16xf32>
    %cst = arith.constant dense<0.000000e+00> : vector<64x16xf32>
    %2 = tpu.matmul %0, %1, %cst {dimension_numbers = #tpu.dot_dimension_numbers<[1], [0], [0], [1], [0, 0, 1, 1], [], []>} : vector<64x8xf32>, vector<8x16xf32>, vector<64x16xf32> -> vector<64x16xf32>
    %c0_3 = arith.constant 0 : index
    %c0_4 = arith.constant 0 : index
    %3 = vector.load %arg3[%c0_3, %c0_4] : memref<1x16xf32, #tpu.memory_space<vmem>>, vector<1x16xf32>
    %4 = vector.broadcast %3 : vector<1x16xf32> to vector<64x16xf32>
    %5 = arith.addf %2, %4 : vector<64x16xf32>
    %cst_5 = arith.constant 0.000000e+00 : f32
    %6 = vector.broadcast %cst_5 : f32 to vector<64x16xf32>
    %7 = arith.maximumf %5, %6 : vector<64x16xf32>
    %c0_6 = arith.constant 0 : index
    %c0_7 = arith.constant 0 : index
    %8 = vector.load %arg4[%c0_6, %c0_7] : memref<64x16xf32, #tpu.memory_space<vmem>>, vector<64x16xf32>
    %9 = arith.addf %7, %8 : vector<64x16xf32>
    %c0_8 = arith.constant 0 : index
    %c0_9 = arith.constant 0 : index
    %10 = vector.load %arg5[%c0_8, %c0_9] : memref<64x16xf32, #tpu.memory_space<vmem>>, vector<64x16xf32>
    tpu.vector_store %arg5[%c0_8, %c0_9], %9 {strides = array<i32>} : memref<64x16xf32, #tpu.memory_space<vmem>>, vector<64x16xf32>,
    return
  }
  func.func @transform_0(%arg0: i32) -> (i32, i32) {
    %c0_i32 = arith.constant 0 : i32
    %c0_i32_0 = arith.constant 0 : i32
    return %arg0, %c0_i32 : i32, i32
  }
  func.func @transform_1(%arg0: i32) -> (i32, i32) {
    %c0_i32 = arith.constant 0 : i32
    %c0_i32_0 = arith.constant 0 : i32
    %c0_i32_1 = arith.constant 0 : i32
    return %c0_i32, %c0_i32_0 : i32, i32
  }
  func.func @transform_2(%arg0: i32) -> (i32, i32) {
    %c0_i32 = arith.constant 0 : i32
    %c0_i32_0 = arith.constant 0 : i32
    %c0_i32_1 = arith.constant 0 : i32
    return %c0_i32, %c0_i32_0 : i32, i32
  }
  func.func @transform_3(%arg0: i32) -> (i32, i32) {
    %c0_i32 = arith.constant 0 : i32
    %c0_i32_0 = arith.constant 0 : i32
    return %arg0, %c0_i32 : i32, i32
  }
  func.func @transform_4(%arg0: i32) -> (i32, i32) {
    %c0_i32 = arith.constant 0 : i32
    %c0_i32_0 = arith.constant 0 : i32
    return %arg0, %c0_i32 : i32, i32
  }
}

module attributes {stable_mosaic.version = 11 : i64} {
  func.func @_mm_kernel(%arg0: i32, %arg1: memref<32x144xf32, #tpu.memory_space<vmem>>, %arg2: memref<144x16xf32, #tpu.memory_space<vmem>>, %arg3: memref<1x16xf32, #tpu.memory_space<vmem>>, %arg4: memref<32x16xf32, #tpu.memory_space<vmem>>) attributes {dimension_semantics = [#tpu.dimension_semantics<parallel>], iteration_bounds = array<i64: 1>, scalar_prefetch = 0 : i64, scratch_operands = 0 : i64, tpu.core_type = #tpu.core_type<tc>, window_params = [{transform_indices = @transform_0, window_bounds = array<i64: 32, 144>}, {pipeline_mode = #tpu.pipeline_mode<synchronous>, transform_indices = @transform_1, window_bounds = array<i64: 144, 16>}, {pipeline_mode = #tpu.pipeline_mode<synchronous>, transform_indices = @transform_2, window_bounds = array<i64: 1, 16>}, {transform_indices = @transform_3, window_bounds = array<i64: 32, 16>}]} {
    %c0 = arith.constant 0 : index
    %c0_0 = arith.constant 0 : index
    %0 = vector.load %arg1[%c0, %c0_0] : memref<32x144xf32, #tpu.memory_space<vmem>>, vector<32x144xf32>
    %c0_1 = arith.constant 0 : index
    %c0_2 = arith.constant 0 : index
    %1 = vector.load %arg2[%c0_1, %c0_2] : memref<144x16xf32, #tpu.memory_space<vmem>>, vector<144x16xf32>
    %cst = arith.constant dense<0.000000e+00> : vector<32x16xf32>
    %2 = tpu.matmul %0, %1, %cst {dimension_numbers = #tpu.dot_dimension_numbers<[1], [0], [0], [1], [0, 0, 1, 1], [], []>} : vector<32x144xf32>, vector<144x16xf32>, vector<32x16xf32> -> vector<32x16xf32>
    %c0_3 = arith.constant 0 : index
    %c0_4 = arith.constant 0 : index
    %3 = vector.load %arg3[%c0_3, %c0_4] : memref<1x16xf32, #tpu.memory_space<vmem>>, vector<1x16xf32>
    %4 = vector.broadcast %3 : vector<1x16xf32> to vector<32x16xf32>
    %5 = arith.addf %2, %4 : vector<32x16xf32>
    %cst_5 = arith.constant 0.000000e+00 : f32
    %6 = vector.broadcast %cst_5 : f32 to vector<32x16xf32>
    %7 = arith.maximumf %5, %6 : vector<32x16xf32>
    %c0_6 = arith.constant 0 : index
    %c0_7 = arith.constant 0 : index
    %8 = vector.load %arg4[%c0_6, %c0_7] : memref<32x16xf32, #tpu.memory_space<vmem>>, vector<32x16xf32>
    tpu.vector_store %arg4[%c0_6, %c0_7], %7 {strides = array<i32>} : memref<32x16xf32, #tpu.memory_space<vmem>>, vector<32x16xf32>,
    return
  }
  func.func @transform_0(%arg0: i32) -> (i32, i32) {
    %c0_i32 = arith.constant 0 : i32
    %c0_i32_0 = arith.constant 0 : i32
    return %arg0, %c0_i32 : i32, i32
  }
  func.func @transform_1(%arg0: i32) -> (i32, i32) {
    %c0_i32 = arith.constant 0 : i32
    %c0_i32_0 = arith.constant 0 : i32
    %c0_i32_1 = arith.constant 0 : i32
    return %c0_i32, %c0_i32_0 : i32, i32
  }
  func.func @transform_2(%arg0: i32) -> (i32, i32) {
    %c0_i32 = arith.constant 0 : i32
    %c0_i32_0 = arith.constant 0 : i32
    %c0_i32_1 = arith.constant 0 : i32
    return %c0_i32, %c0_i32_0 : i32, i32
  }
  func.func @transform_3(%arg0: i32) -> (i32, i32) {
    %c0_i32 = arith.constant 0 : i32
    %c0_i32_0 = arith.constant 0 : i32
    return %arg0, %c0_i32 : i32, i32
  }
}

module attributes {stable_mosaic.version = 11 : i64} {
  func.func @_mm_kernel(%arg0: i32, %arg1: memref<64x144xf32, #tpu.memory_space<vmem>>, %arg2: memref<144x16xf32, #tpu.memory_space<vmem>>, %arg3: memref<1x16xf32, #tpu.memory_space<vmem>>, %arg4: memref<64x16xf32, #tpu.memory_space<vmem>>) attributes {dimension_semantics = [#tpu.dimension_semantics<parallel>], iteration_bounds = array<i64: 2>, scalar_prefetch = 0 : i64, scratch_operands = 0 : i64, tpu.core_type = #tpu.core_type<tc>, window_params = [{transform_indices = @transform_0, window_bounds = array<i64: 64, 144>}, {pipeline_mode = #tpu.pipeline_mode<synchronous>, transform_indices = @transform_1, window_bounds = array<i64: 144, 16>}, {pipeline_mode = #tpu.pipeline_mode<synchronous>, transform_indices = @transform_2, window_bounds = array<i64: 1, 16>}, {transform_indices = @transform_3, window_bounds = array<i64: 64, 16>}]} {
    %c0 = arith.constant 0 : index
    %c0_0 = arith.constant 0 : index
    %0 = vector.load %arg1[%c0, %c0_0] : memref<64x144xf32, #tpu.memory_space<vmem>>, vector<64x144xf32>
    %c0_1 = arith.constant 0 : index
    %c0_2 = arith.constant 0 : index
    %1 = vector.load %arg2[%c0_1, %c0_2] : memref<144x16xf32, #tpu.memory_space<vmem>>, vector<144x16xf32>
    %cst = arith.constant dense<0.000000e+00> : vector<64x16xf32>
    %2 = tpu.matmul %0, %1, %cst {dimension_numbers = #tpu.dot_dimension_numbers<[1], [0], [0], [1], [0, 0, 1, 1], [], []>} : vector<64x144xf32>, vector<144x16xf32>, vector<64x16xf32> -> vector<64x16xf32>
    %c0_3 = arith.constant 0 : index
    %c0_4 = arith.constant 0 : index
    %3 = vector.load %arg3[%c0_3, %c0_4] : memref<1x16xf32, #tpu.memory_space<vmem>>, vector<1x16xf32>
    %4 = vector.broadcast %3 : vector<1x16xf32> to vector<64x16xf32>
    %5 = arith.addf %2, %4 : vector<64x16xf32>
    %cst_5 = arith.constant 0.000000e+00 : f32
    %6 = vector.broadcast %cst_5 : f32 to vector<64x16xf32>
    %7 = arith.maximumf %5, %6 : vector<64x16xf32>
    %c0_6 = arith.constant 0 : index
    %c0_7 = arith.constant 0 : index
    %8 = vector.load %arg4[%c0_6, %c0_7] : memref<64x16xf32, #tpu.memory_space<vmem>>, vector<64x16xf32>
    tpu.vector_store %arg4[%c0_6, %c0_7], %7 {strides = array<i32>} : memref<64x16xf32, #tpu.memory_space<vmem>>, vector<64x16xf32>,
    return
  }
  func.func @transform_0(%arg0: i32) -> (i32, i32) {
    %c0_i32 = arith.constant 0 : i32
    %c0_i32_0 = arith.constant 0 : i32
    return %arg0, %c0_i32 : i32, i32
  }
  func.func @transform_1(%arg0: i32) -> (i32, i32) {
    %c0_i32 = arith.constant 0 : i32
    %c0_i32_0 = arith.constant 0 : i32
    %c0_i32_1 = arith.constant 0 : i32
    return %c0_i32, %c0_i32_0 : i32, i32
  }
  func.func @transform_2(%arg0: i32) -> (i32, i32) {
    %c0_i32 = arith.constant 0 : i32
    %c0_i32_0 = arith.constant 0 : i32
    %c0_i32_1 = arith.constant 0 : i32
    return %c0_i32, %c0_i32_0 : i32, i32
  }
  func.func @transform_3(%arg0: i32) -> (i32, i32) {
    %c0_i32 = arith.constant 0 : i32
    %c0_i32_0 = arith.constant 0 : i32
    return %arg0, %c0_i32 : i32, i32
  }
}

module attributes {stable_mosaic.version = 11 : i64} {
  func.func @_mm_kernel(%arg0: i32, %arg1: memref<256x144xf32, #tpu.memory_space<vmem>>, %arg2: memref<144x16xf32, #tpu.memory_space<vmem>>, %arg3: memref<1x16xf32, #tpu.memory_space<vmem>>, %arg4: memref<256x16xf32, #tpu.memory_space<vmem>>) attributes {dimension_semantics = [#tpu.dimension_semantics<parallel>], iteration_bounds = array<i64: 2>, scalar_prefetch = 0 : i64, scratch_operands = 0 : i64, tpu.core_type = #tpu.core_type<tc>, window_params = [{transform_indices = @transform_0, window_bounds = array<i64: 256, 144>}, {pipeline_mode = #tpu.pipeline_mode<synchronous>, transform_indices = @transform_1, window_bounds = array<i64: 144, 16>}, {pipeline_mode = #tpu.pipeline_mode<synchronous>, transform_indices = @transform_2, window_bounds = array<i64: 1, 16>}, {transform_indices = @transform_3, window_bounds = array<i64: 256, 16>}]} {
    %c0 = arith.constant 0 : index
    %c0_0 = arith.constant 0 : index
    %0 = vector.load %arg1[%c0, %c0_0] : memref<256x144xf32, #tpu.memory_space<vmem>>, vector<256x144xf32>
    %c0_1 = arith.constant 0 : index
    %c0_2 = arith.constant 0 : index
    %1 = vector.load %arg2[%c0_1, %c0_2] : memref<144x16xf32, #tpu.memory_space<vmem>>, vector<144x16xf32>
    %cst = arith.constant dense<0.000000e+00> : vector<256x16xf32>
    %2 = tpu.matmul %0, %1, %cst {dimension_numbers = #tpu.dot_dimension_numbers<[1], [0], [0], [1], [0, 0, 1, 1], [], []>} : vector<256x144xf32>, vector<144x16xf32>, vector<256x16xf32> -> vector<256x16xf32>
    %c0_3 = arith.constant 0 : index
    %c0_4 = arith.constant 0 : index
    %3 = vector.load %arg3[%c0_3, %c0_4] : memref<1x16xf32, #tpu.memory_space<vmem>>, vector<1x16xf32>
    %4 = vector.broadcast %3 : vector<1x16xf32> to vector<256x16xf32>
    %5 = arith.addf %2, %4 : vector<256x16xf32>
    %cst_5 = arith.constant 0.000000e+00 : f32
    %6 = vector.broadcast %cst_5 : f32 to vector<256x16xf32>
    %7 = arith.maximumf %5, %6 : vector<256x16xf32>
    %c0_6 = arith.constant 0 : index
    %c0_7 = arith.constant 0 : index
    %8 = vector.load %arg4[%c0_6, %c0_7] : memref<256x16xf32, #tpu.memory_space<vmem>>, vector<256x16xf32>
    tpu.vector_store %arg4[%c0_6, %c0_7], %7 {strides = array<i32>} : memref<256x16xf32, #tpu.memory_space<vmem>>, vector<256x16xf32>,
    return
  }
  func.func @transform_0(%arg0: i32) -> (i32, i32) {
    %c0_i32 = arith.constant 0 : i32
    %c0_i32_0 = arith.constant 0 : i32
    return %arg0, %c0_i32 : i32, i32
  }
  func.func @transform_1(%arg0: i32) -> (i32, i32) {
    %c0_i32 = arith.constant 0 : i32
    %c0_i32_0 = arith.constant 0 : i32
    %c0_i32_1 = arith.constant 0 : i32
    return %c0_i32, %c0_i32_0 : i32, i32
  }
  func.func @transform_2(%arg0: i32) -> (i32, i32) {
    %c0_i32 = arith.constant 0 : i32
    %c0_i32_0 = arith.constant 0 : i32
    %c0_i32_1 = arith.constant 0 : i32
    return %c0_i32, %c0_i32_0 : i32, i32
  }
  func.func @transform_3(%arg0: i32) -> (i32, i32) {
    %c0_i32 = arith.constant 0 : i32
    %c0_i32_0 = arith.constant 0 : i32
    return %arg0, %c0_i32 : i32, i32
  }
}

module attributes {stable_mosaic.version = 11 : i64} {
  func.func @_mm_kernel(%arg0: i32, %arg1: memref<256x144xf32, #tpu.memory_space<vmem>>, %arg2: memref<144x1xf32, #tpu.memory_space<vmem>>, %arg3: memref<1x1xf32, #tpu.memory_space<vmem>>, %arg4: memref<256x1xf32, #tpu.memory_space<vmem>>) attributes {dimension_semantics = [#tpu.dimension_semantics<parallel>], iteration_bounds = array<i64: 2>, scalar_prefetch = 0 : i64, scratch_operands = 0 : i64, tpu.core_type = #tpu.core_type<tc>, window_params = [{transform_indices = @transform_0, window_bounds = array<i64: 256, 144>}, {pipeline_mode = #tpu.pipeline_mode<synchronous>, transform_indices = @transform_1, window_bounds = array<i64: 144, 1>}, {pipeline_mode = #tpu.pipeline_mode<synchronous>, transform_indices = @transform_2, window_bounds = array<i64: 1, 1>}, {transform_indices = @transform_3, window_bounds = array<i64: 256, 1>}]} {
    %c0 = arith.constant 0 : index
    %c0_0 = arith.constant 0 : index
    %0 = vector.load %arg1[%c0, %c0_0] : memref<256x144xf32, #tpu.memory_space<vmem>>, vector<256x144xf32>
    %c0_1 = arith.constant 0 : index
    %c0_2 = arith.constant 0 : index
    %1 = vector.load %arg2[%c0_1, %c0_2] : memref<144x1xf32, #tpu.memory_space<vmem>>, vector<144x1xf32>
    %cst = arith.constant dense<0.000000e+00> : vector<256x1xf32>
    %2 = tpu.matmul %0, %1, %cst {dimension_numbers = #tpu.dot_dimension_numbers<[1], [0], [0], [1], [0, 0, 1, 1], [], []>} : vector<256x144xf32>, vector<144x1xf32>, vector<256x1xf32> -> vector<256x1xf32>
    %c0_3 = arith.constant 0 : index
    %c0_4 = arith.constant 0 : index
    %3 = vector.load %arg3[%c0_3, %c0_4] : memref<1x1xf32, #tpu.memory_space<vmem>>, vector<1x1xf32>
    %4 = vector.broadcast %3 : vector<1x1xf32> to vector<256x1xf32>
    %5 = arith.addf %2, %4 : vector<256x1xf32>
    %c0_5 = arith.constant 0 : index
    %c0_6 = arith.constant 0 : index
    %6 = vector.load %arg4[%c0_5, %c0_6] : memref<256x1xf32, #tpu.memory_space<vmem>>, vector<256x1xf32>
    tpu.vector_store %arg4[%c0_5, %c0_6], %5 {strides = array<i32>} : memref<256x1xf32, #tpu.memory_space<vmem>>, vector<256x1xf32>,
    return
  }
  func.func @transform_0(%arg0: i32) -> (i32, i32) {
    %c0_i32 = arith.constant 0 : i32
    %c0_i32_0 = arith.constant 0 : i32
    return %arg0, %c0_i32 : i32, i32
  }
  func.func @transform_1(%arg0: i32) -> (i32, i32) {
    %c0_i32 = arith.constant 0 : i32
    %c0_i32_0 = arith.constant 0 : i32
    %c0_i32_1 = arith.constant 0 : i32
    return %c0_i32, %c0_i32_0 : i32, i32
  }
  func.func @transform_2(%arg0: i32) -> (i32, i32) {
    %c0_i32 = arith.constant 0 : i32
    %c0_i32_0 = arith.constant 0 : i32
    %c0_i32_1 = arith.constant 0 : i32
    return %c0_i32, %c0_i32_0 : i32, i32
  }
  func.func @transform_3(%arg0: i32) -> (i32, i32) {
    %c0_i32 = arith.constant 0 : i32
    %c0_i32_0 = arith.constant 0 : i32
    return %arg0, %c0_i32 : i32, i32
  }
}

</mosaic_0001>

<bundles_post_ra>
// kernel: transinvnet_forward.15
= control target key start
LH: loop header
LB: loop body
LE: loop exit
PB: predicated region body
PF: predicated region fallthrough
CT: control target
= control target key end

     0   :  { %s402_s12 = smov 0   ;;  %s457_s0 = inlined_call_operand.vmem [shape: f32[128,27], index: 0, kind: input, shape index: {}]   ;;  %s458_s1 = inlined_call_operand.vmem [shape: f32[27,8], index: 1, kind: input, shape index: {}]   ;;  %s459_s2 = inlined_call_operand.vmem [shape: f32[1,8], index: 2, kind: input, shape index: {}]   ;;  %s460_s3 = inlined_call_operand.vmem [shape: f32[128,8], index: 3, kind: output, shape index: {}]  }
   0x1 LB: > { %s333_s13 = sadd.s32 4294967295, %s380_s12   ;;  %p337_p0 = scmp.ge.s32.totalorder %s380_s12, 1  ;;  %s380_s12 = sphi %s402_s12, %s13_s12  }
   0x2   : > { %p138_p1 = scmp.lt.s32.totalorder %s380_s12, 3 }
   0x4   : > { %p139_p2 = pnand %p337_p0, %p138_p1 }
   0x5   : > { %s338_s18 = sshll.u32 (!%p139_p2), %s333_s13, 3 }
   0x6   : > { %142 = sbr.rel (%p139_p2) target bundleno = 165 (0xa5), region = 32  ;;  %p163_p3 = scmp.lt.s32.totalorder (!%p139_p2), %s338_s18, 15 }
   0xb   : > { %v185_v0 = vld [vmem:[%s458_s1 + $0x18] sm:$0x7]  ;;  %vm215_vm0 = vcmask 1042432   ;;  %v184_v1 = vld [vmem:[%s458_s1 + $0x10] sm:$0xff]  ;;  %v183_v2 = vld [vmem:[%s458_s1 + $0x8] sm:$0xff]  ;;  %s462_s18 = smov (!%p163_p3, %s338_s18), 15 }
   0xc   : > { %354 = vmatpush.msk.msra.mxu2 %vm215_vm0, %v185_v0  ;;  %355 = vmatpush.msk.msra.mxu3 %vm215_vm0, %v185_v0  ;;  %v182_v3 = vld [vmem:[%s458_s1] sm:$0xff]  ;;  %s339_s23 = sshll.u32 %s462_s18, 3  ;;  %vm190_vm1 = vcmask 220160   ;;  %vm268_vm2 = vcmask 64512  }
   0xd   : > { %342 = vmatpush.msk.msra.mxu0 %vm215_vm0, %v185_v0  ;;  %353 = vmatpush.msk.msra.mxu1 %vm215_vm0, %v185_v0  ;;  %s166_s26 = scalar_lea.vmem %s457_s0, %s339_s23  ;;  %v373_v12 = vld [vmem:[%s459_s2] ss:$0 sm:$0xff]  ;;  %s172_s4 = scalar_lea.vmem %s460_s3, %s339_s23 }
   0xe   : > { %357 = vmatpush.msra.mxu2 %v184_v1  ;;  %358 = vmatpush.msra.mxu3 %v184_v1  ;;  %v178_v4 = vld [vmem:[%s166_s26 + $0x20] sm:$0xff]  ;;  %v180_v5 = vld [vmem:[%s166_s26 + $0x30] sm:$0xff]  ;;  %v179_v8 = vld [vmem:[%s166_s26 + $0x28] sm:$0xff] }
   0xf   : > { %232 = vmatpush.msra.mxu0 %v184_v1  ;;  %356 = vmatpush.msra.mxu1 %v184_v1  ;;  %v174_v6 = vld [vmem:[%s166_s26] sm:$0xff]  ;;  %v176_v7 = vld [vmem:[%s166_s26 + $0x10] sm:$0xff]  ;;  %v181_v9 = vld [vmem:[%s166_s26 + $0x38] sm:$0xff] }
  0x10   : > { %360 = vmatpush.msra.mxu2 %v183_v2  ;;  %361 = vmatpush.msra.mxu3 %v183_v2  ;;  %v175_v10 = vld [vmem:[%s166_s26 + $0x8] sm:$0xff]  ;;  %v177_v11 = vld [vmem:[%s166_s26 + $0x18] sm:$0xff] }
  0x11   : > { %233 = vmatpush.msra.mxu0 %v183_v2  ;;  %359 = vmatpush.msra.mxu1 %v183_v2 }
  0x12   : > { %363 = vmatpush.msra.mxu2 %v182_v3  ;;  %364 = vmatpush.msra.mxu3 %v182_v3 }
  0x13   : > { %347 = vmatmul.msk.f32.vlgmr.msra.gmra.mxu2 %vm190_vm1, %v178_v4  ;;  %349 = vmatmul.msk.f32.vlgmr.msra.gmra.mxu3 %vm190_vm1, %v180_v5 }
  0x14   : > { %234 = vmatpush.msra.mxu0 %v182_v3  ;;  %362 = vmatpush.msra.mxu1 %v182_v3 }
  0x15   : > { %343 = vmatmul.msk.f32.vlgmr.msra.gmra.mxu0 %vm190_vm1, %v174_v6  ;;  %345 = vmatmul.msk.f32.vlgmr.msra.gmra.mxu1 %vm190_vm1, %v176_v7 }
  0x1b   : > { %348 = vmatmul.msk.f32.gmra.mxu2 %vm190_vm1, %v179_v8  ;;  %350 = vmatmul.msk.f32.gmra.mxu3 %vm190_vm1, %v181_v9 }
  0x1d   : > { %344 = vmatmul.msk.f32.gmra.mxu0 %vm190_vm1, %v175_v10  ;;  %346 = vmatmul.msk.f32.gmra.mxu1 %vm190_vm1, %v177_v11 }
  0x92   : > { %v236_v13 = vpop.f32.mrf.mxu0  ;;  %v242_v14 = vpop.f32.mrf.mxu1 }
  0x93   : > { %v237_v15 = vadd.f32 %v373_v12, %v236_v13  ;;  %v243_v16 = vadd.f32 %v373_v12, %v242_v14 }
  0x95   : > { %v260_v17 = vmax.f32 %v237_v15, 0.0  ;;  %v262_v18 = vmax.f32 %v243_v16, 0.0 }
  0x96   : > { %v248_v19 = vpop.f32.mrf.mxu2  ;;  %v254_v20 = vpop.f32.mrf.mxu3 }
  0x97   : > { %269 = vst.msk [vmem:[%s172_s4] sm:$0xff] %vm268_vm2, %v260_v17  ;;  %v249_v21 = vadd.f32 %v373_v12, %v248_v19  ;;  %v255_v22 = vadd.f32 %v373_v12, %v254_v20 }
  0x98   : > { %271 = vst.msk [vmem:[%s172_s4 + $0x10] sm:$0xff] %vm268_vm2, %v262_v18 }
  0x99   : > { %v264_v23 = vmax.f32 %v249_v21, 0.0  ;;  %v266_v24 = vmax.f32 %v255_v22, 0.0 }
  0x9a   : > { %v239_v25 = vpop.f32.mrf.mxu0  ;;  %v245_v26 = vpop.f32.mrf.mxu1 }
  0x9b   : > { %273 = vst.msk [vmem:[%s172_s4 + $0x20] sm:$0xff] %vm268_vm2, %v264_v23  ;;  %v240_v27 = vadd.f32 %v373_v12, %v239_v25  ;;  %v246_v28 = vadd.f32 %v373_v12, %v245_v26 }
  0x9c   : > { %275 = vst.msk [vmem:[%s172_s4 + $0x30] sm:$0xff] %vm268_vm2, %v266_v24 }
  0x9d   : > { %v261_v29 = vmax.f32 %v240_v27, 0.0  ;;  %v263_v30 = vmax.f32 %v246_v28, 0.0 }
  0x9e   : > { %v251_v31 = vpop.f32.mrf.mxu2  ;;  %v257_v32 = vpop.f32.mrf.mxu3 }
  0x9f   : > { %270 = vst.msk [vmem:[%s172_s4 + $0x8] sm:$0xff] %vm268_vm2, %v261_v29  ;;  %v252_v33 = vadd.f32 %v373_v12, %v251_v31  ;;  %v258_v34 = vadd.f32 %v373_v12, %v257_v32 }
  0xa0   : > { %272 = vst.msk [vmem:[%s172_s4 + $0x18] sm:$0xff] %vm268_vm2, %v263_v30 }
  0xa1   : > { %v265_v35 = vmax.f32 %v252_v33, 0.0  ;;  %v267_v36 = vmax.f32 %v258_v34, 0.0 }
  0xa3   : > { %274 = vst.msk [vmem:[%s172_s4 + $0x28] sm:$0xff] %vm268_vm2, %v265_v35 }
  0xa4   : > { %276 = vst.msk [vmem:[%s172_s4 + $0x38] sm:$0xff] %vm268_vm2, %v267_v36 }
  0xa5 PF: > { %s13_s12 = sadd.s32 1, %s380_s12  }
  0xa6   : > { %p10_p4 = scmp.ge.s32.totalorder %s13_s12, 4  }
  0xa8   :  { %12 = sbr.rel (!%p10_p4) target bundleno = 1 (0x1), region = 62 }

// kernel: transinvnet_forward.16
= control target key start
LH: loop header
LB: loop body
LE: loop exit
PB: predicated region body
PF: predicated region fallthrough
CT: control target
= control target key end

     0   :  { %s417_s12 = smov 0   ;;  %s487_s0 = inlined_call_operand.vmem [shape: f32[128,72], index: 0, kind: input, shape index: {}]   ;;  %s488_s1 = inlined_call_operand.vmem [shape: f32[72,8], index: 1, kind: input, shape index: {}]   ;;  %s489_s2 = inlined_call_operand.vmem [shape: f32[1,8], index: 2, kind: input, shape index: {}]   ;;  %s490_s3 = inlined_call_operand.vmem [shape: f32[128,8], index: 3, kind: output, shape index: {}]  }
   0x1 LB: > { %s334_s13 = sadd.s32 4294967295, %s395_s12   ;;  %p338_p0 = scmp.ge.s32.totalorder %s395_s12, 1  ;;  %s395_s12 = sphi %s417_s12, %s13_s12  }
   0x2   : > { %p138_p1 = scmp.lt.s32.totalorder %s395_s12, 3 }
   0x4   : > { %p139_p2 = pnand %p338_p0, %p138_p1 }
   0x5   : > { %s339_s18 = sshll.u32 (!%p139_p2), %s334_s13, 3 }
   0x6   : > { %142 = sbr.rel (%p139_p2) target bundleno = 175 (0xaf), region = 32  ;;  %p163_p3 = scmp.lt.s32.totalorder (!%p139_p2), %s339_s18, 15 }
   0xb   : > { %v190_v0 = vld [vmem:[%s488_s1 + $0x40] sm:$0xff]  ;;  %v189_v1 = vld [vmem:[%s488_s1 + $0x38] sm:$0xff]  ;;  %v188_v2 = vld [vmem:[%s488_s1 + $0x30] sm:$0xff]  ;;  %s492_s18 = smov (!%p163_p3, %s339_s18), 15  ;;  %vm195_vm0 = vcmask 588800   ;;  %vm269_vm1 = vcmask 64512  }
   0xc   : > { %354 = vmatpush.msra.mxu2 %v190_v0  ;;  %355 = vmatpush.msra.mxu3 %v190_v0  ;;  %v187_v3 = vld [vmem:[%s488_s1 + $0x28] sm:$0xff]  ;;  %v186_v4 = vld [vmem:[%s488_s1 + $0x20] sm:$0xff]  ;;  %v185_v5 = vld [vmem:[%s488_s1 + $0x18] sm:$0xff]  ;;  %s340_s27 = sshll.u32 %s492_s18, 3 }
   0xd   : > { %227 = vmatpush.msra.mxu0 %v190_v0  ;;  %353 = vmatpush.msra.mxu1 %v190_v0  ;;  %v184_v6 = vld [vmem:[%s488_s1 + $0x10] sm:$0xff]  ;;  %v183_v7 = vld [vmem:[%s488_s1 + $0x8] sm:$0xff]  ;;  %s166_s7 = scalar_lea.vmem %s487_s0, %s340_s27  ;;  %v182_v8 = vld [vmem:[%s488_s1] sm:$0xff]  ;;  %s172_s15 = scalar_lea.vmem %s490_s3, %s340_s27 }
   0xe   : > { %357 = vmatpush.msra.mxu2 %v189_v1  ;;  %358 = vmatpush.msra.mxu3 %v189_v1  ;;  %v178_v9 = vld [vmem:[%s166_s7 + $0x20] sm:$0xff]  ;;  %v180_v10 = vld [vmem:[%s166_s7 + $0x30] sm:$0xff]  ;;  %v179_v13 = vld [vmem:[%s166_s7 + $0x28] sm:$0xff] }
   0xf   : > { %228 = vmatpush.msra.mxu0 %v189_v1  ;;  %356 = vmatpush.msra.mxu1 %v189_v1  ;;  %v174_v11 = vld [vmem:[%s166_s7] sm:$0xff]  ;;  %v176_v12 = vld [vmem:[%s166_s7 + $0x10] sm:$0xff]  ;;  %v181_v14 = vld [vmem:[%s166_s7 + $0x38] sm:$0xff] }
  0x10   : > { %360 = vmatpush.msra.mxu2 %v188_v2  ;;  %361 = vmatpush.msra.mxu3 %v188_v2  ;;  %v175_v15 = vld [vmem:[%s166_s7 + $0x8] sm:$0xff]  ;;  %v177_v16 = vld [vmem:[%s166_s7 + $0x18] sm:$0xff]  ;;  %v388_v17 = vld [vmem:[%s489_s2] ss:$0 sm:$0xff] }
  0x11   : > { %229 = vmatpush.msra.mxu0 %v188_v2  ;;  %359 = vmatpush.msra.mxu1 %v188_v2 }
  0x12   : > { %363 = vmatpush.msra.mxu2 %v187_v3  ;;  %364 = vmatpush.msra.mxu3 %v187_v3 }
  0x13   : > { %230 = vmatpush.msra.mxu0 %v187_v3  ;;  %362 = vmatpush.msra.mxu1 %v187_v3 }
  0x14   : > { %366 = vmatpush.msra.mxu2 %v186_v4  ;;  %367 = vmatpush.msra.mxu3 %v186_v4 }
  0x15   : > { %231 = vmatpush.msra.mxu0 %v186_v4  ;;  %365 = vmatpush.msra.mxu1 %v186_v4 }
  0x16   : > { %369 = vmatpush.msra.mxu2 %v185_v5  ;;  %370 = vmatpush.msra.mxu3 %v185_v5 }
  0x17   : > { %232 = vmatpush.msra.mxu0 %v185_v5  ;;  %368 = vmatpush.msra.mxu1 %v185_v5 }
  0x18   : > { %372 = vmatpush.msra.mxu2 %v184_v6  ;;  %373 = vmatpush.msra.mxu3 %v184_v6 }
  0x19   : > { %233 = vmatpush.msra.mxu0 %v184_v6  ;;  %371 = vmatpush.msra.mxu1 %v184_v6 }
  0x1a   : > { %375 = vmatpush.msra.mxu2 %v183_v7  ;;  %376 = vmatpush.msra.mxu3 %v183_v7 }
  0x1b   : > { %234 = vmatpush.msra.mxu0 %v183_v7  ;;  %374 = vmatpush.msra.mxu1 %v183_v7 }
  0x1c   : > { %378 = vmatpush.msra.mxu2 %v182_v8  ;;  %379 = vmatpush.msra.mxu3 %v182_v8 }
  0x1d   : > { %347 = vmatmul.msk.f32.vlgmr.msra.gmra.mxu2 %vm195_vm0, %v178_v9  ;;  %349 = vmatmul.msk.f32.vlgmr.msra.gmra.mxu3 %vm195_vm0, %v180_v10 }
  0x1e   : > { %235 = vmatpush.msra.mxu0 %v182_v8  ;;  %377 = vmatpush.msra.mxu1 %v182_v8 }
  0x1f   : > { %343 = vmatmul.msk.f32.vlgmr.msra.gmra.mxu0 %vm195_vm0, %v174_v11  ;;  %345 = vmatmul.msk.f32.vlgmr.msra.gmra.mxu1 %vm195_vm0, %v176_v12 }
  0x25   : > { %348 = vmatmul.msk.f32.gmra.mxu2 %vm195_vm0, %v179_v13  ;;  %350 = vmatmul.msk.f32.gmra.mxu3 %vm195_vm0, %v181_v14 }
  0x27   : > { %344 = vmatmul.msk.f32.gmra.mxu0 %vm195_vm0, %v175_v15  ;;  %346 = vmatmul.msk.f32.gmra.mxu1 %vm195_vm0, %v177_v16 }
  0x9c   : > { %v237_v18 = vpop.f32.mrf.mxu0  ;;  %v243_v19 = vpop.f32.mrf.mxu1 }
  0x9d   : > { %v238_v20 = vadd.f32 %v388_v17, %v237_v18  ;;  %v244_v21 = vadd.f32 %v388_v17, %v243_v19 }
  0x9f   : > { %v261_v22 = vmax.f32 %v238_v20, 0.0  ;;  %v263_v23 = vmax.f32 %v244_v21, 0.0 }
  0xa0   : > { %v249_v24 = vpop.f32.mrf.mxu2  ;;  %v255_v25 = vpop.f32.mrf.mxu3 }
  0xa1   : > { %270 = vst.msk [vmem:[%s172_s15] sm:$0xff] %vm269_vm1, %v261_v22  ;;  %v250_v26 = vadd.f32 %v388_v17, %v249_v24  ;;  %v256_v27 = vadd.f32 %v388_v17, %v255_v25 }
  0xa2   : > { %272 = vst.msk [vmem:[%s172_s15 + $0x10] sm:$0xff] %vm269_vm1, %v263_v23 }
  0xa3   : > { %v265_v28 = vmax.f32 %v250_v26, 0.0  ;;  %v267_v29 = vmax.f32 %v256_v27, 0.0 }
  0xa4   : > { %v240_v30 = vpop.f32.mrf.mxu0  ;;  %v246_v31 = vpop.f32.mrf.mxu1 }
  0xa5   : > { %274 = vst.msk [vmem:[%s172_s15 + $0x20] sm:$0xff] %vm269_vm1, %v265_v28  ;;  %v241_v32 = vadd.f32 %v388_v17, %v240_v30  ;;  %v247_v33 = vadd.f32 %v388_v17, %v246_v31 }
  0xa6   : > { %276 = vst.msk [vmem:[%s172_s15 + $0x30] sm:$0xff] %vm269_vm1, %v267_v29 }
  0xa7   : > { %v262_v34 = vmax.f32 %v241_v32, 0.0  ;;  %v264_v35 = vmax.f32 %v247_v33, 0.0 }
  0xa8   : > { %v252_v36 = vpop.f32.mrf.mxu2  ;;  %v258_v37 = vpop.f32.mrf.mxu3 }
  0xa9   : > { %271 = vst.msk [vmem:[%s172_s15 + $0x8] sm:$0xff] %vm269_vm1, %v262_v34  ;;  %v253_v38 = vadd.f32 %v388_v17, %v252_v36  ;;  %v259_v39 = vadd.f32 %v388_v17, %v258_v37 }
  0xaa   : > { %273 = vst.msk [vmem:[%s172_s15 + $0x18] sm:$0xff] %vm269_vm1, %v264_v35 }
  0xab   : > { %v266_v40 = vmax.f32 %v253_v38, 0.0  ;;  %v268_v41 = vmax.f32 %v259_v39, 0.0 }
  0xad   : > { %275 = vst.msk [vmem:[%s172_s15 + $0x28] sm:$0xff] %vm269_vm1, %v266_v40 }
  0xae   : > { %277 = vst.msk [vmem:[%s172_s15 + $0x38] sm:$0xff] %vm269_vm1, %v268_v41 }
  0xaf PF: > { %s13_s12 = sadd.s32 1, %s395_s12  }
  0xb0   : > { %p10_p4 = scmp.ge.s32.totalorder %s13_s12, 4  }
  0xb2   :  { %12 = sbr.rel (!%p10_p4) target bundleno = 1 (0x1), region = 62 }

// kernel: transinvnet_forward.17
= control target key start
LH: loop header
LB: loop body
LE: loop exit
PB: predicated region body
PF: predicated region fallthrough
CT: control target
= control target key end

     0   :  { %vm31_vm0 = vcmask 588800   ;;  %vm77_vm1 = vcmask 130048   ;;  %s192_s1 = inlined_call_operand.vmem [shape: f32[72,16], index: 1, kind: input, shape index: {}]   ;;  %s193_s2 = inlined_call_operand.vmem [shape: f32[1,16], index: 2, kind: input, shape index: {}]   ;;  %s194_s0 = inlined_call_operand.vmem [shape: f32[32,72], index: 0, kind: input, shape index: {}]   ;;  %s195_s3 = inlined_call_operand.vmem [shape: f32[32,16], index: 3, kind: output, shape index: {}]  }
   0x1   :  { %v26_v0 = vld [vmem:[%s192_s1 + $0x40] sm:$0xff]  ;;  %v25_v1 = vld [vmem:[%s192_s1 + $0x38] sm:$0xff]  ;;  %v24_v2 = vld [vmem:[%s192_s1 + $0x30] sm:$0xff] }
   0x2   :  { %91 = vmatpush.msra.mxu2 %v26_v0  ;;  %92 = vmatpush.msra.mxu3 %v26_v0  ;;  %v23_v3 = vld [vmem:[%s192_s1 + $0x28] sm:$0xff]  ;;  %v22_v4 = vld [vmem:[%s192_s1 + $0x20] sm:$0xff]  ;;  %v21_v5 = vld [vmem:[%s192_s1 + $0x18] sm:$0xff] }
   0x3   :  { %51 = vmatpush.msra.mxu0 %v26_v0  ;;  %90 = vmatpush.msra.mxu1 %v26_v0  ;;  %v20_v6 = vld [vmem:[%s192_s1 + $0x10] sm:$0xff]  ;;  %v19_v7 = vld [vmem:[%s192_s1 + $0x8] sm:$0xff]  ;;  %v18_v8 = vld [vmem:[%s192_s1] sm:$0xff] }
   0x4   :  { %94 = vmatpush.msra.mxu2 %v25_v1  ;;  %95 = vmatpush.msra.mxu3 %v25_v1  ;;  %v16_v9 = vld [vmem:[%s194_s0 + $0x10] sm:$0xff]  ;;  %v17_v10 = vld [vmem:[%s194_s0 + $0x18] sm:$0xff]  ;;  %v14_v11 = vld [vmem:[%s194_s0] sm:$0xff] }
   0x5   :  { %52 = vmatpush.msra.mxu0 %v25_v1  ;;  %93 = vmatpush.msra.mxu1 %v25_v1  ;;  %v15_v12 = vld [vmem:[%s194_s0 + $0x8] sm:$0xff]  ;;  %v117_v13 = vld [vmem:[%s193_s2] ss:$0 sm:$0xff] }
   0x6   :  { %97 = vmatpush.msra.mxu2 %v24_v2  ;;  %98 = vmatpush.msra.mxu3 %v24_v2 }
   0x7   :  { %53 = vmatpush.msra.mxu0 %v24_v2  ;;  %96 = vmatpush.msra.mxu1 %v24_v2 }
   0x8   :  { %100 = vmatpush.msra.mxu2 %v23_v3  ;;  %101 = vmatpush.msra.mxu3 %v23_v3 }
   0x9   :  { %54 = vmatpush.msra.mxu0 %v23_v3  ;;  %99 = vmatpush.msra.mxu1 %v23_v3 }
   0xa   :  { %103 = vmatpush.msra.mxu2 %v22_v4  ;;  %104 = vmatpush.msra.mxu3 %v22_v4 }
   0xb   :  { %55 = vmatpush.msra.mxu0 %v22_v4  ;;  %102 = vmatpush.msra.mxu1 %v22_v4 }
   0xc   :  { %106 = vmatpush.msra.mxu2 %v21_v5  ;;  %107 = vmatpush.msra.mxu3 %v21_v5 }
   0xd   :  { %56 = vmatpush.msra.mxu0 %v21_v5  ;;  %105 = vmatpush.msra.mxu1 %v21_v5 }
   0xe   :  { %109 = vmatpush.msra.mxu2 %v20_v6  ;;  %110 = vmatpush.msra.mxu3 %v20_v6 }
   0xf   :  { %57 = vmatpush.msra.mxu0 %v20_v6  ;;  %108 = vmatpush.msra.mxu1 %v20_v6 }
  0x10   :  { %112 = vmatpush.msra.mxu2 %v19_v7  ;;  %113 = vmatpush.msra.mxu3 %v19_v7 }
  0x11   :  { %58 = vmatpush.msra.mxu0 %v19_v7  ;;  %111 = vmatpush.msra.mxu1 %v19_v7 }
  0x12   :  { %115 = vmatpush.msra.mxu2 %v18_v8  ;;  %116 = vmatpush.msra.mxu3 %v18_v8 }
  0x13   :  { %88 = vmatmul.msk.f32.vlgmr.msra.gmra.mxu2 %vm31_vm0, %v16_v9  ;;  %89 = vmatmul.msk.f32.vlgmr.msra.gmra.mxu3 %vm31_vm0, %v17_v10 }
  0x14   :  { %59 = vmatpush.msra.mxu0 %v18_v8  ;;  %114 = vmatpush.msra.mxu1 %v18_v8 }
  0x15   :  { %86 = vmatmul.msk.f32.vlgmr.msra.gmra.mxu0 %vm31_vm0, %v14_v11  ;;  %87 = vmatmul.msk.f32.vlgmr.msra.gmra.mxu1 %vm31_vm0, %v15_v12 }
  0x92   :  { %v61_v14 = vpop.f32.mrf.mxu0  ;;  %v64_v15 = vpop.f32.mrf.mxu1 }
  0x93   :  { %v62_v16 = vadd.f32 %v117_v13, %v61_v14  ;;  %v65_v17 = vadd.f32 %v117_v13, %v64_v15 }
  0x95   :  { %v73_v18 = vmax.f32 %v62_v16, 0.0  ;;  %v74_v19 = vmax.f32 %v65_v17, 0.0 }
  0x96   :  { %v67_v20 = vpop.f32.mrf.mxu2  ;;  %v70_v21 = vpop.f32.mrf.mxu3 }
  0x97   :  { %78 = vst.msk [vmem:[%s195_s3] sm:$0xff] %vm77_vm1, %v73_v18  ;;  %v68_v22 = vadd.f32 %v117_v13, %v67_v20  ;;  %v71_v23 = vadd.f32 %v117_v13, %v70_v21 }
  0x98   :  { %79 = vst.msk [vmem:[%s195_s3 + $0x8] sm:$0xff] %vm77_vm1, %v74_v19 }
  0x99   :  { %v75_v24 = vmax.f32 %v68_v22, 0.0  ;;  %v76_v25 = vmax.f32 %v71_v23, 0.0 }
  0x9b   :  { %80 = vst.msk [vmem:[%s195_s3 + $0x10] sm:$0xff] %vm77_vm1, %v75_v24 }
  0x9c   :  { %81 = vst.msk [vmem:[%s195_s3 + $0x18] sm:$0xff] %vm77_vm1, %v76_v25 }

// kernel: transinvnet_forward.18
= control target key start
LH: loop header
LB: loop body
LE: loop exit
PB: predicated region body
PF: predicated region fallthrough
CT: control target
= control target key end

     0   :  { %vm38_vm0 = vcmask 130048   ;;  %vm83_vm1 = vcmask 261120   ;;  %s177_s1 = inlined_call_operand.vmem [shape: f32[144,32], index: 1, kind: input, shape index: {}]   ;;  %s178_s0 = inlined_call_operand.vmem [shape: f32[8,144], index: 0, kind: input, shape index: {}]   ;;  %s179_s2 = inlined_call_operand.vmem [shape: f32[1,32], index: 2, kind: input, shape index: {}]   ;;  %s180_s3 = inlined_call_operand.vmem [shape: f32[8,32], index: 3, kind: output, shape index: {}]  }
   0x1   :  { %v31_v0 = vld [vmem:[%s177_s1 + $0x78] sm:$0xff]  ;;  %v30_v1 = vld [vmem:[%s177_s1 + $0x70] sm:$0xff]  ;;  %v29_v2 = vld [vmem:[%s177_s1 + $0x68] sm:$0xff] }
   0x2   :  { %42 = vmatpush.msra.mxu0 %v31_v0  ;;  %v28_v3 = vld [vmem:[%s177_s1 + $0x60] sm:$0xff]  ;;  %v27_v4 = vld [vmem:[%s177_s1 + $0x58] sm:$0xff]  ;;  %v33_v5 = vld [vmem:[%s177_s1 + $0x88] sm:$0xff] }
   0x3   :  { %76 = vmatpush.msra.mxu1 %v33_v5  ;;  %v32_v6 = vld [vmem:[%s177_s1 + $0x80] sm:$0xff]  ;;  %v15_v7 = vld [vmem:[%s178_s0 + $0x8] sm:$0xff]  ;;  %v26_v8 = vld [vmem:[%s177_s1 + $0x50] sm:$0xff] }
   0x4   :  { %43 = vmatpush.msra.mxu0 %v30_v1  ;;  %v25_v9 = vld [vmem:[%s177_s1 + $0x48] sm:$0xff]  ;;  %v24_v10 = vld [vmem:[%s177_s1 + $0x40] sm:$0xff]  ;;  %v23_v11 = vld [vmem:[%s177_s1 + $0x38] sm:$0xff] }
   0x5   :  { %77 = vmatpush.msra.mxu1 %v32_v6  ;;  %v22_v12 = vld [vmem:[%s177_s1 + $0x30] sm:$0xff]  ;;  %v21_v13 = vld [vmem:[%s177_s1 + $0x28] sm:$0xff]  ;;  %v20_v14 = vld [vmem:[%s177_s1 + $0x20] sm:$0xff] }
   0x6   :  { %44 = vmatpush.msra.mxu0 %v29_v2  ;;  %89 = vmatmul.msk.f32.vlgmr.msra.gmra.mxu1 %vm38_vm0, %v15_v7  ;;  %v19_v15 = vld [vmem:[%s177_s1 + $0x18] sm:$0xff]  ;;  %v18_v16 = vld [vmem:[%s177_s1 + $0x10] sm:$0xff]  ;;  %v17_v17 = vld [vmem:[%s177_s1 + $0x8] sm:$0xff] }
   0x7   :  { %v16_v18 = vld [vmem:[%s177_s1] sm:$0xff] }
   0x8   :  { %45 = vmatpush.msra.mxu0 %v28_v3  ;;  %v14_v19 = vld [vmem:[%s178_s0] sm:$0xff] }
   0x9   :  { %v90_v20 = vld [vmem:[%s179_s2] ss:$0 sm:$0xff] }
   0xa   :  { %46 = vmatpush.msra.mxu0 %v27_v4 }
   0xc   :  { %47 = vmatpush.msra.mxu0 %v26_v8 }
   0xe   :  { %48 = vmatpush.msra.mxu0 %v25_v9 }
  0x10   :  { %49 = vmatpush.msra.mxu0 %v24_v10 }
  0x12   :  { %50 = vmatpush.msra.mxu0 %v23_v11 }
  0x14   :  { %51 = vmatpush.msra.mxu0 %v22_v12 }
  0x16   :  { %52 = vmatpush.msra.mxu0 %v21_v13 }
  0x18   :  { %53 = vmatpush.msra.mxu0 %v20_v14 }
  0x1a   :  { %54 = vmatpush.msra.mxu0 %v19_v15 }
  0x1c   :  { %55 = vmatpush.msra.mxu0 %v18_v16 }
  0x1e   :  { %56 = vmatpush.msra.mxu0 %v17_v17 }
  0x20   :  { %57 = vmatpush.msra.mxu0 %v16_v18 }
  0x21   :  { %58 = vmatmul.f32.vlgmr.msra.gmra.mxu0 %v14_v19 }
  0x83   :  { %v79_v22 = vpop.f32.mrf.mxu1 }
  0x9e   :  { %v59_v21 = vpop.f32.mrf.mxu0 }
  0x9f   :  { %v60_v23 = vadd.f32 %v90_v20, %v59_v21 }
  0xa1   :  { %v80_v24 = vadd.f32 %v79_v22, %v60_v23 }
  0xa3   :  { %v82_v25 = vmax.f32 %v80_v24, 0.0 }
  0xa5   :  { %84 = vst.msk [vmem:[%s180_s3] sm:$0xff] %vm83_vm1, %v82_v25 }

// kernel: transinvnet_forward.23
= control target key start
LH: loop header
LB: loop body
LE: loop exit
PB: predicated region body
PF: predicated region fallthrough
CT: control target
= control target key end

     0   :  { %vm23_vm0 = vcmask 261120   ;;  %vm48_vm1 = vcmask 130048   ;;  %s97_s1 = inlined_call_operand.vmem [shape: f32[32,16], index: 1, kind: input, shape index: {}]   ;;  %s98_s2 = inlined_call_operand.vmem [shape: f32[1,16], index: 2, kind: input, shape index: {}]   ;;  %s99_s0 = inlined_call_operand.vmem [shape: f32[8,32], index: 0, kind: input, shape index: {}]   ;;  %s100_s3 = inlined_call_operand.vmem [shape: f32[8,16], index: 3, kind: output, shape index: {}]  }
   0x1   :  { %v18_v0 = vld [vmem:[%s97_s1 + $0x18] sm:$0xff]  ;;  %v17_v1 = vld [vmem:[%s97_s1 + $0x10] sm:$0xff]  ;;  %v16_v2 = vld [vmem:[%s97_s1 + $0x8] sm:$0xff] }
   0x2   :  { %39 = vmatpush.msra.mxu0 %v18_v0  ;;  %v15_v3 = vld [vmem:[%s97_s1] sm:$0xff] }
   0x3   :  { %v14_v4 = vld [vmem:[%s99_s0] sm:$0xff] }
   0x4   :  { %40 = vmatpush.msra.mxu0 %v17_v1  ;;  %v55_v5 = vld [vmem:[%s98_s2] ss:$0 sm:$0xff] }
   0x6   :  { %41 = vmatpush.msra.mxu0 %v16_v2 }
   0x8   :  { %42 = vmatpush.msra.mxu0 %v15_v3 }
   0x9   :  { %54 = vmatmul.msk.f32.vlgmr.msra.gmra.mxu0 %vm23_vm0, %v14_v4 }
  0x86   :  { %v44_v6 = vpop.f32.mrf.mxu0 }
  0x87   :  { %v45_v7 = vadd.f32 %v55_v5, %v44_v6 }
  0x89   :  { %v47_v8 = vmax.f32 %v45_v7, 0.0 }
  0x8b   :  { %49 = vst.msk [vmem:[%s100_s3] sm:$0xff] %vm48_vm1, %v47_v8 }

// kernel: transinvnet_forward.19
= control target key start
LH: loop header
LB: loop body
LE: loop exit
PB: predicated region body
PF: predicated region fallthrough
CT: control target
= control target key end

     0   :  { %vm31_vm0 = vcmask 392192   ;;  %vm81_vm1 = vcmask 261120   ;;  %s195_s1 = inlined_call_operand.vmem [shape: f32[48,32], index: 1, kind: input, shape index: {}]   ;;  %s196_s2 = inlined_call_operand.vmem [shape: f32[1,32], index: 2, kind: input, shape index: {}]   ;;  %s197_s0 = inlined_call_operand.vmem [shape: f32[32,48], index: 0, kind: input, shape index: {}]   ;;  %s198_s3 = inlined_call_operand.vmem [shape: f32[32,32], index: 3, kind: input, shape index: {}]   ;;  %s199_s4 = inlined_call_operand.vmem [shape: f32[32,32], index: 4, kind: output, shape index: {}]  }
   0x1   :  { %v26_v0 = vld [vmem:[%s195_s1 + $0x28] sm:$0xff]  ;;  %v25_v1 = vld [vmem:[%s195_s1 + $0x20] sm:$0xff]  ;;  %v24_v2 = vld [vmem:[%s195_s1 + $0x18] sm:$0xff] }
   0x2   :  { %95 = vmatpush.msra.mxu2 %v26_v0  ;;  %96 = vmatpush.msra.mxu3 %v26_v0  ;;  %v23_v3 = vld [vmem:[%s195_s1 + $0x10] sm:$0xff]  ;;  %v22_v4 = vld [vmem:[%s195_s1 + $0x8] sm:$0xff]  ;;  %v21_v5 = vld [vmem:[%s195_s1] sm:$0xff] }
   0x3   :  { %54 = vmatpush.msra.mxu0 %v26_v0  ;;  %94 = vmatpush.msra.mxu1 %v26_v0  ;;  %v19_v6 = vld [vmem:[%s197_s0 + $0x10] sm:$0xff]  ;;  %v20_v7 = vld [vmem:[%s197_s0 + $0x18] sm:$0xff]  ;;  %v17_v8 = vld [vmem:[%s197_s0] sm:$0xff] }
   0x4   :  { %98 = vmatpush.msra.mxu2 %v25_v1  ;;  %99 = vmatpush.msra.mxu3 %v25_v1  ;;  %v18_v9 = vld [vmem:[%s197_s0 + $0x8] sm:$0xff]  ;;  %v112_v10 = vld [vmem:[%s196_s2] ss:$0 sm:$0xff]  ;;  %v75_v20 = vld [vmem:[%s198_s3 + $0x10] sm:$0xff] }
   0x5   :  { %55 = vmatpush.msra.mxu0 %v25_v1  ;;  %97 = vmatpush.msra.mxu1 %v25_v1  ;;  %v73_v12 = vld [vmem:[%s198_s3] sm:$0xff]  ;;  %v74_v14 = vld [vmem:[%s198_s3 + $0x8] sm:$0xff]  ;;  %v76_v22 = vld [vmem:[%s198_s3 + $0x18] sm:$0xff] }
   0x6   :  { %101 = vmatpush.msra.mxu2 %v24_v2  ;;  %102 = vmatpush.msra.mxu3 %v24_v2 }
   0x7   :  { %56 = vmatpush.msra.mxu0 %v24_v2  ;;  %100 = vmatpush.msra.mxu1 %v24_v2 }
   0x8   :  { %104 = vmatpush.msra.mxu2 %v23_v3  ;;  %105 = vmatpush.msra.mxu3 %v23_v3 }
   0x9   :  { %57 = vmatpush.msra.mxu0 %v23_v3  ;;  %103 = vmatpush.msra.mxu1 %v23_v3 }
   0xa   :  { %107 = vmatpush.msra.mxu2 %v22_v4  ;;  %108 = vmatpush.msra.mxu3 %v22_v4 }
   0xb   :  { %58 = vmatpush.msra.mxu0 %v22_v4  ;;  %106 = vmatpush.msra.mxu1 %v22_v4 }
   0xc   :  { %110 = vmatpush.msra.mxu2 %v21_v5  ;;  %111 = vmatpush.msra.mxu3 %v21_v5 }
   0xd   :  { %92 = vmatmul.msk.f32.vlgmr.msra.gmra.mxu2 %vm31_vm0, %v19_v6  ;;  %93 = vmatmul.msk.f32.vlgmr.msra.gmra.mxu3 %vm31_vm0, %v20_v7 }
   0xe   :  { %59 = vmatpush.msra.mxu0 %v21_v5  ;;  %109 = vmatpush.msra.mxu1 %v21_v5 }
   0xf   :  { %90 = vmatmul.msk.f32.vlgmr.msra.gmra.mxu0 %vm31_vm0, %v17_v8  ;;  %91 = vmatmul.msk.f32.vlgmr.msra.gmra.mxu1 %vm31_vm0, %v18_v9 }
  0x8c   :  { %v61_v11 = vpop.f32.mrf.mxu0  ;;  %v64_v13 = vpop.f32.mrf.mxu1 }
  0x8d   :  { %v62_v15 = vadd.f32 %v112_v10, %v61_v11  ;;  %v65_v16 = vadd.f32 %v112_v10, %v64_v13 }
  0x8f   :  { %v77_v17 = vadd.f32 %v73_v12, %v62_v15  ;;  %v78_v18 = vadd.f32 %v74_v14, %v65_v16 }
  0x90   :  { %v67_v19 = vpop.f32.mrf.mxu2  ;;  %v70_v21 = vpop.f32.mrf.mxu3 }
  0x91   :  { %82 = vst.msk [vmem:[%s199_s4] sm:$0xff] %vm81_vm1, %v77_v17  ;;  %v68_v23 = vadd.f32 %v112_v10, %v67_v19  ;;  %v71_v24 = vadd.f32 %v112_v10, %v70_v21 }
  0x92   :  { %83 = vst.msk [vmem:[%s199_s4 + $0x8] sm:$0xff] %vm81_vm1, %v78_v18 }
  0x93   :  { %v79_v25 = vadd.f32 %v75_v20, %v68_v23  ;;  %v80_v26 = vadd.f32 %v76_v22, %v71_v24 }
  0x95   :  { %84 = vst.msk [vmem:[%s199_s4 + $0x10] sm:$0xff] %vm81_vm1, %v79_v25 }
  0x96   :  { %85 = vst.msk [vmem:[%s199_s4 + $0x18] sm:$0xff] %vm81_vm1, %v80_v26 }

// kernel: transinvnet_forward.22
= control target key start
LH: loop header
LB: loop body
LE: loop exit
PB: predicated region body
PF: predicated region fallthrough
CT: control target
= control target key end

     0   :  { %vm26_vm0 = vcmask 261120   ;;  %vm72_vm1 = vcmask 130048   ;;  %s157_s1 = inlined_call_operand.vmem [shape: f32[32,16], index: 1, kind: input, shape index: {}]   ;;  %s158_s2 = inlined_call_operand.vmem [shape: f32[1,16], index: 2, kind: input, shape index: {}]   ;;  %s159_s0 = inlined_call_operand.vmem [shape: f32[32,32], index: 0, kind: input, shape index: {}]   ;;  %s160_s3 = inlined_call_operand.vmem [shape: f32[32,16], index: 3, kind: output, shape index: {}]  }
   0x1   :  { %v21_v0 = vld [vmem:[%s157_s1 + $0x18] sm:$0xff]  ;;  %v20_v1 = vld [vmem:[%s157_s1 + $0x10] sm:$0xff]  ;;  %v19_v2 = vld [vmem:[%s157_s1 + $0x8] sm:$0xff] }
   0x2   :  { %86 = vmatpush.msra.mxu2 %v21_v0  ;;  %87 = vmatpush.msra.mxu3 %v21_v0  ;;  %v18_v3 = vld [vmem:[%s157_s1] sm:$0xff]  ;;  %v16_v4 = vld [vmem:[%s159_s0 + $0x10] sm:$0xff]  ;;  %v17_v5 = vld [vmem:[%s159_s0 + $0x18] sm:$0xff] }
   0x3   :  { %51 = vmatpush.msra.mxu0 %v21_v0  ;;  %85 = vmatpush.msra.mxu1 %v21_v0  ;;  %v14_v6 = vld [vmem:[%s159_s0] sm:$0xff]  ;;  %v15_v7 = vld [vmem:[%s159_s0 + $0x8] sm:$0xff] }
   0x4   :  { %89 = vmatpush.msra.mxu2 %v20_v1  ;;  %90 = vmatpush.msra.mxu3 %v20_v1  ;;  %v97_v8 = vld [vmem:[%s158_s2] ss:$0 sm:$0xff] }
   0x5   :  { %52 = vmatpush.msra.mxu0 %v20_v1  ;;  %88 = vmatpush.msra.mxu1 %v20_v1 }
   0x6   :  { %92 = vmatpush.msra.mxu2 %v19_v2  ;;  %93 = vmatpush.msra.mxu3 %v19_v2 }
   0x7   :  { %53 = vmatpush.msra.mxu0 %v19_v2  ;;  %91 = vmatpush.msra.mxu1 %v19_v2 }
   0x8   :  { %95 = vmatpush.msra.mxu2 %v18_v3  ;;  %96 = vmatpush.msra.mxu3 %v18_v3 }
   0x9   :  { %83 = vmatmul.msk.f32.vlgmr.msra.gmra.mxu2 %vm26_vm0, %v16_v4  ;;  %84 = vmatmul.msk.f32.vlgmr.msra.gmra.mxu3 %vm26_vm0, %v17_v5 }
   0xa   :  { %54 = vmatpush.msra.mxu0 %v18_v3  ;;  %94 = vmatpush.msra.mxu1 %v18_v3 }
   0xb   :  { %81 = vmatmul.msk.f32.vlgmr.msra.gmra.mxu0 %vm26_vm0, %v14_v6  ;;  %82 = vmatmul.msk.f32.vlgmr.msra.gmra.mxu1 %vm26_vm0, %v15_v7 }
  0x88   :  { %v56_v9 = vpop.f32.mrf.mxu0  ;;  %v59_v10 = vpop.f32.mrf.mxu1 }
  0x89   :  { %v57_v11 = vadd.f32 %v97_v8, %v56_v9  ;;  %v60_v12 = vadd.f32 %v97_v8, %v59_v10 }
  0x8b   :  { %v68_v13 = vmax.f32 %v57_v11, 0.0  ;;  %v69_v14 = vmax.f32 %v60_v12, 0.0 }
  0x8c   :  { %v62_v15 = vpop.f32.mrf.mxu2  ;;  %v65_v16 = vpop.f32.mrf.mxu3 }
  0x8d   :  { %73 = vst.msk [vmem:[%s160_s3] sm:$0xff] %vm72_vm1, %v68_v13  ;;  %v63_v17 = vadd.f32 %v97_v8, %v62_v15  ;;  %v66_v18 = vadd.f32 %v97_v8, %v65_v16 }
  0x8e   :  { %74 = vst.msk [vmem:[%s160_s3 + $0x8] sm:$0xff] %vm72_vm1, %v69_v14 }
  0x8f   :  { %v70_v19 = vmax.f32 %v63_v17, 0.0  ;;  %v71_v20 = vmax.f32 %v66_v18, 0.0 }
  0x91   :  { %75 = vst.msk [vmem:[%s160_s3 + $0x10] sm:$0xff] %vm72_vm1, %v70_v19 }
  0x92   :  { %76 = vst.msk [vmem:[%s160_s3 + $0x18] sm:$0xff] %vm72_vm1, %v71_v20 }

// kernel: transinvnet_forward.21
= control target key start
LH: loop header
LB: loop body
LE: loop exit
PB: predicated region body
PF: predicated region fallthrough
CT: control target
= control target key end

     0   :  { %s1645_s18 = smov 0   ;;  %s1897_s0 = inlined_call_operand.vmem [shape: f32[2,16,32], index: 0, kind: input, shape index: {}]   ;;  %s1898_s1 = inlined_call_operand.vmem [shape: f32[1,32], index: 1, kind: input, shape index: {}]   ;;  %s1899_s2 = inlined_call_operand.vmem [shape: f32[1,32], index: 2, kind: input, shape index: {}]   ;;  %s1900_s3 = inlined_call_operand.vmem [shape: f32[32,96], index: 3, kind: input, shape index: {}]   ;;  %s1901_s4 = inlined_call_operand.vmem [shape: f32[1,96], index: 4, kind: input, shape index: {}]   ;;  %s1902_s5 = inlined_call_operand.vmem [shape: f32[32,32], index: 5, kind: input, shape index: {}]   ;;  %s1903_s6 = inlined_call_operand.vmem [shape: f32[1,32], index: 6, kind: input, shape index: {}]   ;;  %s1904_s7 = inlined_call_operand.vmem [shape: f32[1,32], index: 7, kind: input, shape index: {}]   ;;  %s1905_s8 = inlined_call_operand.vmem [shape: f32[1,32], index: 8, kind: input, shape index: {}]   ;;  %s1906_s9 = inlined_call_operand.vmem [shape: f32[32,64], index: 9, kind: input, shape index: {}]   ;;  %s1907_s10 = inlined_call_operand.vmem [shape: f32[1,64], index: 10, kind: input, shape index: {}]   ;;  %s1908_s11 = inlined_call_operand.vmem [shape: f32[64,32], index: 11, kind: input, shape index: {}]   ;;  %s1909_s12 = inlined_call_operand.vmem [shape: f32[1,32], index: 12, kind: input, shape index: {}]   ;;  %s1910_s13 = inlined_call_operand.vmem [shape: f32[1,32], index: 13, kind: input, shape index: {}]   ;;  %s1911_s14 = inlined_call_operand.vmem [shape: f32[1,32], index: 14, kind: input, shape index: {}]   ;;  %s1912_s15 = inlined_call_operand.vmem [shape: f32[2,16,32], index: 15, kind: output, shape index: {}]  }
   0x1 LB: > { %s1390_s19 = sadd.s32 4294967295, %s1551_s18   ;;  %p1394_p0 = scmp.ge.s32.totalorder %s1551_s18, 1  ;;  %s1551_s18 = sphi %s1645_s18, %s25_s18  }
   0x2   : > { %p437_p1 = scmp.lt.s32.totalorder %s1551_s18, 3 }
   0x4   : > { %p438_p2 = pnand %p1394_p0, %p437_p1 }
   0x5   : > { %p485_p3 = scmp.lt.s32.totalorder (!%p438_p2), %s1390_s19, 1  ;;  %s1554_s26 = smov (!%p438_p2), 96  }
   0x6   : > { %441 = sbr.rel (%p438_p2) target bundleno = 2542 (0x9ee), region = 80  ;;  %s1555_s27 = smov (!%p438_p2), 64  }
   0x7   : > { %s1556_s28 = smov (!%p438_p2), 88   ;;  %s1557_s29 = smov (!%p438_p2), 120  }
   0x8   : > { %s1558_s30 = smov (!%p438_p2), 72   ;;  %s1559_s16 = smov (!%p438_p2), 104  }
   0x9   : > { %s1560_s22 = smov (!%p438_p2), 80   ;;  %s1562_s24 = smov (!%p438_p2), 56  }
   0xa   : > { %s1563_s25 = smov (!%p438_p2), 48  }
   0xb   : > { %s1914_s19 = smov (!%p485_p3, %s1390_s19), 1  ;;  %vm499_vm0 = vcmask 261120   ;;  %v1553_v4 = vmov 32.0   ;;  %v564_v21 = vld [vmem:[%s1900_s3 + $0x18] sm:$0xff]  ;;  %v563_v22 = vld [vmem:[%s1900_s3 + $0x10] sm:$0xff]  ;;  %v562_v23 = vld [vmem:[%s1900_s3 + $0x8] sm:$0xff] }
   0xc   : > { %s1439_s20 = sshll.u32 %s1914_s19, 4  ;;  %1495 = vrcp.f32 %v1553_v4  ;;  %1441 = vmatpush.msra.mxu3 %v564_v21  ;;  %587 = vmatpush.msra.mxu0 %v564_v21  ;;  %v561_v24 = vld [vmem:[%s1900_s3] sm:$0xff]  ;;  %vm608_vm8 = vcmask 64512   ;;  %vm642_vm9 = vcmask 130048  }
   0xd   : > { %s489_s23 = scalar_lea.vmem %s1897_s0, %s1439_s20  ;;  %v1485_v39 = vld [vmem:[%s1898_s1] ss:$0 sm:$0xff] }
   0xe   : > { %v1661_v0 = vld [vmem:[%s489_s23 + $0x8] sm:$0xff]  ;;  %v1665_v2 = vld [vmem:[%s489_s23] sm:$0xff]  ;;  %1442 = vmatpush.msra.mxu3 %v563_v22  ;;  %588 = vmatpush.msra.mxu0 %v563_v22  ;;  %s1561_s23 = smov 112  }
   0xf   : > { %v503_v1 = vsel %vm499_vm0, %v1661_v0, 0.0  ;;  %v500_v3 = vsel %vm499_vm0, %v1665_v2, 0.0  ;;  %v1486_v43 = vld [vmem:[%s1899_s2] ss:$0 sm:$0xff] }
  0x10   : > { %504 = vadd.xlane.f32.xlu0 %v503_v1  ;;  %1443 = vmatpush.msra.mxu3 %v562_v23  ;;  %v1487_v53 = vld [vmem:[%s1901_s4] ss:$0 sm:$0xff] }
  0x11   : > { %589 = vmatpush.msra.mxu0 %v562_v23 }
  0x12   : > { %v1496_v5 = vpop.eup %1495  ;;  %1444 = vmatpush.msra.mxu3 %v561_v24 }
  0x13   : > { %v507_v6 = vmul.f32 32.0, %v1496_v5  ;;  %vm511_vm1 = vweird.f32 %v1496_v5  ;;  %590 = vmatpush.msra.mxu0 %v561_v24 }
  0x15   : > { %v508_v7 = vsub.f32 1.0, %v507_v6 }
  0x17   : > { %v509_v8 = vmul.f32 %v1496_v5, %v508_v7 }
  0x18   : > { %501 = vadd.xlane.f32.xlu0 %v500_v3 }
  0x19   : > { %v510_v9 = vadd.f32 %v1496_v5, %v509_v8  ;;  %v598_v8 = vld [vmem:[%s1902_s5] sm:$0xff] }
  0x1b   : > { %v1669_v10 = vsel %vm511_vm1, %v1496_v5, %v510_v9  ;;  %vm1245_vm1 = vcmask 523264  }
  0x83   : > { %v505_v11 = vpop.xlane.xlu0 %504 }
  0x84   : > { %v514_v12 = vmul.f32 %v1669_v10, %v505_v11 }
  0x86   : > { %v516_v13 = vsub.f32 %v1661_v0, %v514_v12 }
  0x88   : > { %v518_v14 = vmul.f32 %v516_v13, %v516_v13 }
  0x8a   : > { %v522_v15 = vsel %vm499_vm0, %v518_v14, 0.0 }
  0x8b   : > { %523 = vadd.xlane.f32.xlu1 %v522_v15  ;;  %v502_v16 = vpop.xlane.xlu0 %501 }
  0x8c   : > { %v513_v17 = vmul.f32 %v1669_v10, %v502_v16 }
  0x8e   : > { %v515_v18 = vsub.f32 %v1665_v2, %v513_v17 }
  0x90   : > { %v517_v19 = vmul.f32 %v515_v18, %v515_v18 }
  0x92   : > { %v519_v20 = vsel %vm499_vm0, %v517_v19, 0.0 }
  0x93   : > { %520 = vadd.xlane.f32.xlu1 %v519_v20 }
  0xfe   : > { %v524_v25 = vpop.xlane.xlu1 %523 }
  0xff   : > { %v526_v26 = vmul.f32 %v524_v25, %v1669_v10 }
 0x101   : > { %v528_v27 = vadd.f32 1e-06, %v526_v26 }
 0x103   : > { %1497 = vrsqrt.f32 %v528_v27  ;;  %vm545_vm3 = vweird.f32 %v528_v27 }
 0x106   : > { %v521_v28 = vpop.xlane.xlu1 %520 }
 0x107   : > { %v525_v29 = vmul.f32 %v521_v28, %v1669_v10 }
 0x109   : > { %v1498_v30 = vpop.eup %1497  ;;  %v527_v31 = vadd.f32 1e-06, %v525_v29 }
 0x10a   : > { %v540_v32 = vmul.f32 %v1498_v30, %v528_v27  ;;  %vm546_vm2 = vweird.f32 %v1498_v30 }
 0x10b   : > { %1499 = vrsqrt.f32 %v527_v31  ;;  %vm547_vm4 = vmor %vm545_vm3, %vm546_vm2  ;;  %vm535_vm5 = vweird.f32 %v527_v31 }
 0x10c   : > { %v541_v33 = vmul.f32 %v1498_v30, %v540_v32 }
 0x10e   : > { %v542_v34 = vmul.f32 0.5, %v541_v33 }
 0x110   : > { %v543_v35 = vsub.f32 1.5, %v542_v34 }
 0x111   : > { %v1500_v36 = vpop.eup %1499 }
 0x112   : > { %v544_v37 = vmul.f32 %v1498_v30, %v543_v35  ;;  %v530_v38 = vmul.f32 %v1500_v36, %v527_v31  ;;  %vm536_vm6 = vweird.f32 %v1500_v36 }
 0x113   : > { %vm537_vm7 = vmor %vm535_vm5, %vm536_vm6 }
 0x114   : > { %v548_v40 = vsel %vm547_vm4, %v1498_v30, %v544_v37  ;;  %v531_v41 = vmul.f32 %v1500_v36, %v530_v38 }
 0x115   : > { %v550_v42 = vmul.f32 %v548_v40, %v516_v13 }
 0x116   : > { %v532_v44 = vmul.f32 0.5, %v531_v41 }
 0x117   : > { %v555_v45 = vmul.f32 %v1485_v39, %v550_v42 }
 0x118   : > { %v533_v46 = vsub.f32 1.5, %v532_v44 }
 0x119   : > { %v560_v47 = vadd.f32 %v1486_v43, %v555_v45 }
 0x11a   : > { %v534_v48 = vmul.f32 %v1500_v36, %v533_v46 }
 0x11b   : > { %1400 = vmatmul.msk.f32.vlgmr.msra.gmra.mxu3 %vm499_vm0, %v560_v47 }
 0x11c   : > { %v538_v49 = vsel %vm537_vm7, %v1500_v36, %v534_v48 }
 0x11d   : > { %v549_v50 = vmul.f32 %v538_v49, %v515_v18 }
 0x11f   : > { %v554_v51 = vmul.f32 %v1485_v39, %v549_v50 }
 0x121   : > { %v559_v52 = vadd.f32 %v1486_v43, %v554_v51 }
 0x123   : > { %1399 = vmatmul.msk.f32.vlgmr.msra.gmra.mxu0 %vm499_vm0, %v559_v52 }
 0x19e   : > { %v595_v54 = vpop.f32.mrf.mxu3 }
 0x19f   : > { %v1702_v55 = vadd.f32 %v1487_v53, %v595_v54 }
 0x1a0   : > { %v592_v56 = vpop.f32.mrf.mxu0 }
 0x1a1   : > { %606 = vrot.lane.b32.xlu2 %v1702_v55, %s1554_s26  ;;  %v1705_v57 = vadd.f32 %v1487_v53, %v592_v56 }
 0x1a3   : > { %v1718_v4 = vpack.i.bf16 %v1705_v57, %v1702_v55 }
 0x1a9   : > { %604 = vrot.lane.b32.xlu2 %v1705_v57, %s1554_s26  ;;  %s1564_s26 = smov 40  }
 0x1fb   : > { %v607_v58 = vpop.permute.xlu2 %606 }
 0x1fc   : > { %1401 = vmatpush.xpose.msk.msra.mxu1 %vm608_vm8, %v607_v58 }
 0x203   : > { %v605_v59 = vpop.permute.xlu2 %604 }
 0x204   : > { %1402 = vmatpush.xpose.msk.msra.mxu1 %vm608_vm8, %v605_v59 }
 0x207   : > { %1403 = vmatmul.msk.f32.vlgmr.msra.gmra.mxu1 %vm608_vm8, %v1705_v57 }
 0x208   : > { %848 = vmatpush.msrb.mxu1 %v598_v8 }
 0x20f   : > { %1404 = vmatmul.msk.f32.gmra.mxu1 %vm608_vm8, %v1702_v55 }
 0x284   : > { %v634_v60 = vpop.f32.mrf.mxu1 }
 0x285   : > { %v640_v61 = vmul.f32 0.35355338, %v634_v60 }
 0x287   : > { %v643_v62 = vsel %vm642_vm9, %v640_v61, -inf }
 0x288   : > { %644 = vmax.xlane.f32.xlu0 %v643_v62 }
 0x28c   : > { %v637_v63 = vpop.f32.mrf.mxu1 }
 0x28d   : > { %v641_v1 = vmul.f32 0.35355338, %v637_v63 }
 0x28f   : > { %v646_v3 = vsel %vm642_vm9, %v641_v1, -inf }
 0x290   : > { %647 = vmax.xlane.f32.xlu1 %v646_v3 }
 0x29c   : > { %1466 = vrot.lane.b32.xlu0 %v1718_v4, %s1555_s27 }
 0x2a4   : > { %704 = vrot.lane.b32.xlu0 %v1705_v57, %s1556_s28 }
 0x2ac   : > { %700 = vrot.lane.b32.xlu0 %v1705_v57, %s1557_s29 }
 0x2b4   : > { %991 = vrot.lane.b32.xlu0 %v1702_v55, %s1558_s30 }
 0x2bc   : > { %989 = vrot.lane.b32.xlu0 %v1705_v57, %s1558_s30 }
 0x2c4   : > { %985 = vrot.lane.b32.xlu0 %v1705_v57, %s1559_s16 }
 0x2fb   : > { %v645_v5 = vpop.xlane.xlu0 %644 }
 0x2fc   : > { %v649_v6 = vsub.f32 %v640_v61, %v645_v5 }
 0x2fe   : > { %v651_v7 = vmul.f32 1.442695, %v649_v6 }
 0x300   : > { %1501 = vpow2.f32 %v651_v7 }
 0x303   : > { %v648_v9 = vpop.xlane.xlu1 %647 }
 0x304   : > { %v650_v11 = vsub.f32 %v641_v1, %v648_v9 }
 0x306   : > { %v1502_v12 = vpop.eup %1501  ;;  %v653_v13 = vmul.f32 1.442695, %v650_v11 }
 0x307   : > { %v655_v14 = vsel %vm642_vm9, %v1502_v12, 0.0 }
 0x308   : > { %1503 = vpow2.f32 %v653_v13  ;;  %656 = vadd.xlane.f32.xlu2 %v655_v14 }
 0x30e   : > { %v1504_v15 = vpop.eup %1503  ;;  %v1467_v16 = vpop.permute.xlu0 %1466 }
 0x30f   : > { %v658_v17 = vsel %vm642_vm9, %v1504_v15, 0.0  ;;  %v1468_v18 = vunpack.i.l.bf16 %v1467_v16  ;;  %v1469_v19 = vunpack.i.h.bf16 %v1467_v16 }
 0x310   : > { %659 = vadd.xlane.f32.xlu1 %v658_v17 }
 0x311   : > { %691 = vmatpush.msra.mxu2 %v1468_v18 }
 0x313   : > { %692 = vmatpush.msra.mxu2 %v1469_v19 }
 0x316   : > { %v705_v20 = vpop.permute.xlu0 %704 }
 0x31e   : > { %v701_v21 = vpop.permute.xlu0 %700 }
 0x320   : > { %862 = vrot.lane.b32.xlu2 %v1702_v55, %s1560_s22 }
 0x326   : > { %v992_v22 = vpop.permute.xlu0 %991 }
 0x327   : > { %1425 = vmatpush.xpose.msk.msra.mxu1 %vm608_vm8, %v992_v22 }
 0x328   : > { %987 = vrot.lane.b32.xlu2 %v1702_v55, %s1559_s16 }
 0x329   : > { %706 = vrot.lane.b32.xlu1 %v1702_v55, %s1556_s28 }
 0x32e   : > { %v990_v23 = vpop.permute.xlu0 %989 }
 0x32f   : > { %1426 = vmatpush.xpose.msk.msra.mxu1 %vm608_vm8, %v990_v23 }
 0x331   : > { %702 = vrot.lane.b32.xlu1 %v1702_v55, %s1557_s29 }
 0x336   : > { %v986_v38 = vpop.permute.xlu0 %985 }
 0x339   : > { %860 = vrot.lane.b32.xlu1 %v1705_v57, %s1560_s22 }
 0x341   : > { %856 = vrot.lane.b32.xlu1 %v1705_v57, %s1561_s23 }
 0x349   : > { %858 = vrot.lane.b32.xlu1 %v1702_v55, %s1561_s23 }
 0x37b   : > { %v657_v24 = vpop.xlane.xlu2 %656 }
 0x37c   : > { %1505 = vrcp.f32 %v657_v24 }
 0x382   : > { %v1506_v25 = vpop.eup %1505 }
 0x383   : > { %v660_v26 = vpop.xlane.xlu1 %659  ;;  %v663_v27 = vmul.f32 %v1506_v25, %v1502_v12  ;;  %v863_v31 = vpop.permute.xlu2 %862 }
 0x384   : > { %1507 = vrcp.f32 %v660_v26 }
 0x385   : > { %1405 = vmatmul.msk.f32.vlgmr.msra.gmra.mxu2 %vm642_vm9, %v663_v27 }
 0x38a   : > { %v1508_v28 = vpop.eup %1507 }
 0x38b   : > { %v664_v29 = vmul.f32 %v1508_v28, %v1504_v15  ;;  %v988_v39 = vpop.permute.xlu2 %987 }
 0x38d   : > { %1406 = vmatmul.msk.f32.gmra.mxu2 %vm642_vm9, %v664_v29 }
 0x39b   : > { %v707_v30 = vpop.permute.xlu1 %706 }
 0x39c   : > { %1407 = vmatpush.xpose.msk.msrb.mxu3 %vm608_vm8, %v707_v30 }
 0x3a0   : > { %1408 = vmatpush.xpose.msk.msrb.mxu3 %vm608_vm8, %v705_v20 }
 0x3a3   : > { %1409 = vmatmul.msk.f32.vlgmr.msrb.gmra.mxu3 %vm608_vm8, %v701_v21  ;;  %v703_v32 = vpop.permute.xlu1 %702 }
 0x3a4   : > { %1417 = vmatpush.xpose.msk.msra.mxu3 %vm608_vm8, %v863_v31 }
 0x3ab   : > { %1410 = vmatmul.msk.f32.gmra.mxu3 %vm608_vm8, %v703_v32  ;;  %v861_v33 = vpop.permute.xlu1 %860 }
 0x3ac   : > { %1418 = vmatpush.xpose.msk.msra.mxu3 %vm608_vm8, %v861_v33 }
 0x3b3   : > { %v857_v34 = vpop.permute.xlu1 %856 }
 0x3b4   : > { %1419 = vmatmul.msk.f32.vlgmr.msra.gmra.mxu3 %vm608_vm8, %v857_v34 }
 0x3bb   : > { %v859_v35 = vpop.permute.xlu1 %858 }
 0x3bc   : > { %1420 = vmatmul.msk.f32.gmra.mxu3 %vm608_vm8, %v859_v35 }
 0x408   : > { %v694_v36 = vpop.f32.mrf.mxu2 }
 0x409   : > { %1415 = vmatmul.msk.f32.vlgmr.msrb.gmra.mxu1 %vm608_vm8, %v694_v36 }
 0x410   : > { %v697_v37 = vpop.f32.mrf.mxu2 }
 0x411   : > { %1416 = vmatmul.msk.f32.gmra.mxu1 %vm608_vm8, %v697_v37 }
 0x419   : > { %1427 = vmatmul.msk.f32.vlgmr.msra.gmra.mxu1 %vm608_vm8, %v986_v38 }
 0x421   : > { %1428 = vmatmul.msk.f32.gmra.mxu1 %vm608_vm8, %v988_v39 }
 0x426   : > { %v733_v40 = vpop.f32.mrf.mxu3 }
 0x427   : > { %v739_v41 = vmul.f32 0.35355338, %v733_v40 }
 0x429   : > { %v741_v42 = vsel %vm642_vm9, %v739_v41, -inf }
 0x42a   : > { %742 = vmax.xlane.f32.xlu0 %v741_v42 }
 0x42e   : > { %v736_v43 = vpop.f32.mrf.mxu3 }
 0x42f   : > { %v740_v44 = vmul.f32 0.35355338, %v736_v43 }
 0x431   : > { %v744_v45 = vsel %vm642_vm9, %v740_v44, -inf }
 0x432   : > { %745 = vmax.xlane.f32.xlu1 %v744_v45  ;;  %v599_v45 = vld [vmem:[%s1902_s5 + $0x8] sm:$0xff] }
 0x433   : > { %819 = vmatpush.msrb.mxu0 %v599_v45 }
 0x437   : > { %v889_v46 = vpop.f32.mrf.mxu3 }
 0x438   : > { %v895_v47 = vmul.f32 0.35355338, %v889_v46 }
 0x43a   : > { %v897_v48 = vsel %vm642_vm9, %v895_v47, -inf }
 0x43b   : > { %898 = vmax.xlane.f32.xlu0 %v897_v48  ;;  %v600_v48 = vld [vmem:[%s1902_s5 + $0x10] sm:$0xff] }
 0x43c   : > { %975 = vmatpush.msra.mxu0 %v600_v48 }
 0x43f   : > { %v892_v49 = vpop.f32.mrf.mxu3 }
 0x440   : > { %v896_v50 = vmul.f32 0.35355338, %v892_v49 }
 0x442   : > { %v900_v51 = vsel %vm642_vm9, %v896_v50, -inf }
 0x443   : > { %901 = vmax.xlane.f32.xlu1 %v900_v51 }
 0x486   : > { %v1762_v52 = vpop.f32.mrf.mxu1 }
 0x48e   : > { %v1764_v53 = vpop.f32.mrf.mxu1 }
 0x496   : > { %v1018_v54 = vpop.f32.mrf.mxu1 }
 0x497   : > { %v1024_v55 = vmul.f32 0.35355338, %v1018_v54 }
 0x499   : > { %v1026_v56 = vsel %vm642_vm9, %v1024_v55, -inf }
 0x49a   : > { %1027 = vmax.xlane.f32.xlu2 %v1026_v56 }
 0x49d   : > { %v743_v57 = vpop.xlane.xlu0 %742 }
 0x49e   : > { %v747_v58 = vsub.f32 %v739_v41, %v743_v57  ;;  %v1021_v59 = vpop.f32.mrf.mxu1 }
 0x49f   : > { %v1025_v60 = vmul.f32 0.35355338, %v1021_v59 }
 0x4a0   : > { %v749_v61 = vmul.f32 1.442695, %v747_v58 }
 0x4a1   : > { %v1029_v62 = vsel %vm642_vm9, %v1025_v60, -inf }
 0x4a2   : > { %1509 = vpow2.f32 %v749_v61  ;;  %1030 = vmax.xlane.f32.xlu2 %v1029_v62 }
 0x4a5   : > { %v746_v63 = vpop.xlane.xlu1 %745 }
 0x4a6   : > { %v748_v1 = vsub.f32 %v740_v44, %v746_v63 }
 0x4a8   : > { %v1510_v3 = vpop.eup %1509  ;;  %v751_v5 = vmul.f32 1.442695, %v748_v1 }
 0x4a9   : > { %v753_v6 = vsel %vm642_vm9, %v1510_v3, 0.0 }
 0x4aa   : > { %1511 = vpow2.f32 %v751_v5  ;;  %754 = vadd.xlane.f32.xlu0 %v753_v6 }
 0x4ae   : > { %v899_v7 = vpop.xlane.xlu0 %898 }
 0x4af   : > { %v903_v8 = vsub.f32 %v895_v47, %v899_v7 }
 0x4b0   : > { %v1512_v9 = vpop.eup %1511 }
 0x4b1   : > { %v905_v11 = vmul.f32 1.442695, %v903_v8  ;;  %v756_v12 = vsel %vm642_vm9, %v1512_v9, 0.0 }
 0x4b2   : > { %757 = vadd.xlane.f32.xlu1 %v756_v12 }
 0x4b3   : > { %1513 = vpow2.f32 %v905_v11 }
 0x4b6   : > { %v902_v18 = vpop.xlane.xlu1 %901 }
 0x4b7   : > { %v904_v22 = vsub.f32 %v896_v50, %v902_v18 }
 0x4b9   : > { %v1514_v13 = vpop.eup %1513  ;;  %v907_v25 = vmul.f32 1.442695, %v904_v22 }
 0x4ba   : > { %1471 = vrot.lane.b32.xlu2 %v1718_v4, %s1562_s24  ;;  %v909_v14 = vsel %vm642_vm9, %v1514_v13, 0.0 }
 0x4bb   : > { %910 = vadd.xlane.f32.xlu1 %v909_v14  ;;  %v1488_v14 = vld [vmem:[%s1903_s6] ss:$0 sm:$0xff] }
 0x4c2   : > { %1481 = vrot.lane.b32.xlu2 %v1718_v4, %s1563_s25  ;;  %s494_s25 = scalar_lea.vmem %s1912_s15, %s1439_s20 }
 0x50d   : > { %v1028_v15 = vpop.xlane.xlu2 %1027 }
 0x50e   : > { %v1032_v16 = vsub.f32 %v1024_v55, %v1028_v15 }
 0x510   : > { %v1034_v17 = vmul.f32 1.442695, %v1032_v16 }
 0x512   : > { %1515 = vpow2.f32 %v1034_v17 }
 0x515   : > { %v1031_v19 = vpop.xlane.xlu2 %1030 }
 0x516   : > { %v1033_v20 = vsub.f32 %v1025_v60, %v1031_v19 }
 0x518   : > { %v1516_v21 = vpop.eup %1515  ;;  %v1036_v23 = vmul.f32 1.442695, %v1033_v20 }
 0x519   : > { %v1038_v24 = vsel %vm642_vm9, %v1516_v21, 0.0 }
 0x51a   : > { %1517 = vpow2.f32 %v1036_v23  ;;  %1039 = vadd.xlane.f32.xlu0 %v1038_v24 }
 0x51d   : > { %v1472_v26 = vpop.permute.xlu2 %1471  ;;  %v755_v27 = vpop.xlane.xlu0 %754 }
 0x51e   : > { %1519 = vrcp.f32 %v755_v27  ;;  %v1473_v28 = vunpack.i.l.bf16 %v1472_v26  ;;  %v1474_v30 = vunpack.i.h.bf16 %v1472_v26 }
 0x51f   : > { %1521 = vpow2.f32 %v907_v25 }
 0x520   : > { %v1518_v29 = vpop.eup %1517  ;;  %789 = vmatpush.msrb.mxu2 %v1473_v28 }
 0x521   : > { %v1041_v31 = vsel %vm642_vm9, %v1518_v29, 0.0 }
 0x522   : > { %790 = vmatpush.msrb.mxu2 %v1474_v30  ;;  %1042 = vadd.xlane.f32.xlu1 %v1041_v31 }
 0x524   : > { %v1520_v32 = vpop.eup %1519 }
 0x525   : > { %v1482_v33 = vpop.permute.xlu2 %1481  ;;  %v758_v34 = vpop.xlane.xlu1 %757  ;;  %v761_v35 = vmul.f32 %v1520_v32, %v1510_v3  ;;  %v1181_v32 = vld [vmem:[%s1906_s9 + $0x18] sm:$0xff] }
 0x526   : > { %v1522_v36 = vpop.eup %1521  ;;  %v1483_v37 = vunpack.i.l.bf16 %v1482_v33  ;;  %1523 = vrcp.f32 %v758_v34  ;;  %v1484_v38 = vunpack.i.h.bf16 %v1482_v33  ;;  %v1180_v33 = vld [vmem:[%s1906_s9 + $0x10] sm:$0xff]  ;;  %v1179_v34 = vld [vmem:[%s1906_s9 + $0x8] sm:$0xff] }
 0x527   : > { %1411 = vmatmul.msk.f32.vlgmr.msrb.gmra.mxu2 %vm642_vm9, %v761_v35  ;;  %v912_v39 = vsel %vm642_vm9, %v1522_v36, 0.0  ;;  %v1178_v35 = vld [vmem:[%s1906_s9] sm:$0xff] }
 0x528   : > { %945 = vmatpush.msra.mxu2 %v1483_v37 }
 0x52a   : > { %946 = vmatpush.msra.mxu2 %v1484_v38  ;;  %913 = vadd.xlane.f32.xlu1 %v912_v39 }
 0x52c   : > { %v1524_v40 = vpop.eup %1523 }
 0x52d   : > { %v762_v41 = vmul.f32 %v1524_v40, %v1512_v9 }
 0x52e   : > { %1476 = vrot.lane.b32.xlu0 %v1718_v4, %s1564_s26  ;;  %v911_v42 = vpop.xlane.xlu1 %910  ;;  %v601_v4 = vld [vmem:[%s1902_s5 + $0x18] sm:$0xff] }
 0x52f   : > { %1525 = vrcp.f32 %v911_v42  ;;  %1412 = vmatmul.msk.f32.gmra.mxu2 %vm642_vm9, %v762_v41 }
 0x530   : > { %1104 = vmatpush.msrb.mxu2 %v601_v4 }
 0x535   : > { %v1526_v43 = vpop.eup %1525 }
 0x536   : > { %v917_v44 = vmul.f32 %v1526_v43, %v1514_v13 }
 0x538   : > { %1421 = vmatmul.msk.f32.vlgmr.msra.gmra.mxu2 %vm642_vm9, %v917_v44 }
 0x58d   : > { %v1040_v47 = vpop.xlane.xlu0 %1039 }
 0x58e   : > { %1527 = vrcp.f32 %v1040_v47 }
 0x594   : > { %v1528_v51 = vpop.eup %1527 }
 0x595   : > { %v1043_v46 = vpop.xlane.xlu1 %1042  ;;  %v1046_v57 = vmul.f32 %v1528_v51, %v1516_v21 }
 0x59d   : > { %v914_v49 = vpop.xlane.xlu1 %913 }
 0x59e   : > { %1529 = vrcp.f32 %v914_v49  ;;  %v1489_v49 = vld [vmem:[%s1904_s7] ss:$0 sm:$0xff] }
 0x59f   : > { %1531 = vrcp.f32 %v1043_v46 }
 0x5a0   : > { %v1477_v50 = vpop.permute.xlu0 %1476 }
 0x5a1   : > { %v1478_v54 = vunpack.i.l.bf16 %v1477_v50  ;;  %v1479_v55 = vunpack.i.h.bf16 %v1477_v50 }
 0x5a3   : > { %1074 = vmatpush.msrb.mxu3 %v1478_v54 }
 0x5a4   : > { %v1530_v56 = vpop.eup %1529 }
 0x5a5   : > { %1075 = vmatpush.msrb.mxu3 %v1479_v55  ;;  %v918_v58 = vmul.f32 %v1530_v56, %v1522_v36  ;;  %v1532_v59 = vpop.eup %1531  ;;  %v1490_v55 = vld [vmem:[%s1905_s8] ss:$0 sm:$0xff] }
 0x5a6   : > { %1429 = vmatmul.msk.f32.vlgmr.msrb.gmra.mxu3 %vm642_vm9, %v1046_v57  ;;  %v1047_v61 = vmul.f32 %v1532_v59, %v1518_v29 }
 0x5a7   : > { %1422 = vmatmul.msk.f32.gmra.mxu2 %vm642_vm9, %v918_v58 }
 0x5aa   : > { %v792_v60 = vpop.f32.mrf.mxu2 }
 0x5ab   : > { %1413 = vmatmul.msk.f32.vlgmr.msrb.gmra.mxu0 %vm608_vm8, %v792_v60 }
 0x5ac   : > { %1204 = vmatpush.msrb.mxu0 %v1181_v32 }
 0x5ae   : > { %1430 = vmatmul.msk.f32.gmra.mxu3 %vm642_vm9, %v1047_v61  ;;  %1205 = vmatpush.msrb.mxu0 %v1180_v33 }
 0x5b0   : > { %1206 = vmatpush.msrb.mxu0 %v1179_v34  ;;  %v1492_v34 = vld [vmem:[%s1909_s12] ss:$0 sm:$0xff] }
 0x5b2   : > { %v795_v62 = vpop.f32.mrf.mxu2  ;;  %1207 = vmatpush.msrb.mxu0 %v1178_v35 }
 0x5b3   : > { %1414 = vmatmul.msk.f32.gmra.mxu0 %vm608_vm8, %v795_v62 }
 0x5bb   : > { %v948_v63 = vpop.f32.mrf.mxu2 }
 0x5bc   : > { %1423 = vmatmul.msk.f32.vlgmr.msra.gmra.mxu0 %vm608_vm8, %v948_v63 }
 0x628   : > { %v821_v6 = vpop.f32.mrf.mxu0 }
 0x629   : > { %v1077_v1 = vpop.f32.mrf.mxu3  ;;  %v851_v9 = vadd.f32 %v1762_v52, %v821_v6  ;;  %v1238_v6 = vld [vmem:[%s1908_s11 + $0x28] sm:$0xff] }
 0x62a   : > { %v951_v3 = vpop.f32.mrf.mxu2  ;;  %1431 = vmatmul.msk.f32.vlgmr.msrb.gmra.mxu2 %vm608_vm8, %v1077_v1 }
 0x62b   : > { %1424 = vmatmul.msk.f32.gmra.mxu0 %vm608_vm8, %v951_v3  ;;  %v1240_v3 = vld [vmem:[%s1908_s11 + $0x38] sm:$0xff] }
 0x62c   : > { %1260 = vmatpush.msrb.mxu1 %v1240_v3 }
 0x630   : > { %v824_v7 = vpop.f32.mrf.mxu0 }
 0x631   : > { %v1080_v5 = vpop.f32.mrf.mxu3  ;;  %v854_v17 = vadd.f32 %v1764_v53, %v824_v7  ;;  %v1237_v7 = vld [vmem:[%s1908_s11 + $0x20] sm:$0xff] }
 0x632   : > { %1432 = vmatmul.msk.f32.gmra.mxu2 %vm608_vm8, %v1080_v5  ;;  %v1239_v5 = vld [vmem:[%s1908_s11 + $0x30] sm:$0xff] }
 0x633   : > { %1261 = vmatpush.msrb.mxu1 %v1239_v5  ;;  %v1493_v5 = vld [vmem:[%s1910_s13] ss:$0 sm:$0xff] }
 0x635   : > { %1262 = vmatpush.msrb.mxu1 %v1238_v6 }
 0x637   : > { %1263 = vmatpush.msrb.mxu1 %v1237_v7  ;;  %v1494_v7 = vld [vmem:[%s1911_s14] ss:$0 sm:$0xff] }
 0x639   : > { %v977_v8 = vpop.f32.mrf.mxu0 }
 0x63a   : > { %v983_v11 = vadd.f32 %v977_v8, %v851_v9  ;;  %v1236_v8 = vld [vmem:[%s1908_s11 + $0x18] sm:$0xff]  ;;  %v1235_v9 = vld [vmem:[%s1908_s11 + $0x10] sm:$0xff] }
 0x63b   : > { %1264 = vmatpush.msrb.mxu1 %v1236_v8 }
 0x63d   : > { %1265 = vmatpush.msrb.mxu1 %v1235_v9 }
 0x6a8   : > { %v980_v16 = vpop.f32.mrf.mxu0 }
 0x6a9   : > { %v984_v19 = vadd.f32 %v980_v16, %v854_v17 }
 0x6ad   : > { %v1106_v12 = vpop.f32.mrf.mxu2 }
 0x6ae   : > { %v1112_v13 = vadd.f32 %v1106_v12, %v983_v11  ;;  %v1234_v11 = vld [vmem:[%s1908_s11 + $0x8] sm:$0xff]  ;;  %v1233_v12 = vld [vmem:[%s1908_s11] sm:$0xff] }
 0x6af   : > { %1266 = vmatpush.msrb.mxu1 %v1234_v11 }
 0x6b0   : > { %v1114_v15 = vadd.f32 %v1112_v13, %v1665_v2  ;;  %v1491_v13 = vld [vmem:[%s1907_s10] ss:$0 sm:$0xff] }
 0x6b1   : > { %1267 = vmatpush.msrb.mxu1 %v1233_v12 }
 0x6b2   : > { %v1804_v18 = vadd.f32 %v1488_v14, %v1114_v15 }
 0x6b4   : > { %v1124_v20 = vsel %vm499_vm0, %v1804_v18, 0.0 }
 0x6b5   : > { %1125 = vadd.xlane.f32.xlu0 %v1124_v20  ;;  %v1109_v52 = vpop.f32.mrf.mxu2 }
 0x6b6   : > { %v1113_v21 = vadd.f32 %v1109_v52, %v984_v19 }
 0x6b8   : > { %v1115_v22 = vadd.f32 %v1113_v21, %v1661_v0 }
 0x6ba   : > { %v1809_v23 = vadd.f32 %v1488_v14, %v1115_v22 }
 0x6bc   : > { %v1127_v24 = vsel %vm499_vm0, %v1809_v23, 0.0 }
 0x6bd   : > { %1128 = vadd.xlane.f32.xlu2 %v1127_v24 }
 0x728   : > { %v1126_v2 = vpop.xlane.xlu0 %1125 }
 0x729   : > { %v1130_v53 = vmul.f32 %v1126_v2, %v1669_v10 }
 0x72b   : > { %v1132_v25 = vsub.f32 %v1804_v18, %v1130_v53 }
 0x72d   : > { %v1134_v26 = vmul.f32 %v1132_v25, %v1132_v25 }
 0x72f   : > { %v1136_v27 = vsel %vm499_vm0, %v1134_v26, 0.0 }
 0x730   : > { %1137 = vadd.xlane.f32.xlu1 %v1136_v27  ;;  %v1129_v28 = vpop.xlane.xlu2 %1128 }
 0x731   : > { %v1131_v29 = vmul.f32 %v1129_v28, %v1669_v10 }
 0x733   : > { %v1133_v0 = vsub.f32 %v1809_v23, %v1131_v29 }
 0x735   : > { %v1135_v30 = vmul.f32 %v1133_v0, %v1133_v0 }
 0x737   : > { %v1139_v31 = vsel %vm499_vm0, %v1135_v30, 0.0 }
 0x738   : > { %1140 = vadd.xlane.f32.xlu1 %v1139_v31 }
 0x7a3   : > { %v1138_v36 = vpop.xlane.xlu1 %1137 }
 0x7a4   : > { %v1142_v37 = vmul.f32 %v1138_v36, %v1669_v10 }
 0x7a6   : > { %v1144_v38 = vadd.f32 1e-06, %v1142_v37 }
 0x7a8   : > { %1533 = vrsqrt.f32 %v1144_v38  ;;  %vm1152_vm11 = vweird.f32 %v1144_v38 }
 0x7ab   : > { %v1141_v39 = vpop.xlane.xlu1 %1140 }
 0x7ac   : > { %v1143_v40 = vmul.f32 %v1141_v39, %v1669_v10 }
 0x7ae   : > { %v1534_v41 = vpop.eup %1533  ;;  %v1145_v42 = vadd.f32 1e-06, %v1143_v40 }
 0x7af   : > { %v1147_v43 = vmul.f32 %v1534_v41, %v1144_v38  ;;  %vm1153_vm10 = vweird.f32 %v1534_v41 }
 0x7b0   : > { %1535 = vrsqrt.f32 %v1145_v42  ;;  %vm1154_vm12 = vmor %vm1152_vm11, %vm1153_vm10  ;;  %vm1162_vm14 = vweird.f32 %v1145_v42 }
 0x7b1   : > { %v1148_v44 = vmul.f32 %v1534_v41, %v1147_v43 }
 0x7b3   : > { %v1149_v45 = vmul.f32 0.5, %v1148_v44 }
 0x7b5   : > { %v1150_v46 = vsub.f32 1.5, %v1149_v45 }
 0x7b6   : > { %v1536_v47 = vpop.eup %1535 }
 0x7b7   : > { %v1151_v48 = vmul.f32 %v1534_v41, %v1150_v46  ;;  %v1157_v4 = vmul.f32 %v1536_v47, %v1145_v42  ;;  %vm1163_vm13 = vweird.f32 %v1536_v47 }
 0x7b8   : > { %vm1164_vm15 = vmor %vm1162_vm14, %vm1163_vm13 }
 0x7b9   : > { %v1155_v50 = vsel %vm1154_vm12, %v1534_v41, %v1151_v48  ;;  %v1158_v51 = vmul.f32 %v1536_v47, %v1157_v4 }
 0x7ba   : > { %v1166_v54 = vmul.f32 %v1155_v50, %v1132_v25 }
 0x7bb   : > { %v1159_v56 = vmul.f32 0.5, %v1158_v51 }
 0x7bc   : > { %v1171_v57 = vmul.f32 %v1489_v49, %v1166_v54 }
 0x7bd   : > { %v1160_v58 = vsub.f32 1.5, %v1159_v56 }
 0x7be   : > { %v1176_v59 = vadd.f32 %v1490_v55, %v1171_v57 }
 0x7bf   : > { %v1161_v60 = vmul.f32 %v1536_v47, %v1160_v58 }
 0x7c0   : > { %1433 = vmatmul.msk.f32.vlgmr.msrb.gmra.mxu0 %vm499_vm0, %v1176_v59 }
 0x7c1   : > { %v1165_v61 = vsel %vm1164_vm15, %v1536_v47, %v1161_v60 }
 0x7c2   : > { %v1167_v62 = vmul.f32 %v1165_v61, %v1133_v0 }
 0x7c4   : > { %v1172_v63 = vmul.f32 %v1489_v49, %v1167_v62 }
 0x7c6   : > { %v1177_v1 = vadd.f32 %v1490_v55, %v1172_v63 }
 0x7c8   : > { %1434 = vmatmul.msk.f32.gmra.mxu0 %vm499_vm0, %v1177_v1 }
 0x83d   : > { %v1209_v14 = vpop.f32.mrf.mxu0 }
 0x83e   : > { %v1210_v15 = vadd.f32 %v1491_v13, %v1209_v14 }
 0x840   : > { %v1215_v16 = vmul.f32 %v1210_v15, %v1210_v15 }
 0x842   : > { %v1217_v17 = vmul.f32 %v1215_v16, %v1210_v15 }
 0x844   : > { %v1219_v19 = vmul.f32 0.044715, %v1217_v17 }
 0x845   : > { %v1212_v20 = vpop.f32.mrf.mxu0 }
 0x846   : > { %v1221_v52 = vadd.f32 %v1219_v19, %v1210_v15  ;;  %v1213_v21 = vadd.f32 %v1491_v13, %v1212_v20 }
 0x848   : > { %v1223_v22 = vmul.f32 0.7978846, %v1221_v52  ;;  %v1216_v24 = vmul.f32 %v1213_v21, %v1213_v21 }
 0x84a   : > { %1537 = vtanh.f32 %v1223_v22  ;;  %v1218_v2 = vmul.f32 %v1216_v24, %v1213_v21 }
 0x84c   : > { %v1220_v53 = vmul.f32 0.044715, %v1218_v2 }
 0x84e   : > { %v1222_v25 = vadd.f32 %v1220_v53, %v1213_v21 }
 0x850   : > { %v1538_v26 = vpop.eup %1537  ;;  %v1224_v27 = vmul.f32 0.7978846, %v1222_v25 }
 0x851   : > { %v1227_v28 = vadd.f32 1.0, %v1538_v26 }
 0x852   : > { %1539 = vtanh.f32 %v1224_v27 }
 0x853   : > { %v1229_v29 = vmul.f32 0.5, %v1227_v28 }
 0x855   : > { %v1231_v0 = vmul.f32 %v1229_v29, %v1210_v15 }
 0x857   : > { %1435 = vmatmul.msk.f32.vlgmr.msrb.gmra.mxu1 %vm1245_vm1, %v1231_v0 }
 0x858   : > { %v1540_v30 = vpop.eup %1539 }
 0x859   : > { %v1228_v31 = vadd.f32 1.0, %v1540_v30 }
 0x85b   : > { %v1230_v32 = vmul.f32 0.5, %v1228_v31 }
 0x85d   : > { %v1232_v33 = vmul.f32 %v1230_v32, %v1213_v21 }
 0x85f   : > { %1436 = vmatmul.msk.f32.gmra.mxu1 %vm1245_vm1, %v1232_v33 }
 0x8d4   : > { %v1269_v35 = vpop.f32.mrf.mxu1 }
 0x8d5   : > { %v1270_v36 = vadd.f32 %v1492_v34, %v1269_v35 }
 0x8d7   : > { %v1275_v37 = vadd.f32 %v1270_v36, %v1804_v18 }
 0x8d9   : > { %v1279_v38 = vsel %vm499_vm0, %v1275_v37, 0.0 }
 0x8da   : > { %1280 = vadd.xlane.f32.xlu1 %v1279_v38 }
 0x8dc   : > { %v1272_v39 = vpop.f32.mrf.mxu1 }
 0x8dd   : > { %v1273_v40 = vadd.f32 %v1492_v34, %v1272_v39 }
 0x8df   : > { %v1276_v41 = vadd.f32 %v1273_v40, %v1809_v23 }
 0x8e1   : > { %v1282_v42 = vsel %vm499_vm0, %v1276_v41, 0.0 }
 0x8e2   : > { %1283 = vadd.xlane.f32.xlu1 %v1282_v42 }
 0x94d   : > { %v1281_v43 = vpop.xlane.xlu1 %1280 }
 0x94e   : > { %v1285_v44 = vmul.f32 %v1281_v43, %v1669_v10 }
 0x950   : > { %v1287_v45 = vsub.f32 %v1275_v37, %v1285_v44 }
 0x952   : > { %v1289_v46 = vmul.f32 %v1287_v45, %v1287_v45 }
 0x954   : > { %v1291_v47 = vsel %vm499_vm0, %v1289_v46, 0.0 }
 0x955   : > { %1292 = vadd.xlane.f32.xlu1 %v1291_v47  ;;  %v1284_v48 = vpop.xlane.xlu1 %1283 }
 0x956   : > { %v1286_v18 = vmul.f32 %v1284_v48, %v1669_v10 }
 0x958   : > { %v1288_v4 = vsub.f32 %v1276_v41, %v1286_v18 }
 0x95a   : > { %v1290_v49 = vmul.f32 %v1288_v4, %v1288_v4 }
 0x95c   : > { %v1294_v50 = vsel %vm499_vm0, %v1290_v49, 0.0 }
 0x95d   : > { %1295 = vadd.xlane.f32.xlu1 %v1294_v50 }
 0x9c8   : > { %v1293_v23 = vpop.xlane.xlu1 %1292 }
 0x9c9   : > { %v1297_v51 = vmul.f32 %v1293_v23, %v1669_v10 }
 0x9cb   : > { %v1299_v54 = vadd.f32 1e-06, %v1297_v51 }
 0x9cd   : > { %1541 = vrsqrt.f32 %v1299_v54  ;;  %vm1307_vm3 = vweird.f32 %v1299_v54 }
 0x9d0   : > { %v1296_v55 = vpop.xlane.xlu1 %1295 }
 0x9d1   : > { %v1298_v56 = vmul.f32 %v1296_v55, %v1669_v10 }
 0x9d3   : > { %v1542_v57 = vpop.eup %1541  ;;  %v1300_v58 = vadd.f32 1e-06, %v1298_v56 }
 0x9d4   : > { %v1302_v59 = vmul.f32 %v1542_v57, %v1299_v54  ;;  %vm1308_vm2 = vweird.f32 %v1542_v57 }
 0x9d5   : > { %1543 = vrsqrt.f32 %v1300_v58  ;;  %vm1309_vm4 = vmor %vm1307_vm3, %vm1308_vm2  ;;  %vm1317_vm6 = vweird.f32 %v1300_v58 }
 0x9d6   : > { %v1303_v60 = vmul.f32 %v1542_v57, %v1302_v59 }
 0x9d8   : > { %v1304_v61 = vmul.f32 0.5, %v1303_v60 }
 0x9da   : > { %v1305_v62 = vsub.f32 1.5, %v1304_v61 }
 0x9db   : > { %v1544_v63 = vpop.eup %1543 }
 0x9dc   : > { %v1306_v1 = vmul.f32 %v1542_v57, %v1305_v62  ;;  %v1312_v3 = vmul.f32 %v1544_v63, %v1300_v58  ;;  %vm1318_vm5 = vweird.f32 %v1544_v63 }
 0x9dd   : > { %vm1319_vm7 = vmor %vm1317_vm6, %vm1318_vm5 }
 0x9de   : > { %v1310_v6 = vsel %vm1309_vm4, %v1542_v57, %v1306_v1  ;;  %v1313_v10 = vmul.f32 %v1544_v63, %v1312_v3 }
 0x9df   : > { %v1321_v8 = vmul.f32 %v1310_v6, %v1287_v45 }
 0x9e0   : > { %v1314_v9 = vmul.f32 0.5, %v1313_v10 }
 0x9e1   : > { %v1326_v11 = vmul.f32 %v1493_v5, %v1321_v8 }
 0x9e2   : > { %v1315_v12 = vsub.f32 1.5, %v1314_v9 }
 0x9e3   : > { %v1331_v13 = vadd.f32 %v1494_v7, %v1326_v11 }
 0x9e4   : > { %v1316_v14 = vmul.f32 %v1544_v63, %v1315_v12 }
 0x9e5   : > { %1333 = vst.msk [vmem:[%s494_s25] sm:$0xff] %vm499_vm0, %v1331_v13 }
 0x9e6   : > { %v1320_v15 = vsel %vm1319_vm7, %v1544_v63, %v1316_v14 }
 0x9e7   : > { %v1322_v16 = vmul.f32 %v1320_v15, %v1288_v4 }
 0x9e9   : > { %v1327_v17 = vmul.f32 %v1493_v5, %v1322_v16 }
 0x9eb   : > { %v1332_v19 = vadd.f32 %v1494_v7, %v1327_v17 }
 0x9ed   : > { %1334 = vst.msk [vmem:[%s494_s25 + $0x8] sm:$0xff] %vm499_vm0, %v1332_v19 }
 0x9ee PF: > { %s25_s18 = sadd.s32 1, %s1551_s18  }
 0x9ef   : > { %p22_p4 = scmp.ge.s32.totalorder %s25_s18, 4  }
 0x9f1   :  { %24 = sbr.rel (!%p22_p4) target bundleno = 1 (0x1), region = 110 }

// kernel: transinvnet_forward.20
= control target key start
LH: loop header
LB: loop body
LE: loop exit
PB: predicated region body
PF: predicated region fallthrough
CT: control target
= control target key end

     0   :  { %s1583_s18 = smov 0   ;;  %s1821_s0 = inlined_call_operand.vmem [shape: f32[2,16,32], index: 0, kind: input, shape index: {}]   ;;  %s1822_s1 = inlined_call_operand.vmem [shape: f32[1,32], index: 1, kind: input, shape index: {}]   ;;  %s1823_s2 = inlined_call_operand.vmem [shape: f32[1,32], index: 2, kind: input, shape index: {}]   ;;  %s1824_s3 = inlined_call_operand.vmem [shape: f32[32,96], index: 3, kind: input, shape index: {}]   ;;  %s1825_s4 = inlined_call_operand.vmem [shape: f32[1,96], index: 4, kind: input, shape index: {}]   ;;  %s1826_s5 = inlined_call_operand.vmem [shape: f32[32,32], index: 5, kind: input, shape index: {}]   ;;  %s1827_s6 = inlined_call_operand.vmem [shape: f32[1,32], index: 6, kind: input, shape index: {}]   ;;  %s1828_s7 = inlined_call_operand.vmem [shape: f32[1,32], index: 7, kind: input, shape index: {}]   ;;  %s1829_s8 = inlined_call_operand.vmem [shape: f32[1,32], index: 8, kind: input, shape index: {}]   ;;  %s1830_s9 = inlined_call_operand.vmem [shape: f32[32,64], index: 9, kind: input, shape index: {}]   ;;  %s1831_s10 = inlined_call_operand.vmem [shape: f32[1,64], index: 10, kind: input, shape index: {}]   ;;  %s1832_s11 = inlined_call_operand.vmem [shape: f32[64,32], index: 11, kind: input, shape index: {}]   ;;  %s1833_s12 = inlined_call_operand.vmem [shape: f32[1,32], index: 12, kind: input, shape index: {}]   ;;  %s1834_s13 = inlined_call_operand.vmem [shape: f32[1,32], index: 13, kind: input, shape index: {}]   ;;  %s1835_s14 = inlined_call_operand.vmem [shape: f32[1,32], index: 14, kind: input, shape index: {}]   ;;  %s1836_s15 = inlined_call_operand.vmem [shape: f32[2,16,32], index: 15, kind: output, shape index: {}]  }
   0x1 LB: > { %s1334_s19 = sadd.s32 4294967295, %s1489_s18   ;;  %p1338_p0 = scmp.ge.s32.totalorder %s1489_s18, 1  ;;  %s1489_s18 = sphi %s1583_s18, %s25_s18  }
   0x2   : > { %p437_p1 = scmp.lt.s32.totalorder %s1489_s18, 3 }
   0x4   : > { %p438_p2 = pnand %p1338_p0, %p437_p1 }
   0x5   : > { %p485_p3 = scmp.lt.s32.totalorder (!%p438_p2), %s1334_s19, 1  ;;  %s1492_s22 = smov (!%p438_p2), 96  }
   0x6   : > { %441 = sbr.rel (%p438_p2) target bundleno = 2274 (0x8e2), region = 80  ;;  %s1493_s23 = smov (!%p438_p2), 64  }
   0x7   : > { %s1494_s24 = smov (!%p438_p2), 88   ;;  %s1495_s25 = smov (!%p438_p2), 120  }
   0x8   : > { %s1496_s26 = smov (!%p438_p2), 72   ;;  %s1497_s27 = smov (!%p438_p2), 104  }
   0x9   : > { %s1498_s30 = smov (!%p438_p2), 80   ;;  %s1499_s16 = smov (!%p438_p2), 112  }
   0xa   : > { %s1500_s17 = smov (!%p438_p2), 56   ;;  %s1501_s14 = smov (!%p438_p2), 48  }
   0xb   : > { %s1838_s19 = smov (!%p485_p3, %s1334_s19), 1  ;;  %vm499_vm0 = vcmask 261120   ;;  %v1491_v4 = vmov 32.0   ;;  %v564_v21 = vld [vmem:[%s1824_s3 + $0x18] sm:$0xff]  ;;  %v563_v22 = vld [vmem:[%s1824_s3 + $0x10] sm:$0xff]  ;;  %v562_v23 = vld [vmem:[%s1824_s3 + $0x8] sm:$0xff] }
   0xc   : > { %s1383_s13 = sshll.u32 %s1838_s19, 4  ;;  %1437 = vrcp.f32 %v1491_v4  ;;  %1385 = vmatpush.msra.mxu3 %v564_v21  ;;  %587 = vmatpush.msra.mxu0 %v564_v21  ;;  %v561_v24 = vld [vmem:[%s1824_s3] sm:$0xff]  ;;  %vm608_vm8 = vcmask 64512   ;;  %vm642_vm9 = vcmask 130048   ;;  %s1502_s20 = smov 40  }
   0xd   : > { %s489_s21 = scalar_lea.vmem %s1821_s0, %s1383_s13  ;;  %v1429_v39 = vld [vmem:[%s1822_s1] ss:$0 sm:$0xff] }
   0xe   : > { %v1599_v0 = vld [vmem:[%s489_s21 + $0x8] sm:$0xff]  ;;  %v1603_v2 = vld [vmem:[%s489_s21] sm:$0xff]  ;;  %1386 = vmatpush.msra.mxu3 %v563_v22  ;;  %588 = vmatpush.msra.mxu0 %v563_v22  ;;  %s494_s21 = scalar_lea.vmem %s1836_s15, %s1383_s13 }
   0xf   : > { %v503_v1 = vsel %vm499_vm0, %v1599_v0, 0.0  ;;  %v500_v3 = vsel %vm499_vm0, %v1603_v2, 0.0  ;;  %v1430_v43 = vld [vmem:[%s1823_s2] ss:$0 sm:$0xff] }
  0x10   : > { %504 = vadd.xlane.f32.xlu0 %v503_v1  ;;  %1387 = vmatpush.msra.mxu3 %v562_v23  ;;  %v1431_v53 = vld [vmem:[%s1825_s4] ss:$0 sm:$0xff] }
  0x11   : > { %589 = vmatpush.msra.mxu0 %v562_v23 }
  0x12   : > { %v1438_v5 = vpop.eup %1437  ;;  %1388 = vmatpush.msra.mxu3 %v561_v24 }
  0x13   : > { %v507_v6 = vmul.f32 32.0, %v1438_v5  ;;  %vm511_vm1 = vweird.f32 %v1438_v5  ;;  %590 = vmatpush.msra.mxu0 %v561_v24 }
  0x15   : > { %v508_v7 = vsub.f32 1.0, %v507_v6 }
  0x17   : > { %v509_v8 = vmul.f32 %v1438_v5, %v508_v7 }
  0x18   : > { %501 = vadd.xlane.f32.xlu0 %v500_v3 }
  0x19   : > { %v510_v9 = vadd.f32 %v1438_v5, %v509_v8  ;;  %v598_v8 = vld [vmem:[%s1826_s5] sm:$0xff] }
  0x1b   : > { %v1607_v10 = vsel %vm511_vm1, %v1438_v5, %v510_v9  ;;  %vm1245_vm1 = vcmask 523264  }
  0x83   : > { %v505_v11 = vpop.xlane.xlu0 %504 }
  0x84   : > { %v514_v12 = vmul.f32 %v1607_v10, %v505_v11 }
  0x86   : > { %v516_v13 = vsub.f32 %v1599_v0, %v514_v12 }
  0x88   : > { %v518_v14 = vmul.f32 %v516_v13, %v516_v13 }
  0x8a   : > { %v522_v15 = vsel %vm499_vm0, %v518_v14, 0.0 }
  0x8b   : > { %523 = vadd.xlane.f32.xlu1 %v522_v15  ;;  %v502_v16 = vpop.xlane.xlu0 %501 }
  0x8c   : > { %v513_v17 = vmul.f32 %v1607_v10, %v502_v16 }
  0x8e   : > { %v515_v18 = vsub.f32 %v1603_v2, %v513_v17 }
  0x90   : > { %v517_v19 = vmul.f32 %v515_v18, %v515_v18 }
  0x92   : > { %v519_v20 = vsel %vm499_vm0, %v517_v19, 0.0 }
  0x93   : > { %520 = vadd.xlane.f32.xlu1 %v519_v20 }
  0xfe   : > { %v524_v25 = vpop.xlane.xlu1 %523 }
  0xff   : > { %v526_v26 = vmul.f32 %v524_v25, %v1607_v10 }
 0x101   : > { %v528_v27 = vadd.f32 1e-06, %v526_v26 }
 0x103   : > { %1439 = vrsqrt.f32 %v528_v27  ;;  %vm545_vm3 = vweird.f32 %v528_v27 }
 0x106   : > { %v521_v28 = vpop.xlane.xlu1 %520 }
 0x107   : > { %v525_v29 = vmul.f32 %v521_v28, %v1607_v10 }
 0x109   : > { %v1440_v30 = vpop.eup %1439  ;;  %v527_v31 = vadd.f32 1e-06, %v525_v29 }
 0x10a   : > { %v540_v32 = vmul.f32 %v1440_v30, %v528_v27  ;;  %vm546_vm2 = vweird.f32 %v1440_v30 }
 0x10b   : > { %1441 = vrsqrt.f32 %v527_v31  ;;  %vm547_vm4 = vmor %vm545_vm3, %vm546_vm2  ;;  %vm535_vm5 = vweird.f32 %v527_v31 }
 0x10c   : > { %v541_v33 = vmul.f32 %v1440_v30, %v540_v32 }
 0x10e   : > { %v542_v34 = vmul.f32 0.5, %v541_v33 }
 0x110   : > { %v543_v35 = vsub.f32 1.5, %v542_v34 }
 0x111   : > { %v1442_v36 = vpop.eup %1441 }
 0x112   : > { %v544_v37 = vmul.f32 %v1440_v30, %v543_v35  ;;  %v530_v38 = vmul.f32 %v1442_v36, %v527_v31  ;;  %vm536_vm6 = vweird.f32 %v1442_v36 }
 0x113   : > { %vm537_vm7 = vmor %vm535_vm5, %vm536_vm6 }
 0x114   : > { %v548_v40 = vsel %vm547_vm4, %v1440_v30, %v544_v37  ;;  %v531_v41 = vmul.f32 %v1442_v36, %v530_v38 }
 0x115   : > { %v550_v42 = vmul.f32 %v548_v40, %v516_v13 }
 0x116   : > { %v532_v44 = vmul.f32 0.5, %v531_v41 }
 0x117   : > { %v555_v45 = vmul.f32 %v1429_v39, %v550_v42 }
 0x118   : > { %v533_v46 = vsub.f32 1.5, %v532_v44 }
 0x119   : > { %v560_v47 = vadd.f32 %v1430_v43, %v555_v45 }
 0x11a   : > { %v534_v48 = vmul.f32 %v1442_v36, %v533_v46 }
 0x11b   : > { %1344 = vmatmul.msk.f32.vlgmr.msra.gmra.mxu3 %vm499_vm0, %v560_v47 }
 0x11c   : > { %v538_v49 = vsel %vm537_vm7, %v1442_v36, %v534_v48 }
 0x11d   : > { %v549_v50 = vmul.f32 %v538_v49, %v515_v18 }
 0x11f   : > { %v554_v51 = vmul.f32 %v1429_v39, %v549_v50 }
 0x121   : > { %v559_v52 = vadd.f32 %v1430_v43, %v554_v51 }
 0x123   : > { %1343 = vmatmul.msk.f32.vlgmr.msra.gmra.mxu0 %vm499_vm0, %v559_v52 }
 0x19e   : > { %v595_v54 = vpop.f32.mrf.mxu3 }
 0x19f   : > { %v1640_v55 = vadd.f32 %v1431_v53, %v595_v54 }
 0x1a0   : > { %v592_v56 = vpop.f32.mrf.mxu0 }
 0x1a1   : > { %606 = vrot.lane.b32.xlu2 %v1640_v55, %s1492_s22  ;;  %v1643_v57 = vadd.f32 %v1431_v53, %v592_v56 }
 0x1a3   : > { %v1656_v4 = vpack.i.bf16 %v1643_v57, %v1640_v55 }
 0x1a9   : > { %604 = vrot.lane.b32.xlu2 %v1643_v57, %s1492_s22 }
 0x1fb   : > { %v607_v58 = vpop.permute.xlu2 %606 }
 0x1fc   : > { %1345 = vmatpush.xpose.msk.msra.mxu1 %vm608_vm8, %v607_v58 }
 0x203   : > { %v605_v59 = vpop.permute.xlu2 %604 }
 0x204   : > { %1346 = vmatpush.xpose.msk.msra.mxu1 %vm608_vm8, %v605_v59 }
 0x207   : > { %1347 = vmatmul.msk.f32.vlgmr.msra.gmra.mxu1 %vm608_vm8, %v1643_v57 }
 0x208   : > { %848 = vmatpush.msrb.mxu1 %v598_v8 }
 0x20f   : > { %1348 = vmatmul.msk.f32.gmra.mxu1 %vm608_vm8, %v1640_v55 }
 0x284   : > { %v634_v60 = vpop.f32.mrf.mxu1 }
 0x285   : > { %v640_v61 = vmul.f32 0.35355338, %v634_v60 }
 0x287   : > { %v643_v62 = vsel %vm642_vm9, %v640_v61, -inf }
 0x288   : > { %644 = vmax.xlane.f32.xlu0 %v643_v62 }
 0x28c   : > { %v637_v63 = vpop.f32.mrf.mxu1 }
 0x28d   : > { %v641_v1 = vmul.f32 0.35355338, %v637_v63 }
 0x28f   : > { %v646_v3 = vsel %vm642_vm9, %v641_v1, -inf }
 0x290   : > { %647 = vmax.xlane.f32.xlu1 %v646_v3 }
 0x29c   : > { %1410 = vrot.lane.b32.xlu0 %v1656_v4, %s1493_s23 }
 0x2a4   : > { %704 = vrot.lane.b32.xlu0 %v1643_v57, %s1494_s24 }
 0x2ac   : > { %700 = vrot.lane.b32.xlu0 %v1643_v57, %s1495_s25 }
 0x2b4   : > { %991 = vrot.lane.b32.xlu0 %v1640_v55, %s1496_s26 }
 0x2bc   : > { %989 = vrot.lane.b32.xlu0 %v1643_v57, %s1496_s26 }
 0x2c4   : > { %985 = vrot.lane.b32.xlu0 %v1643_v57, %s1497_s27 }
 0x2fb   : > { %v645_v5 = vpop.xlane.xlu0 %644 }
 0x2fc   : > { %v649_v6 = vsub.f32 %v640_v61, %v645_v5 }
 0x2fe   : > { %v651_v7 = vmul.f32 1.442695, %v649_v6 }
 0x300   : > { %1443 = vpow2.f32 %v651_v7 }
 0x303   : > { %v648_v9 = vpop.xlane.xlu1 %647 }
 0x304   : > { %v650_v11 = vsub.f32 %v641_v1, %v648_v9 }
 0x306   : > { %v1444_v12 = vpop.eup %1443  ;;  %v653_v13 = vmul.f32 1.442695, %v650_v11 }
 0x307   : > { %v655_v14 = vsel %vm642_vm9, %v1444_v12, 0.0 }
 0x308   : > { %1445 = vpow2.f32 %v653_v13  ;;  %656 = vadd.xlane.f32.xlu2 %v655_v14 }
 0x30e   : > { %v1446_v15 = vpop.eup %1445  ;;  %v1411_v16 = vpop.permute.xlu0 %1410 }
 0x30f   : > { %v658_v17 = vsel %vm642_vm9, %v1446_v15, 0.0  ;;  %v1412_v18 = vunpack.i.l.bf16 %v1411_v16  ;;  %v1413_v19 = vunpack.i.h.bf16 %v1411_v16 }
 0x310   : > { %659 = vadd.xlane.f32.xlu1 %v658_v17 }
 0x311   : > { %691 = vmatpush.msra.mxu2 %v1412_v18 }
 0x313   : > { %692 = vmatpush.msra.mxu2 %v1413_v19 }
 0x316   : > { %v705_v20 = vpop.permute.xlu0 %704 }
 0x31e   : > { %v701_v21 = vpop.permute.xlu0 %700 }
 0x320   : > { %862 = vrot.lane.b32.xlu2 %v1640_v55, %s1498_s30 }
 0x326   : > { %v992_v22 = vpop.permute.xlu0 %991 }
 0x327   : > { %1369 = vmatpush.xpose.msk.msra.mxu1 %vm608_vm8, %v992_v22 }
 0x328   : > { %987 = vrot.lane.b32.xlu2 %v1640_v55, %s1497_s27 }
 0x329   : > { %706 = vrot.lane.b32.xlu1 %v1640_v55, %s1494_s24 }
 0x32e   : > { %v990_v23 = vpop.permute.xlu0 %989 }
 0x32f   : > { %1370 = vmatpush.xpose.msk.msra.mxu1 %vm608_vm8, %v990_v23 }
 0x331   : > { %702 = vrot.lane.b32.xlu1 %v1640_v55, %s1495_s25 }
 0x336   : > { %v986_v38 = vpop.permute.xlu0 %985 }
 0x339   : > { %860 = vrot.lane.b32.xlu1 %v1643_v57, %s1498_s30 }
 0x341   : > { %856 = vrot.lane.b32.xlu1 %v1643_v57, %s1499_s16 }
 0x349   : > { %858 = vrot.lane.b32.xlu1 %v1640_v55, %s1499_s16 }
 0x37b   : > { %v657_v24 = vpop.xlane.xlu2 %656 }
 0x37c   : > { %1447 = vrcp.f32 %v657_v24 }
 0x382   : > { %v1448_v25 = vpop.eup %1447 }
 0x383   : > { %v660_v26 = vpop.xlane.xlu1 %659  ;;  %v663_v27 = vmul.f32 %v1448_v25, %v1444_v12  ;;  %v863_v31 = vpop.permute.xlu2 %862 }
 0x384   : > { %1449 = vrcp.f32 %v660_v26 }
 0x385   : > { %1349 = vmatmul.msk.f32.vlgmr.msra.gmra.mxu2 %vm642_vm9, %v663_v27 }
 0x38a   : > { %v1450_v28 = vpop.eup %1449 }
 0x38b   : > { %v664_v29 = vmul.f32 %v1450_v28, %v1446_v15  ;;  %v988_v39 = vpop.permute.xlu2 %987 }
 0x38d   : > { %1350 = vmatmul.msk.f32.gmra.mxu2 %vm642_vm9, %v664_v29 }
 0x39b   : > { %v707_v30 = vpop.permute.xlu1 %706 }
 0x39c   : > { %1351 = vmatpush.xpose.msk.msrb.mxu3 %vm608_vm8, %v707_v30 }
 0x3a0   : > { %1352 = vmatpush.xpose.msk.msrb.mxu3 %vm608_vm8, %v705_v20 }
 0x3a3   : > { %1353 = vmatmul.msk.f32.vlgmr.msrb.gmra.mxu3 %vm608_vm8, %v701_v21  ;;  %v703_v32 = vpop.permute.xlu1 %702 }
 0x3a4   : > { %1361 = vmatpush.xpose.msk.msra.mxu3 %vm608_vm8, %v863_v31 }
 0x3ab   : > { %1354 = vmatmul.msk.f32.gmra.mxu3 %vm608_vm8, %v703_v32  ;;  %v861_v33 = vpop.permute.xlu1 %860 }
 0x3ac   : > { %1362 = vmatpush.xpose.msk.msra.mxu3 %vm608_vm8, %v861_v33 }
 0x3b3   : > { %v857_v34 = vpop.permute.xlu1 %856 }
 0x3b4   : > { %1363 = vmatmul.msk.f32.vlgmr.msra.gmra.mxu3 %vm608_vm8, %v857_v34 }
 0x3bb   : > { %v859_v35 = vpop.permute.xlu1 %858 }
 0x3bc   : > { %1364 = vmatmul.msk.f32.gmra.mxu3 %vm608_vm8, %v859_v35 }
 0x408   : > { %v694_v36 = vpop.f32.mrf.mxu2 }
 0x409   : > { %1359 = vmatmul.msk.f32.vlgmr.msrb.gmra.mxu1 %vm608_vm8, %v694_v36 }
 0x410   : > { %v697_v37 = vpop.f32.mrf.mxu2 }
 0x411   : > { %1360 = vmatmul.msk.f32.gmra.mxu1 %vm608_vm8, %v697_v37 }
 0x419   : > { %1371 = vmatmul.msk.f32.vlgmr.msra.gmra.mxu1 %vm608_vm8, %v986_v38 }
 0x421   : > { %1372 = vmatmul.msk.f32.gmra.mxu1 %vm608_vm8, %v988_v39 }
 0x426   : > { %v733_v40 = vpop.f32.mrf.mxu3 }
 0x427   : > { %v739_v41 = vmul.f32 0.35355338, %v733_v40 }
 0x429   : > { %v741_v42 = vsel %vm642_vm9, %v739_v41, -inf }
 0x42a   : > { %742 = vmax.xlane.f32.xlu0 %v741_v42 }
 0x42e   : > { %v736_v43 = vpop.f32.mrf.mxu3 }
 0x42f   : > { %v740_v44 = vmul.f32 0.35355338, %v736_v43 }
 0x431   : > { %v744_v45 = vsel %vm642_vm9, %v740_v44, -inf }
 0x432   : > { %745 = vmax.xlane.f32.xlu1 %v744_v45  ;;  %v599_v45 = vld [vmem:[%s1826_s5 + $0x8] sm:$0xff] }
 0x433   : > { %819 = vmatpush.msrb.mxu0 %v599_v45 }
 0x437   : > { %v889_v46 = vpop.f32.mrf.mxu3 }
 0x438   : > { %v895_v47 = vmul.f32 0.35355338, %v889_v46 }
 0x43a   : > { %v897_v48 = vsel %vm642_vm9, %v895_v47, -inf }
 0x43b   : > { %898 = vmax.xlane.f32.xlu0 %v897_v48  ;;  %v600_v48 = vld [vmem:[%s1826_s5 + $0x10] sm:$0xff] }
 0x43c   : > { %975 = vmatpush.msra.mxu0 %v600_v48 }
 0x43f   : > { %v892_v49 = vpop.f32.mrf.mxu3 }
 0x440   : > { %v896_v50 = vmul.f32 0.35355338, %v892_v49 }
 0x442   : > { %v900_v51 = vsel %vm642_vm9, %v896_v50, -inf }
 0x443   : > { %901 = vmax.xlane.f32.xlu1 %v900_v51 }
 0x486   : > { %v1700_v52 = vpop.f32.mrf.mxu1 }
 0x48e   : > { %v1702_v53 = vpop.f32.mrf.mxu1 }
 0x496   : > { %v1018_v54 = vpop.f32.mrf.mxu1 }
 0x497   : > { %v1024_v55 = vmul.f32 0.35355338, %v1018_v54 }
 0x499   : > { %v1026_v56 = vsel %vm642_vm9, %v1024_v55, -inf }
 0x49a   : > { %1027 = vmax.xlane.f32.xlu2 %v1026_v56 }
 0x49d   : > { %v743_v57 = vpop.xlane.xlu0 %742 }
 0x49e   : > { %v747_v58 = vsub.f32 %v739_v41, %v743_v57  ;;  %v1021_v59 = vpop.f32.mrf.mxu1 }
 0x49f   : > { %v1025_v60 = vmul.f32 0.35355338, %v1021_v59 }
 0x4a0   : > { %v749_v61 = vmul.f32 1.442695, %v747_v58 }
 0x4a1   : > { %v1029_v62 = vsel %vm642_vm9, %v1025_v60, -inf }
 0x4a2   : > { %1451 = vpow2.f32 %v749_v61  ;;  %1030 = vmax.xlane.f32.xlu2 %v1029_v62 }
 0x4a5   : > { %v746_v63 = vpop.xlane.xlu1 %745 }
 0x4a6   : > { %v748_v1 = vsub.f32 %v740_v44, %v746_v63 }
 0x4a8   : > { %v1452_v3 = vpop.eup %1451  ;;  %v751_v5 = vmul.f32 1.442695, %v748_v1 }
 0x4a9   : > { %v753_v6 = vsel %vm642_vm9, %v1452_v3, 0.0 }
 0x4aa   : > { %1453 = vpow2.f32 %v751_v5  ;;  %754 = vadd.xlane.f32.xlu0 %v753_v6 }
 0x4ae   : > { %v899_v7 = vpop.xlane.xlu0 %898 }
 0x4af   : > { %v903_v8 = vsub.f32 %v895_v47, %v899_v7 }
 0x4b0   : > { %v1454_v9 = vpop.eup %1453 }
 0x4b1   : > { %v905_v11 = vmul.f32 1.442695, %v903_v8  ;;  %v756_v12 = vsel %vm642_vm9, %v1454_v9, 0.0 }
 0x4b2   : > { %757 = vadd.xlane.f32.xlu1 %v756_v12 }
 0x4b3   : > { %1455 = vpow2.f32 %v905_v11 }
 0x4b6   : > { %v902_v18 = vpop.xlane.xlu1 %901 }
 0x4b7   : > { %v904_v22 = vsub.f32 %v896_v50, %v902_v18 }
 0x4b9   : > { %v1456_v13 = vpop.eup %1455  ;;  %v907_v25 = vmul.f32 1.442695, %v904_v22 }
 0x4ba   : > { %1415 = vrot.lane.b32.xlu2 %v1656_v4, %s1500_s17  ;;  %v909_v14 = vsel %vm642_vm9, %v1456_v13, 0.0 }
 0x4bb   : > { %910 = vadd.xlane.f32.xlu1 %v909_v14  ;;  %v1432_v14 = vld [vmem:[%s1827_s6] ss:$0 sm:$0xff] }
 0x4c2   : > { %1425 = vrot.lane.b32.xlu2 %v1656_v4, %s1501_s14 }
 0x50d   : > { %v1028_v15 = vpop.xlane.xlu2 %1027 }
 0x50e   : > { %v1032_v16 = vsub.f32 %v1024_v55, %v1028_v15 }
 0x510   : > { %v1034_v17 = vmul.f32 1.442695, %v1032_v16 }
 0x512   : > { %1457 = vpow2.f32 %v1034_v17 }
 0x515   : > { %v1031_v19 = vpop.xlane.xlu2 %1030 }
 0x516   : > { %v1033_v20 = vsub.f32 %v1025_v60, %v1031_v19 }
 0x518   : > { %v1458_v21 = vpop.eup %1457  ;;  %v1036_v23 = vmul.f32 1.442695, %v1033_v20 }
 0x519   : > { %v1038_v24 = vsel %vm642_vm9, %v1458_v21, 0.0 }
 0x51a   : > { %1459 = vpow2.f32 %v1036_v23  ;;  %1039 = vadd.xlane.f32.xlu0 %v1038_v24 }
 0x51d   : > { %v1416_v26 = vpop.permute.xlu2 %1415  ;;  %v755_v27 = vpop.xlane.xlu0 %754 }
 0x51e   : > { %1461 = vrcp.f32 %v755_v27  ;;  %v1417_v28 = vunpack.i.l.bf16 %v1416_v26  ;;  %v1418_v30 = vunpack.i.h.bf16 %v1416_v26 }
 0x51f   : > { %1463 = vpow2.f32 %v907_v25 }
 0x520   : > { %v1460_v29 = vpop.eup %1459  ;;  %789 = vmatpush.msrb.mxu2 %v1417_v28 }
 0x521   : > { %v1041_v31 = vsel %vm642_vm9, %v1460_v29, 0.0 }
 0x522   : > { %790 = vmatpush.msrb.mxu2 %v1418_v30  ;;  %1042 = vadd.xlane.f32.xlu1 %v1041_v31 }
 0x524   : > { %v1462_v32 = vpop.eup %1461 }
 0x525   : > { %v1426_v33 = vpop.permute.xlu2 %1425  ;;  %v758_v34 = vpop.xlane.xlu1 %757  ;;  %v761_v35 = vmul.f32 %v1462_v32, %v1452_v3  ;;  %v1181_v32 = vld [vmem:[%s1830_s9 + $0x18] sm:$0xff] }
 0x526   : > { %v1464_v36 = vpop.eup %1463  ;;  %v1427_v37 = vunpack.i.l.bf16 %v1426_v33  ;;  %1465 = vrcp.f32 %v758_v34  ;;  %v1428_v38 = vunpack.i.h.bf16 %v1426_v33  ;;  %v1180_v33 = vld [vmem:[%s1830_s9 + $0x10] sm:$0xff]  ;;  %v1179_v34 = vld [vmem:[%s1830_s9 + $0x8] sm:$0xff] }
 0x527   : > { %1355 = vmatmul.msk.f32.vlgmr.msrb.gmra.mxu2 %vm642_vm9, %v761_v35  ;;  %v912_v39 = vsel %vm642_vm9, %v1464_v36, 0.0  ;;  %v1178_v35 = vld [vmem:[%s1830_s9] sm:$0xff] }
 0x528   : > { %945 = vmatpush.msra.mxu2 %v1427_v37 }
 0x52a   : > { %946 = vmatpush.msra.mxu2 %v1428_v38  ;;  %913 = vadd.xlane.f32.xlu1 %v912_v39 }
 0x52c   : > { %v1466_v40 = vpop.eup %1465 }
 0x52d   : > { %v762_v41 = vmul.f32 %v1466_v40, %v1454_v9 }
 0x52e   : > { %1420 = vrot.lane.b32.xlu0 %v1656_v4, %s1502_s20  ;;  %v911_v42 = vpop.xlane.xlu1 %910  ;;  %v601_v4 = vld [vmem:[%s1826_s5 + $0x18] sm:$0xff] }
 0x52f   : > { %1467 = vrcp.f32 %v911_v42  ;;  %1356 = vmatmul.msk.f32.gmra.mxu2 %vm642_vm9, %v762_v41 }
 0x530   : > { %1104 = vmatpush.msrb.mxu2 %v601_v4 }
 0x535   : > { %v1468_v43 = vpop.eup %1467 }
 0x536   : > { %v917_v44 = vmul.f32 %v1468_v43, %v1456_v13 }
 0x538   : > { %1365 = vmatmul.msk.f32.vlgmr.msra.gmra.mxu2 %vm642_vm9, %v917_v44 }
 0x58d   : > { %v1040_v47 = vpop.xlane.xlu0 %1039 }
 0x58e   : > { %1469 = vrcp.f32 %v1040_v47 }
 0x594   : > { %v1470_v51 = vpop.eup %1469 }
 0x595   : > { %v1043_v46 = vpop.xlane.xlu1 %1042  ;;  %v1046_v57 = vmul.f32 %v1470_v51, %v1458_v21 }
 0x59d   : > { %v914_v49 = vpop.xlane.xlu1 %913 }
 0x59e   : > { %1471 = vrcp.f32 %v914_v49  ;;  %v1433_v49 = vld [vmem:[%s1828_s7] ss:$0 sm:$0xff] }
 0x59f   : > { %1473 = vrcp.f32 %v1043_v46 }
 0x5a0   : > { %v1421_v50 = vpop.permute.xlu0 %1420 }
 0x5a1   : > { %v1422_v54 = vunpack.i.l.bf16 %v1421_v50  ;;  %v1423_v55 = vunpack.i.h.bf16 %v1421_v50 }
 0x5a3   : > { %1074 = vmatpush.msrb.mxu3 %v1422_v54  ;;  %v1434_v54 = vld [vmem:[%s1829_s8] ss:$0 sm:$0xff] }
 0x5a4   : > { %v1472_v56 = vpop.eup %1471 }
 0x5a5   : > { %1075 = vmatpush.msrb.mxu3 %v1423_v55  ;;  %v918_v58 = vmul.f32 %v1472_v56, %v1464_v36  ;;  %v1474_v59 = vpop.eup %1473 }
 0x5a6   : > { %1373 = vmatmul.msk.f32.vlgmr.msrb.gmra.mxu3 %vm642_vm9, %v1046_v57  ;;  %v1047_v61 = vmul.f32 %v1474_v59, %v1460_v29 }
 0x5a7   : > { %1366 = vmatmul.msk.f32.gmra.mxu2 %vm642_vm9, %v918_v58 }
 0x5aa   : > { %v792_v60 = vpop.f32.mrf.mxu2 }
 0x5ab   : > { %1357 = vmatmul.msk.f32.vlgmr.msrb.gmra.mxu0 %vm608_vm8, %v792_v60 }
 0x5ac   : > { %1204 = vmatpush.msrb.mxu0 %v1181_v32 }
 0x5ae   : > { %1374 = vmatmul.msk.f32.gmra.mxu3 %vm642_vm9, %v1047_v61  ;;  %1205 = vmatpush.msrb.mxu0 %v1180_v33  ;;  %v1436_v33 = vld [vmem:[%s1833_s12] ss:$0 sm:$0xff] }
 0x5b0   : > { %1206 = vmatpush.msrb.mxu0 %v1179_v34 }
 0x5b2   : > { %v795_v62 = vpop.f32.mrf.mxu2  ;;  %1207 = vmatpush.msrb.mxu0 %v1178_v35 }
 0x5b3   : > { %1358 = vmatmul.msk.f32.gmra.mxu0 %vm608_vm8, %v795_v62 }
 0x5bb   : > { %v948_v63 = vpop.f32.mrf.mxu2 }
 0x5bc   : > { %1367 = vmatmul.msk.f32.vlgmr.msra.gmra.mxu0 %vm608_vm8, %v948_v63 }
 0x628   : > { %v821_v6 = vpop.f32.mrf.mxu0 }
 0x629   : > { %v1077_v1 = vpop.f32.mrf.mxu3  ;;  %v851_v9 = vadd.f32 %v1700_v52, %v821_v6  ;;  %v1237_v6 = vld [vmem:[%s1832_s11 + $0x20] sm:$0xff] }
 0x62a   : > { %v951_v3 = vpop.f32.mrf.mxu2  ;;  %1375 = vmatmul.msk.f32.vlgmr.msrb.gmra.mxu2 %vm608_vm8, %v1077_v1  ;;  %v1240_v1 = vld [vmem:[%s1832_s11 + $0x38] sm:$0xff] }
 0x62b   : > { %1368 = vmatmul.msk.f32.gmra.mxu0 %vm608_vm8, %v951_v3  ;;  %1260 = vmatpush.msrb.mxu1 %v1240_v1  ;;  %v1239_v3 = vld [vmem:[%s1832_s11 + $0x30] sm:$0xff] }
 0x62d   : > { %1261 = vmatpush.msrb.mxu1 %v1239_v3 }
 0x630   : > { %v824_v7 = vpop.f32.mrf.mxu0 }
 0x631   : > { %v1080_v5 = vpop.f32.mrf.mxu3  ;;  %v854_v17 = vadd.f32 %v1702_v53, %v824_v7  ;;  %v1236_v7 = vld [vmem:[%s1832_s11 + $0x18] sm:$0xff] }
 0x632   : > { %1376 = vmatmul.msk.f32.gmra.mxu2 %vm608_vm8, %v1080_v5  ;;  %v1238_v5 = vld [vmem:[%s1832_s11 + $0x28] sm:$0xff] }
 0x633   : > { %1262 = vmatpush.msrb.mxu1 %v1238_v5 }
 0x635   : > { %1263 = vmatpush.msrb.mxu1 %v1237_v6 }
 0x637   : > { %1264 = vmatpush.msrb.mxu1 %v1236_v7 }
 0x639   : > { %v977_v8 = vpop.f32.mrf.mxu0 }
 0x63a   : > { %v983_v11 = vadd.f32 %v977_v8, %v851_v9  ;;  %v1235_v8 = vld [vmem:[%s1832_s11 + $0x10] sm:$0xff]  ;;  %v1234_v9 = vld [vmem:[%s1832_s11 + $0x8] sm:$0xff] }
 0x63b   : > { %1265 = vmatpush.msrb.mxu1 %v1235_v8 }
 0x63d   : > { %1266 = vmatpush.msrb.mxu1 %v1234_v9 }
 0x6a8   : > { %v980_v16 = vpop.f32.mrf.mxu0 }
 0x6a9   : > { %v984_v19 = vadd.f32 %v980_v16, %v854_v17 }
 0x6ad   : > { %v1106_v12 = vpop.f32.mrf.mxu2 }
 0x6ae   : > { %v1112_v13 = vadd.f32 %v1106_v12, %v983_v11  ;;  %v1233_v11 = vld [vmem:[%s1832_s11] sm:$0xff] }
 0x6af   : > { %1267 = vmatpush.msrb.mxu1 %v1233_v11  ;;  %v1435_v12 = vld [vmem:[%s1831_s10] ss:$0 sm:$0xff] }
 0x6b0   : > { %v1114_v15 = vadd.f32 %v1112_v13, %v1603_v2 }
 0x6b2   : > { %v1742_v18 = vadd.f32 %v1432_v14, %v1114_v15 }
 0x6b4   : > { %v1124_v20 = vsel %vm499_vm0, %v1742_v18, 0.0 }
 0x6b5   : > { %1125 = vadd.xlane.f32.xlu0 %v1124_v20  ;;  %v1109_v52 = vpop.f32.mrf.mxu2 }
 0x6b6   : > { %v1113_v21 = vadd.f32 %v1109_v52, %v984_v19 }
 0x6b8   : > { %v1115_v22 = vadd.f32 %v1113_v21, %v1599_v0 }
 0x6ba   : > { %v1747_v23 = vadd.f32 %v1432_v14, %v1115_v22 }
 0x6bc   : > { %v1127_v24 = vsel %vm499_vm0, %v1747_v23, 0.0 }
 0x6bd   : > { %1128 = vadd.xlane.f32.xlu2 %v1127_v24 }
 0x728   : > { %v1126_v2 = vpop.xlane.xlu0 %1125 }
 0x729   : > { %v1130_v53 = vmul.f32 %v1126_v2, %v1607_v10 }
 0x72b   : > { %v1132_v25 = vsub.f32 %v1742_v18, %v1130_v53 }
 0x72d   : > { %v1134_v26 = vmul.f32 %v1132_v25, %v1132_v25 }
 0x72f   : > { %v1136_v27 = vsel %vm499_vm0, %v1134_v26, 0.0 }
 0x730   : > { %1137 = vadd.xlane.f32.xlu1 %v1136_v27  ;;  %v1129_v28 = vpop.xlane.xlu2 %1128 }
 0x731   : > { %v1131_v29 = vmul.f32 %v1129_v28, %v1607_v10 }
 0x733   : > { %v1133_v0 = vsub.f32 %v1747_v23, %v1131_v29 }
 0x735   : > { %v1135_v30 = vmul.f32 %v1133_v0, %v1133_v0 }
 0x737   : > { %v1139_v31 = vsel %vm499_vm0, %v1135_v30, 0.0 }
 0x738   : > { %1140 = vadd.xlane.f32.xlu1 %v1139_v31 }
 0x7a3   : > { %v1138_v36 = vpop.xlane.xlu1 %1137 }
 0x7a4   : > { %v1142_v37 = vmul.f32 %v1138_v36, %v1607_v10 }
 0x7a6   : > { %v1144_v38 = vadd.f32 1e-06, %v1142_v37 }
 0x7a8   : > { %1475 = vrsqrt.f32 %v1144_v38  ;;  %vm1152_vm11 = vweird.f32 %v1144_v38 }
 0x7ab   : > { %v1141_v39 = vpop.xlane.xlu1 %1140 }
 0x7ac   : > { %v1143_v40 = vmul.f32 %v1141_v39, %v1607_v10 }
 0x7ae   : > { %v1476_v41 = vpop.eup %1475  ;;  %v1145_v42 = vadd.f32 1e-06, %v1143_v40 }
 0x7af   : > { %v1147_v43 = vmul.f32 %v1476_v41, %v1144_v38  ;;  %vm1153_vm10 = vweird.f32 %v1476_v41 }
 0x7b0   : > { %1477 = vrsqrt.f32 %v1145_v42  ;;  %vm1154_vm12 = vmor %vm1152_vm11, %vm1153_vm10  ;;  %vm1162_vm14 = vweird.f32 %v1145_v42 }
 0x7b1   : > { %v1148_v44 = vmul.f32 %v1476_v41, %v1147_v43 }
 0x7b3   : > { %v1149_v45 = vmul.f32 0.5, %v1148_v44 }
 0x7b5   : > { %v1150_v46 = vsub.f32 1.5, %v1149_v45 }
 0x7b6   : > { %v1478_v47 = vpop.eup %1477 }
 0x7b7   : > { %v1151_v48 = vmul.f32 %v1476_v41, %v1150_v46  ;;  %v1157_v4 = vmul.f32 %v1478_v47, %v1145_v42  ;;  %vm1163_vm13 = vweird.f32 %v1478_v47 }
 0x7b8   : > { %vm1164_vm15 = vmor %vm1162_vm14, %vm1163_vm13 }
 0x7b9   : > { %v1155_v50 = vsel %vm1154_vm12, %v1476_v41, %v1151_v48  ;;  %v1158_v51 = vmul.f32 %v1478_v47, %v1157_v4 }
 0x7ba   : > { %v1166_v10 = vmul.f32 %v1155_v50, %v1132_v25 }
 0x7bb   : > { %v1159_v55 = vmul.f32 0.5, %v1158_v51 }
 0x7bc   : > { %v1171_v56 = vmul.f32 %v1433_v49, %v1166_v10 }
 0x7bd   : > { %v1160_v57 = vsub.f32 1.5, %v1159_v55 }
 0x7be   : > { %v1176_v58 = vadd.f32 %v1434_v54, %v1171_v56 }
 0x7bf   : > { %v1161_v59 = vmul.f32 %v1478_v47, %v1160_v57 }
 0x7c0   : > { %1377 = vmatmul.msk.f32.vlgmr.msrb.gmra.mxu0 %vm499_vm0, %v1176_v58 }
 0x7c1   : > { %v1165_v60 = vsel %vm1164_vm15, %v1478_v47, %v1161_v59 }
 0x7c2   : > { %v1167_v61 = vmul.f32 %v1165_v60, %v1133_v0 }
 0x7c4   : > { %v1172_v62 = vmul.f32 %v1433_v49, %v1167_v61 }
 0x7c6   : > { %v1177_v63 = vadd.f32 %v1434_v54, %v1172_v62 }
 0x7c8   : > { %1378 = vmatmul.msk.f32.gmra.mxu0 %vm499_vm0, %v1177_v63 }
 0x83d   : > { %v1209_v13 = vpop.f32.mrf.mxu0 }
 0x83e   : > { %v1210_v14 = vadd.f32 %v1435_v12, %v1209_v13 }
 0x840   : > { %v1215_v15 = vmul.f32 %v1210_v14, %v1210_v14 }
 0x842   : > { %v1217_v16 = vmul.f32 %v1215_v15, %v1210_v14 }
 0x844   : > { %v1219_v17 = vmul.f32 0.044715, %v1217_v16 }
 0x845   : > { %v1212_v19 = vpop.f32.mrf.mxu0 }
 0x846   : > { %v1221_v20 = vadd.f32 %v1219_v17, %v1210_v14  ;;  %v1213_v52 = vadd.f32 %v1435_v12, %v1212_v19 }
 0x848   : > { %v1223_v21 = vmul.f32 0.7978846, %v1221_v20  ;;  %v1216_v22 = vmul.f32 %v1213_v52, %v1213_v52 }
 0x84a   : > { %1479 = vtanh.f32 %v1223_v21  ;;  %v1218_v24 = vmul.f32 %v1216_v22, %v1213_v52 }
 0x84c   : > { %v1220_v2 = vmul.f32 0.044715, %v1218_v24 }
 0x84e   : > { %v1222_v53 = vadd.f32 %v1220_v2, %v1213_v52 }
 0x850   : > { %v1480_v25 = vpop.eup %1479  ;;  %v1224_v26 = vmul.f32 0.7978846, %v1222_v53 }
 0x851   : > { %v1227_v27 = vadd.f32 1.0, %v1480_v25 }
 0x852   : > { %1481 = vtanh.f32 %v1224_v26 }
 0x853   : > { %v1229_v28 = vmul.f32 0.5, %v1227_v27 }
 0x855   : > { %v1231_v29 = vmul.f32 %v1229_v28, %v1210_v14 }
 0x857   : > { %1379 = vmatmul.msk.f32.vlgmr.msrb.gmra.mxu1 %vm1245_vm1, %v1231_v29 }
 0x858   : > { %v1482_v0 = vpop.eup %1481 }
 0x859   : > { %v1228_v30 = vadd.f32 1.0, %v1482_v0 }
 0x85b   : > { %v1230_v31 = vmul.f32 0.5, %v1228_v30 }
 0x85d   : > { %v1232_v32 = vmul.f32 %v1230_v31, %v1213_v52 }
 0x85f   : > { %1380 = vmatmul.msk.f32.gmra.mxu1 %vm1245_vm1, %v1232_v32 }
 0x8d4   : > { %v1269_v34 = vpop.f32.mrf.mxu1 }
 0x8d5   : > { %v1270_v35 = vadd.f32 %v1436_v33, %v1269_v34 }
 0x8d7   : > { %v1275_v36 = vadd.f32 %v1270_v35, %v1742_v18 }
 0x8d9   : > { %1277 = vst.msk [vmem:[%s494_s21] sm:$0xff] %vm499_vm0, %v1275_v36 }
 0x8dc   : > { %v1272_v37 = vpop.f32.mrf.mxu1 }
 0x8dd   : > { %v1273_v38 = vadd.f32 %v1436_v33, %v1272_v37 }
 0x8df   : > { %v1276_v39 = vadd.f32 %v1273_v38, %v1747_v23 }
 0x8e1   : > { %1278 = vst.msk [vmem:[%s494_s21 + $0x8] sm:$0xff] %vm499_vm0, %v1276_v39 }
 0x8e2 PF: > { %s25_s18 = sadd.s32 1, %s1489_s18  }
 0x8e3   : > { %p22_p4 = scmp.ge.s32.totalorder %s25_s18, 4  }
 0x8e5   :  { %24 = sbr.rel (!%p22_p4) target bundleno = 1 (0x1), region = 110 }

// kernel: transinvnet_forward.24
= control target key start
LH: loop header
LB: loop body
LE: loop exit
PB: predicated region body
PF: predicated region fallthrough
CT: control target
= control target key end

     0   :  { %vm27_vm0 = vcmask 130048   ;;  %s178_s1 = inlined_call_operand.vmem [shape: f32[16,16], index: 1, kind: input, shape index: {}]   ;;  %s179_s0 = inlined_call_operand.vmem [shape: f32[32,16], index: 0, kind: input, shape index: {}]   ;;  %s180_s2 = inlined_call_operand.vmem [shape: f32[1,16], index: 2, kind: input, shape index: {}]   ;;  %s181_s3 = inlined_call_operand.vmem [shape: f32[32,16], index: 3, kind: input, shape index: {}]   ;;  %s182_s4 = inlined_call_operand.vmem [shape: f32[32,16], index: 4, kind: output, shape index: {}]  }
   0x1   :  { %v22_v0 = vld [vmem:[%s178_s1 + $0x8] sm:$0xff]  ;;  %v21_v1 = vld [vmem:[%s178_s1] sm:$0xff]  ;;  %v19_v2 = vld [vmem:[%s179_s0 + $0x10] sm:$0xff] }
   0x2   :  { %94 = vmatpush.msra.mxu2 %v22_v0  ;;  %95 = vmatpush.msra.mxu3 %v22_v0  ;;  %v20_v3 = vld [vmem:[%s179_s0 + $0x18] sm:$0xff]  ;;  %v17_v4 = vld [vmem:[%s179_s0] sm:$0xff]  ;;  %v18_v5 = vld [vmem:[%s179_s0 + $0x8] sm:$0xff] }
   0x3   :  { %54 = vmatpush.msra.mxu0 %v22_v0  ;;  %93 = vmatpush.msra.mxu1 %v22_v0  ;;  %v99_v6 = vld [vmem:[%s180_s2] ss:$0 sm:$0xff]  ;;  %v74_v12 = vld [vmem:[%s181_s3 + $0x8] sm:$0xff]  ;;  %v75_v21 = vld [vmem:[%s181_s3 + $0x10] sm:$0xff] }
   0x4   :  { %97 = vmatpush.msra.mxu2 %v21_v1  ;;  %98 = vmatpush.msra.mxu3 %v21_v1  ;;  %v73_v11 = vld [vmem:[%s181_s3] sm:$0xff]  ;;  %v76_v22 = vld [vmem:[%s181_s3 + $0x18] sm:$0xff] }
   0x5   :  { %91 = vmatmul.msk.f32.vlgmr.msra.gmra.mxu2 %vm27_vm0, %v19_v2  ;;  %92 = vmatmul.msk.f32.vlgmr.msra.gmra.mxu3 %vm27_vm0, %v20_v3 }
   0x6   :  { %55 = vmatpush.msra.mxu0 %v21_v1  ;;  %96 = vmatpush.msra.mxu1 %v21_v1 }
   0x7   :  { %89 = vmatmul.msk.f32.vlgmr.msra.gmra.mxu0 %vm27_vm0, %v17_v4  ;;  %90 = vmatmul.msk.f32.vlgmr.msra.gmra.mxu1 %vm27_vm0, %v18_v5 }
  0x84   :  { %v57_v7 = vpop.f32.mrf.mxu0  ;;  %v60_v8 = vpop.f32.mrf.mxu1 }
  0x85   :  { %v58_v9 = vadd.f32 %v99_v6, %v57_v7  ;;  %v61_v10 = vadd.f32 %v99_v6, %v60_v8 }
  0x87   :  { %v69_v13 = vmax.f32 %v58_v9, 0.0  ;;  %v70_v14 = vmax.f32 %v61_v10, 0.0 }
  0x88   :  { %v63_v15 = vpop.f32.mrf.mxu2  ;;  %v66_v16 = vpop.f32.mrf.mxu3 }
  0x89   :  { %v77_v17 = vadd.f32 %v73_v11, %v69_v13  ;;  %v78_v18 = vadd.f32 %v74_v12, %v70_v14  ;;  %v64_v19 = vadd.f32 %v99_v6, %v63_v15  ;;  %v67_v20 = vadd.f32 %v99_v6, %v66_v16 }
  0x8b   :  { %81 = vst.msk [vmem:[%s182_s4] sm:$0xff] %vm27_vm0, %v77_v17  ;;  %v71_v23 = vmax.f32 %v64_v19, 0.0  ;;  %v72_v24 = vmax.f32 %v67_v20, 0.0 }
  0x8c   :  { %82 = vst.msk [vmem:[%s182_s4 + $0x8] sm:$0xff] %vm27_vm0, %v78_v18 }
  0x8d   :  { %v79_v25 = vadd.f32 %v75_v21, %v71_v23  ;;  %v80_v26 = vadd.f32 %v76_v22, %v72_v24 }
  0x8f   :  { %83 = vst.msk [vmem:[%s182_s4 + $0x10] sm:$0xff] %vm27_vm0, %v79_v25 }
  0x90   :  { %84 = vst.msk [vmem:[%s182_s4 + $0x18] sm:$0xff] %vm27_vm0, %v80_v26 }

// kernel: transinvnet_forward.26
= control target key start
LH: loop header
LB: loop body
LE: loop exit
PB: predicated region body
PF: predicated region fallthrough
CT: control target
= control target key end

     0   :  { %s469_s15 = smov 0   ;;  %s536_s0 = inlined_call_operand.vmem [shape: f32[128,8], index: 0, kind: input, shape index: {}]   ;;  %s537_s1 = inlined_call_operand.vmem [shape: f32[8,16], index: 1, kind: input, shape index: {}]   ;;  %s538_s2 = inlined_call_operand.vmem [shape: f32[1,16], index: 2, kind: input, shape index: {}]   ;;  %s539_s3 = inlined_call_operand.vmem [shape: f32[128,16], index: 3, kind: input, shape index: {}]   ;;  %s540_s4 = inlined_call_operand.vmem [shape: f32[128,16], index: 4, kind: output, shape index: {}]  }
   0x1 LB: > { %s403_s16 = sadd.s32 4294967295, %s442_s15   ;;  %p407_p0 = scmp.ge.s32.totalorder %s442_s15, 1  ;;  %s442_s15 = sphi %s469_s15, %s14_s15  }
   0x2   : > { %p174_p1 = scmp.lt.s32.totalorder %s442_s15, 3 }
   0x4   : > { %p175_p2 = pnand %p407_p0, %p174_p1 }
   0x5   : > { %s408_s19 = sshll.u32 (!%p175_p2), %s403_s16, 3 }
   0x6   : > { %178 = sbr.rel (%p175_p2) target bundleno = 163 (0xa3), region = 36  ;;  %p206_p3 = scmp.lt.s32.totalorder (!%p175_p2), %s408_s19, 15 }
   0xb   : > { %v231_v0 = vld [vmem:[%s537_s1] sm:$0xff]  ;;  %s542_s19 = smov (!%p206_p3, %s408_s19), 15  ;;  %vm236_vm0 = vcmask 64512   ;;  %vm326_vm1 = vcmask 130048  }
   0xc   : > { %425 = vmatpush.msra.mxu2 %v231_v0  ;;  %426 = vmatpush.msra.mxu3 %v231_v0  ;;  %s480_s20 = sshll.u32 %s542_s19, 3  ;;  %v435_v9 = vld [vmem:[%s538_s2] ss:$0 sm:$0xff] }
   0xd   : > { %276 = vmatpush.msra.mxu0 %v231_v0  ;;  %424 = vmatpush.msra.mxu1 %v231_v0  ;;  %s209_s23 = scalar_lea.vmem %s536_s0, %s480_s20  ;;  %s501_s28 = scalar_lea.vmem %s539_s3, %s480_s20 }
   0xe   : > { %v227_v1 = vld [vmem:[%s209_s23 + $0x20] sm:$0xff]  ;;  %v229_v2 = vld [vmem:[%s209_s23 + $0x30] sm:$0xff]  ;;  %v228_v5 = vld [vmem:[%s209_s23 + $0x28] sm:$0xff]  ;;  %s509_s5 = scalar_lea.vmem %s540_s4, %s480_s20 }
   0xf   : > { %v223_v3 = vld [vmem:[%s209_s23] sm:$0xff]  ;;  %418 = vmatmul.msk.f32.vlgmr.msra.gmra.mxu2 %vm236_vm0, %v227_v1  ;;  %420 = vmatmul.msk.f32.vlgmr.msra.gmra.mxu3 %vm236_vm0, %v229_v2  ;;  %v225_v4 = vld [vmem:[%s209_s23 + $0x10] sm:$0xff]  ;;  %v230_v6 = vld [vmem:[%s209_s23 + $0x38] sm:$0xff] }
  0x10   : > { %414 = vmatmul.msk.f32.vlgmr.msra.gmra.mxu0 %vm236_vm0, %v223_v3  ;;  %416 = vmatmul.msk.f32.vlgmr.msra.gmra.mxu1 %vm236_vm0, %v225_v4  ;;  %v224_v7 = vld [vmem:[%s209_s23 + $0x8] sm:$0xff]  ;;  %v226_v8 = vld [vmem:[%s209_s23 + $0x18] sm:$0xff]  ;;  %v310_v14 = vld [vmem:[%s501_s28] sm:$0xff] }
  0x11   : > { %v312_v15 = vld [vmem:[%s501_s28 + $0x10] sm:$0xff]  ;;  %v314_v24 = vld [vmem:[%s501_s28 + $0x20] sm:$0xff]  ;;  %v311_v34 = vld [vmem:[%s501_s28 + $0x8] sm:$0xff] }
  0x12   : > { %v316_v25 = vld [vmem:[%s501_s28 + $0x30] sm:$0xff]  ;;  %v313_v35 = vld [vmem:[%s501_s28 + $0x18] sm:$0xff]  ;;  %v315_v44 = vld [vmem:[%s501_s28 + $0x28] sm:$0xff] }
  0x13   : > { %v317_v45 = vld [vmem:[%s501_s28 + $0x38] sm:$0xff] }
  0x17   : > { %419 = vmatmul.msk.f32.gmra.mxu2 %vm236_vm0, %v228_v5  ;;  %421 = vmatmul.msk.f32.gmra.mxu3 %vm236_vm0, %v230_v6 }
  0x18   : > { %415 = vmatmul.msk.f32.gmra.mxu0 %vm236_vm0, %v224_v7  ;;  %417 = vmatmul.msk.f32.gmra.mxu1 %vm236_vm0, %v226_v8 }
  0x8d   : > { %v278_v10 = vpop.f32.mrf.mxu0  ;;  %v284_v11 = vpop.f32.mrf.mxu1 }
  0x8e   : > { %v279_v12 = vadd.f32 %v435_v9, %v278_v10  ;;  %v285_v13 = vadd.f32 %v435_v9, %v284_v11 }
  0x90   : > { %v302_v16 = vmax.f32 %v279_v12, 0.0  ;;  %v304_v17 = vmax.f32 %v285_v13, 0.0 }
  0x92   : > { %v318_v18 = vadd.f32 %v310_v14, %v302_v16  ;;  %v320_v19 = vadd.f32 %v312_v15, %v304_v17  ;;  %v290_v20 = vpop.f32.mrf.mxu2  ;;  %v296_v21 = vpop.f32.mrf.mxu3 }
  0x93   : > { %v291_v22 = vadd.f32 %v435_v9, %v290_v20  ;;  %v297_v23 = vadd.f32 %v435_v9, %v296_v21 }
  0x94   : > { %327 = vst.msk [vmem:[%s509_s5] sm:$0xff] %vm326_vm1, %v318_v18 }
  0x95   : > { %329 = vst.msk [vmem:[%s509_s5 + $0x10] sm:$0xff] %vm326_vm1, %v320_v19  ;;  %v306_v26 = vmax.f32 %v291_v22, 0.0  ;;  %v308_v27 = vmax.f32 %v297_v23, 0.0  ;;  %v281_v28 = vpop.f32.mrf.mxu0  ;;  %v287_v29 = vpop.f32.mrf.mxu1 }
  0x96   : > { %v282_v30 = vadd.f32 %v435_v9, %v281_v28  ;;  %v288_v31 = vadd.f32 %v435_v9, %v287_v29 }
  0x97   : > { %v322_v32 = vadd.f32 %v314_v24, %v306_v26  ;;  %v324_v33 = vadd.f32 %v316_v25, %v308_v27 }
  0x98   : > { %v303_v36 = vmax.f32 %v282_v30, 0.0  ;;  %v305_v37 = vmax.f32 %v288_v31, 0.0 }
  0x99   : > { %331 = vst.msk [vmem:[%s509_s5 + $0x20] sm:$0xff] %vm326_vm1, %v322_v32 }
  0x9a   : > { %333 = vst.msk [vmem:[%s509_s5 + $0x30] sm:$0xff] %vm326_vm1, %v324_v33  ;;  %v319_v38 = vadd.f32 %v311_v34, %v303_v36  ;;  %v321_v39 = vadd.f32 %v313_v35, %v305_v37  ;;  %v293_v40 = vpop.f32.mrf.mxu2  ;;  %v299_v41 = vpop.f32.mrf.mxu3 }
  0x9b   : > { %v294_v42 = vadd.f32 %v435_v9, %v293_v40  ;;  %v300_v43 = vadd.f32 %v435_v9, %v299_v41 }
  0x9c   : > { %328 = vst.msk [vmem:[%s509_s5 + $0x8] sm:$0xff] %vm326_vm1, %v319_v38 }
  0x9d   : > { %330 = vst.msk [vmem:[%s509_s5 + $0x18] sm:$0xff] %vm326_vm1, %v321_v39  ;;  %v307_v46 = vmax.f32 %v294_v42, 0.0  ;;  %v309_v47 = vmax.f32 %v300_v43, 0.0 }
  0x9f   : > { %v323_v48 = vadd.f32 %v315_v44, %v307_v46  ;;  %v325_v49 = vadd.f32 %v317_v45, %v309_v47 }
  0xa1   : > { %332 = vst.msk [vmem:[%s509_s5 + $0x28] sm:$0xff] %vm326_vm1, %v323_v48 }
  0xa2   : > { %334 = vst.msk [vmem:[%s509_s5 + $0x38] sm:$0xff] %vm326_vm1, %v325_v49 }
  0xa3 PF: > { %s14_s15 = sadd.s32 1, %s442_s15  }
  0xa4   : > { %p11_p4 = scmp.ge.s32.totalorder %s14_s15, 4  }
  0xa6   :  { %13 = sbr.rel (!%p11_p4) target bundleno = 1 (0x1), region = 69 }

// kernel: transinvnet_forward.25
= control target key start
LH: loop header
LB: loop body
LE: loop exit
PB: predicated region body
PF: predicated region fallthrough
CT: control target
= control target key end

     0   :  { %vm44_vm0 = vcmask 130048   ;;  %s285_s1 = inlined_call_operand.vmem [shape: f32[144,16], index: 1, kind: input, shape index: {}]   ;;  %s286_s0 = inlined_call_operand.vmem [shape: f32[32,144], index: 0, kind: input, shape index: {}]   ;;  %s287_s2 = inlined_call_operand.vmem [shape: f32[1,16], index: 2, kind: input, shape index: {}]   ;;  %s288_s3 = inlined_call_operand.vmem [shape: f32[32,16], index: 3, kind: output, shape index: {}]  }
   0x1   :  { %v37_v0 = vld [vmem:[%s285_s1 + $0x78] sm:$0xff]  ;;  %v36_v1 = vld [vmem:[%s285_s1 + $0x70] sm:$0xff]  ;;  %v35_v2 = vld [vmem:[%s285_s1 + $0x68] sm:$0xff] }
   0x2   :  { %57 = vmatpush.msra.mxu0 %v37_v0  ;;  %131 = vmatpush.msra.mxu2 %v37_v0  ;;  %v39_v3 = vld [vmem:[%s285_s1 + $0x88] sm:$0xff]  ;;  %v34_v4 = vld [vmem:[%s285_s1 + $0x60] sm:$0xff]  ;;  %v33_v7 = vld [vmem:[%s285_s1 + $0x58] sm:$0xff] }
   0x3   :  { %132 = vmatpush.msra.mxu3 %v37_v0  ;;  %100 = vmatpush.msra.mxu1 %v39_v3  ;;  %v38_v5 = vld [vmem:[%s285_s1 + $0x80] sm:$0xff]  ;;  %v15_v6 = vld [vmem:[%s286_s0 + $0x8] sm:$0xff]  ;;  %v32_v8 = vld [vmem:[%s285_s1 + $0x50] sm:$0xff] }
   0x4   :  { %58 = vmatpush.msra.mxu0 %v36_v1  ;;  %133 = vmatpush.msra.mxu2 %v36_v1  ;;  %v31_v9 = vld [vmem:[%s285_s1 + $0x48] sm:$0xff]  ;;  %v30_v10 = vld [vmem:[%s285_s1 + $0x40] sm:$0xff]  ;;  %v17_v11 = vld [vmem:[%s286_s0 + $0x18] sm:$0xff] }
   0x5   :  { %134 = vmatpush.msra.mxu3 %v36_v1  ;;  %101 = vmatpush.msra.mxu1 %v38_v5  ;;  %v29_v12 = vld [vmem:[%s285_s1 + $0x38] sm:$0xff]  ;;  %v28_v13 = vld [vmem:[%s285_s1 + $0x30] sm:$0xff]  ;;  %v27_v14 = vld [vmem:[%s285_s1 + $0x28] sm:$0xff] }
   0x6   :  { %59 = vmatpush.msra.mxu0 %v35_v2  ;;  %135 = vmatpush.msra.mxu2 %v35_v2  ;;  %v26_v15 = vld [vmem:[%s285_s1 + $0x20] sm:$0xff]  ;;  %v19_v16 = vld [vmem:[%s286_s0 + $0x28] sm:$0xff]  ;;  %v25_v17 = vld [vmem:[%s285_s1 + $0x18] sm:$0xff] }
   0x7   :  { %136 = vmatpush.msra.mxu3 %v35_v2  ;;  %127 = vmatmul.msk.f32.vlgmr.msra.gmra.mxu1 %vm44_vm0, %v15_v6  ;;  %v24_v18 = vld [vmem:[%s285_s1 + $0x10] sm:$0xff]  ;;  %v23_v19 = vld [vmem:[%s285_s1 + $0x8] sm:$0xff]  ;;  %v22_v20 = vld [vmem:[%s285_s1] sm:$0xff] }
   0x8   :  { %60 = vmatpush.msra.mxu0 %v34_v4  ;;  %137 = vmatpush.msra.mxu2 %v34_v4  ;;  %v14_v21 = vld [vmem:[%s286_s0] sm:$0xff]  ;;  %v16_v22 = vld [vmem:[%s286_s0 + $0x10] sm:$0xff]  ;;  %v21_v24 = vld [vmem:[%s286_s0 + $0x38] sm:$0xff] }
   0x9   :  { %138 = vmatpush.msra.mxu3 %v34_v4  ;;  %v18_v23 = vld [vmem:[%s286_s0 + $0x20] sm:$0xff]  ;;  %v20_v25 = vld [vmem:[%s286_s0 + $0x30] sm:$0xff] }
   0xa   :  { %61 = vmatpush.msra.mxu0 %v33_v7  ;;  %139 = vmatpush.msra.mxu2 %v33_v7  ;;  %v163_v28 = vld [vmem:[%s287_s2] ss:$0 sm:$0xff] }
   0xb   :  { %140 = vmatpush.msra.mxu3 %v33_v7 }
   0xc   :  { %62 = vmatpush.msra.mxu0 %v32_v8  ;;  %141 = vmatpush.msra.mxu2 %v32_v8 }
   0xd   :  { %142 = vmatpush.msra.mxu3 %v32_v8 }
   0xe   :  { %63 = vmatpush.msra.mxu0 %v31_v9  ;;  %143 = vmatpush.msra.mxu2 %v31_v9 }
   0xf   :  { %144 = vmatpush.msra.mxu3 %v31_v9  ;;  %128 = vmatmul.msk.f32.gmra.mxu1 %vm44_vm0, %v17_v11 }
  0x10   :  { %64 = vmatpush.msra.mxu0 %v30_v10  ;;  %145 = vmatpush.msra.mxu2 %v30_v10 }
  0x11   :  { %146 = vmatpush.msra.mxu3 %v30_v10 }
  0x12   :  { %65 = vmatpush.msra.mxu0 %v29_v12  ;;  %147 = vmatpush.msra.mxu2 %v29_v12 }
  0x13   :  { %148 = vmatpush.msra.mxu3 %v29_v12 }
  0x14   :  { %66 = vmatpush.msra.mxu0 %v28_v13  ;;  %149 = vmatpush.msra.mxu2 %v28_v13 }
  0x15   :  { %150 = vmatpush.msra.mxu3 %v28_v13 }
  0x16   :  { %67 = vmatpush.msra.mxu0 %v27_v14  ;;  %151 = vmatpush.msra.mxu2 %v27_v14 }
  0x17   :  { %152 = vmatpush.msra.mxu3 %v27_v14  ;;  %129 = vmatmul.msk.f32.gmra.mxu1 %vm44_vm0, %v19_v16 }
  0x18   :  { %68 = vmatpush.msra.mxu0 %v26_v15  ;;  %153 = vmatpush.msra.mxu2 %v26_v15 }
  0x19   :  { %154 = vmatpush.msra.mxu3 %v26_v15 }
  0x1a   :  { %69 = vmatpush.msra.mxu0 %v25_v17  ;;  %155 = vmatpush.msra.mxu2 %v25_v17 }
  0x1b   :  { %156 = vmatpush.msra.mxu3 %v25_v17 }
  0x1c   :  { %70 = vmatpush.msra.mxu0 %v24_v18  ;;  %157 = vmatpush.msra.mxu2 %v24_v18 }
  0x1d   :  { %158 = vmatpush.msra.mxu3 %v24_v18 }
  0x1e   :  { %71 = vmatpush.msra.mxu0 %v23_v19  ;;  %159 = vmatpush.msra.mxu2 %v23_v19 }
  0x1f   :  { %160 = vmatpush.msra.mxu3 %v23_v19  ;;  %130 = vmatmul.msk.f32.gmra.mxu1 %vm44_vm0, %v21_v24 }
  0x20   :  { %72 = vmatpush.msra.mxu0 %v22_v20  ;;  %161 = vmatpush.msra.mxu2 %v22_v20 }
  0x21   :  { %162 = vmatpush.msra.mxu3 %v22_v20  ;;  %73 = vmatmul.f32.vlgmr.msra.gmra.mxu0 %v14_v21 }
  0x22   :  { %76 = vmatmul.f32.vlgmr.msra.gmra.mxu2 %v16_v22  ;;  %79 = vmatmul.f32.vlgmr.msra.gmra.mxu3 %v18_v23 }
  0x2a   :  { %82 = vmatmul.f32.gmra.mxu3 %v20_v25 }
  0x84   :  { %v103_v26 = vpop.f32.mrf.mxu1 }
  0x8c   :  { %v106_v27 = vpop.f32.mrf.mxu1 }
  0x94   :  { %v109_v33 = vpop.f32.mrf.mxu1 }
  0x9c   :  { %v112_v43 = vpop.f32.mrf.mxu1 }
  0x9e   :  { %v74_v29 = vpop.f32.mrf.mxu0 }
  0x9f   :  { %v75_v30 = vadd.f32 %v163_v28, %v74_v29 }
  0xa1   :  { %v104_v31 = vadd.f32 %v103_v26, %v75_v30 }
  0xa3   :  { %v115_v32 = vmax.f32 %v104_v31, 0.0 }
  0xa5   :  { %119 = vst.msk [vmem:[%s288_s3] sm:$0xff] %vm44_vm0, %v115_v32  ;;  %v77_v34 = vpop.f32.mrf.mxu2  ;;  %v80_v35 = vpop.f32.mrf.mxu3 }
  0xa6   :  { %v78_v36 = vadd.f32 %v163_v28, %v77_v34  ;;  %v81_v37 = vadd.f32 %v163_v28, %v80_v35 }
  0xa8   :  { %v107_v38 = vadd.f32 %v106_v27, %v78_v36  ;;  %v110_v39 = vadd.f32 %v109_v33, %v81_v37 }
  0xaa   :  { %v116_v40 = vmax.f32 %v107_v38, 0.0  ;;  %v117_v41 = vmax.f32 %v110_v39, 0.0 }
  0xac   :  { %120 = vst.msk [vmem:[%s288_s3 + $0x8] sm:$0xff] %vm44_vm0, %v116_v40 }
  0xad   :  { %121 = vst.msk [vmem:[%s288_s3 + $0x10] sm:$0xff] %vm44_vm0, %v117_v41  ;;  %v83_v42 = vpop.f32.mrf.mxu3 }
  0xae   :  { %v84_v44 = vadd.f32 %v163_v28, %v83_v42 }
  0xb0   :  { %v113_v45 = vadd.f32 %v112_v43, %v84_v44 }
  0xb2   :  { %v118_v46 = vmax.f32 %v113_v45, 0.0 }
  0xb4   :  { %122 = vst.msk [vmem:[%s288_s3 + $0x18] sm:$0xff] %vm44_vm0, %v118_v46 }

// kernel: transinvnet_forward.27
= control target key start
LH: loop header
LB: loop body
LE: loop exit
PB: predicated region body
PF: predicated region fallthrough
CT: control target
= control target key end

     0   :  { %s486_s12 = smov 0   ;;  %s616_s0 = inlined_call_operand.vmem [shape: f32[128,144], index: 0, kind: input, shape index: {}]   ;;  %s617_s1 = inlined_call_operand.vmem [shape: f32[144,16], index: 1, kind: input, shape index: {}]   ;;  %s618_s2 = inlined_call_operand.vmem [shape: f32[1,16], index: 2, kind: input, shape index: {}]   ;;  %s619_s3 = inlined_call_operand.vmem [shape: f32[128,16], index: 3, kind: output, shape index: {}]  }
   0x1 LB: > { %s394_s13 = sadd.s32 4294967295, %s464_s12   ;;  %p398_p0 = scmp.ge.s32.totalorder %s464_s12, 1  ;;  %s464_s12 = sphi %s486_s12, %s13_s12  }
   0x2   : > { %p139_p1 = scmp.lt.s32.totalorder %s464_s12, 3 }
   0x4   : > { %p140_p2 = pnand %p398_p0, %p139_p1 }
   0x5   : > { %s399_s18 = sshll.u32 (!%p140_p2), %s394_s13, 3 }
   0x6   : > { %143 = sbr.rel (%p140_p2) target bundleno = 207 (0xcf), region = 32  ;;  %p165_p3 = scmp.lt.s32.totalorder (!%p140_p2), %s399_s18, 15 }
   0xb   : > { %v208_v0 = vld [vmem:[%s617_s1 + $0x78] sm:$0xff]  ;;  %v207_v1 = vld [vmem:[%s617_s1 + $0x70] sm:$0xff]  ;;  %v503_v2 = vld [vmem:[%s617_s1 + $0x88] sm:$0xff]  ;;  %s621_s18 = smov (!%p165_p3, %s399_s18), 15  ;;  %vm215_vm0 = vcmask 130048  }
   0xc   : > { %240 = vmatpush.msra.mxu0 %v208_v0  ;;  %415 = vmatpush.msra.mxu2 %v208_v0  ;;  %v508_v3 = vld [vmem:[%s617_s1 + $0x80] sm:$0xff]  ;;  %v206_v4 = vld [vmem:[%s617_s1 + $0x68] sm:$0xff]  ;;  %s414_s27 = sshll.u32 %s621_s18, 4  ;;  %v204_v6 = vld [vmem:[%s617_s1 + $0x58] sm:$0xff]  ;;  %s403_s6 = sshll.u32 %s621_s18, 3 }
   0xd   : > { %416 = vmatpush.msra.mxu3 %v208_v0  ;;  %295 = vmatpush.msra.mxu1 %v503_v2  ;;  %v205_v5 = vld [vmem:[%s617_s1 + $0x60] sm:$0xff]  ;;  %s524_s30 = scalar_lea.vmem %s616_s0, %s414_s27  ;;  %v203_v8 = vld [vmem:[%s617_s1 + $0x50] sm:$0xff]  ;;  %v202_v9 = vld [vmem:[%s617_s1 + $0x48] sm:$0xff]  ;;  %s595_s9 = scalar_lea.vmem %s619_s3, %s403_s6 }
   0xe   : > { %241 = vmatpush.msra.mxu0 %v207_v1  ;;  %417 = vmatpush.msra.mxu2 %v207_v1  ;;  %v178_v7 = vld [vmem:[%s524_s30 + $0x8] sm:$0xff]  ;;  %v201_v10 = vld [vmem:[%s617_s1 + $0x40] sm:$0xff]  ;;  %v180_v11 = vld [vmem:[%s524_s30 + $0x18] sm:$0xff] }
   0xf   : > { %418 = vmatpush.msra.mxu3 %v207_v1  ;;  %296 = vmatpush.msra.mxu1 %v508_v3  ;;  %v200_v12 = vld [vmem:[%s617_s1 + $0x38] sm:$0xff]  ;;  %v199_v13 = vld [vmem:[%s617_s1 + $0x30] sm:$0xff]  ;;  %v198_v14 = vld [vmem:[%s617_s1 + $0x28] sm:$0xff] }
  0x10   : > { %242 = vmatpush.msra.mxu0 %v206_v4  ;;  %419 = vmatpush.msra.mxu2 %v206_v4  ;;  %v197_v15 = vld [vmem:[%s617_s1 + $0x20] sm:$0xff]  ;;  %v182_v16 = vld [vmem:[%s524_s30 + $0x28] sm:$0xff]  ;;  %v196_v17 = vld [vmem:[%s617_s1 + $0x18] sm:$0xff] }
  0x11   : > { %420 = vmatpush.msra.mxu3 %v206_v4  ;;  %404 = vmatmul.msk.f32.vlgmr.msra.gmra.mxu1 %vm215_vm0, %v178_v7  ;;  %v195_v18 = vld [vmem:[%s617_s1 + $0x10] sm:$0xff]  ;;  %v194_v19 = vld [vmem:[%s617_s1 + $0x8] sm:$0xff]  ;;  %v193_v20 = vld [vmem:[%s617_s1] sm:$0xff] }
  0x12   : > { %243 = vmatpush.msra.mxu0 %v205_v5  ;;  %421 = vmatpush.msra.mxu2 %v205_v5  ;;  %v177_v21 = vld [vmem:[%s524_s30] sm:$0xff]  ;;  %v183_v22 = vld [vmem:[%s524_s30 + $0x30] sm:$0xff]  ;;  %v184_v24 = vld [vmem:[%s524_s30 + $0x38] sm:$0xff] }
  0x13   : > { %422 = vmatpush.msra.mxu3 %v205_v5  ;;  %v185_v23 = vld [vmem:[%s524_s30 + $0x40] sm:$0xff]  ;;  %v179_v25 = vld [vmem:[%s524_s30 + $0x10] sm:$0xff]  ;;  %v192_v27 = vld [vmem:[%s524_s30 + $0x78] sm:$0xff] }
  0x14   : > { %244 = vmatpush.msra.mxu0 %v204_v6  ;;  %423 = vmatpush.msra.mxu2 %v204_v6  ;;  %v187_v26 = vld [vmem:[%s524_s30 + $0x50] sm:$0xff]  ;;  %v186_v28 = vld [vmem:[%s524_s30 + $0x48] sm:$0xff]  ;;  %v181_v29 = vld [vmem:[%s524_s30 + $0x20] sm:$0xff] }
  0x15   : > { %424 = vmatpush.msra.mxu3 %v204_v6  ;;  %v189_v30 = vld [vmem:[%s524_s30 + $0x60] sm:$0xff]  ;;  %v188_v31 = vld [vmem:[%s524_s30 + $0x58] sm:$0xff]  ;;  %v191_v32 = vld [vmem:[%s524_s30 + $0x70] sm:$0xff] }
  0x16   : > { %245 = vmatpush.msra.mxu0 %v203_v8  ;;  %425 = vmatpush.msra.mxu2 %v203_v8  ;;  %v190_v33 = vld [vmem:[%s524_s30 + $0x68] sm:$0xff]  ;;  %v457_v37 = vld [vmem:[%s618_s2] ss:$0 sm:$0xff] }
  0x17   : > { %426 = vmatpush.msra.mxu3 %v203_v8 }
  0x18   : > { %246 = vmatpush.msra.mxu0 %v202_v9  ;;  %427 = vmatpush.msra.mxu2 %v202_v9 }
  0x19   : > { %428 = vmatpush.msra.mxu3 %v202_v9  ;;  %405 = vmatmul.msk.f32.gmra.mxu1 %vm215_vm0, %v180_v11 }
  0x1a   : > { %247 = vmatpush.msra.mxu0 %v201_v10  ;;  %429 = vmatpush.msra.mxu2 %v201_v10 }
  0x1b   : > { %430 = vmatpush.msra.mxu3 %v201_v10 }
  0x1c   : > { %248 = vmatpush.msra.mxu0 %v200_v12  ;;  %431 = vmatpush.msra.mxu2 %v200_v12 }
  0x1d   : > { %432 = vmatpush.msra.mxu3 %v200_v12 }
  0x1e   : > { %249 = vmatpush.msra.mxu0 %v199_v13  ;;  %433 = vmatpush.msra.mxu2 %v199_v13 }
  0x1f   : > { %434 = vmatpush.msra.mxu3 %v199_v13 }
  0x20   : > { %250 = vmatpush.msra.mxu0 %v198_v14  ;;  %435 = vmatpush.msra.mxu2 %v198_v14 }
  0x21   : > { %436 = vmatpush.msra.mxu3 %v198_v14  ;;  %406 = vmatmul.msk.f32.gmra.mxu1 %vm215_vm0, %v182_v16 }
  0x22   : > { %251 = vmatpush.msra.mxu0 %v197_v15  ;;  %437 = vmatpush.msra.mxu2 %v197_v15 }
  0x23   : > { %438 = vmatpush.msra.mxu3 %v197_v15 }
  0x24   : > { %252 = vmatpush.msra.mxu0 %v196_v17  ;;  %439 = vmatpush.msra.mxu2 %v196_v17 }
  0x25   : > { %440 = vmatpush.msra.mxu3 %v196_v17 }
  0x26   : > { %253 = vmatpush.msra.mxu0 %v195_v18  ;;  %441 = vmatpush.msra.mxu2 %v195_v18 }
  0x27   : > { %442 = vmatpush.msra.mxu3 %v195_v18 }
  0x28   : > { %254 = vmatpush.msra.mxu0 %v194_v19  ;;  %443 = vmatpush.msra.mxu2 %v194_v19 }
  0x29   : > { %444 = vmatpush.msra.mxu3 %v194_v19  ;;  %407 = vmatmul.msk.f32.gmra.mxu1 %vm215_vm0, %v184_v24 }
  0x2a   : > { %255 = vmatpush.msra.mxu0 %v193_v20  ;;  %445 = vmatpush.msra.mxu2 %v193_v20 }
  0x2b   : > { %446 = vmatpush.msra.mxu3 %v193_v20  ;;  %256 = vmatmul.f32.vlgmr.msra.gmra.mxu0 %v177_v21 }
  0x2c   : > { %265 = vmatmul.f32.vlgmr.msra.gmra.mxu2 %v183_v22  ;;  %268 = vmatmul.f32.vlgmr.msra.gmra.mxu3 %v185_v23 }
  0x2d   : > { %447 = vmatpush.msrb.mxu2 %v503_v2 }
  0x2f   : > { %448 = vmatpush.msrb.mxu2 %v508_v3 }
  0x31   : > { %408 = vmatmul.msk.f32.gmra.mxu1 %vm215_vm0, %v186_v28 }
  0x33   : > { %259 = vmatmul.f32.gmra.mxu0 %v179_v25 }
  0x34   : > { %271 = vmatmul.f32.gmra.mxu3 %v187_v26  ;;  %411 = vmatmul.msk.f32.vlgmr.msrb.gmra.mxu2 %vm215_vm0, %v192_v27 }
  0x39   : > { %409 = vmatmul.msk.f32.gmra.mxu1 %vm215_vm0, %v188_v31 }
  0x3b   : > { %262 = vmatmul.f32.gmra.mxu0 %v181_v29 }
  0x3c   : > { %274 = vmatmul.f32.gmra.mxu3 %v189_v30 }
  0x41   : > { %410 = vmatmul.msk.f32.gmra.mxu1 %vm215_vm0, %v190_v33 }
  0x44   : > { %277 = vmatmul.f32.gmra.mxu3 %v191_v32 }
  0x8e   : > { %v298_v34 = vpop.f32.mrf.mxu1 }
  0x96   : > { %v301_v35 = vpop.f32.mrf.mxu1 }
  0x9e   : > { %v304_v36 = vpop.f32.mrf.mxu1 }
  0xa6   : > { %v307_v40 = vpop.f32.mrf.mxu1 }
  0xa8   : > { %v257_v38 = vpop.f32.mrf.mxu0 }
  0xa9   : > { %v258_v39 = vadd.f32 %v457_v37, %v257_v38 }
  0xab   : > { %v299_v41 = vadd.f32 %v298_v34, %v258_v39 }
  0xad   : > { %v322_v42 = vmax.f32 %v299_v41, 0.0 }
  0xae   : > { %v310_v50 = vpop.f32.mrf.mxu1 }
  0xaf   : > { %330 = vst.msk [vmem:[%s595_s9] sm:$0xff] %vm215_vm0, %v322_v42  ;;  %v266_v43 = vpop.f32.mrf.mxu2  ;;  %v269_v44 = vpop.f32.mrf.mxu3 }
  0xb0   : > { %v267_v45 = vadd.f32 %v457_v37, %v266_v43  ;;  %v270_v46 = vadd.f32 %v457_v37, %v269_v44  ;;  %v260_v47 = vpop.f32.mrf.mxu0 }
  0xb1   : > { %v261_v48 = vadd.f32 %v457_v37, %v260_v47 }
  0xb2   : > { %v308_v49 = vadd.f32 %v307_v40, %v267_v45  ;;  %v311_v52 = vadd.f32 %v310_v50, %v270_v46 }
  0xb3   : > { %v302_v51 = vadd.f32 %v301_v35, %v261_v48 }
  0xb4   : > { %v325_v53 = vmax.f32 %v308_v49, 0.0  ;;  %v326_v55 = vmax.f32 %v311_v52, 0.0 }
  0xb5   : > { %v323_v54 = vmax.f32 %v302_v51, 0.0 }
  0xb6   : > { %333 = vst.msk [vmem:[%s595_s9 + $0x18] sm:$0xff] %vm215_vm0, %v325_v53  ;;  %v313_v60 = vpop.f32.mrf.mxu1 }
  0xb7   : > { %331 = vst.msk [vmem:[%s595_s9 + $0x8] sm:$0xff] %vm215_vm0, %v323_v54  ;;  %v272_v56 = vpop.f32.mrf.mxu3  ;;  %v319_v7 = vpop.f32.mrf.mxu2 }
  0xb8   : > { %334 = vst.msk [vmem:[%s595_s9 + $0x20] sm:$0xff] %vm215_vm0, %v326_v55  ;;  %v273_v57 = vadd.f32 %v457_v37, %v272_v56  ;;  %v263_v58 = vpop.f32.mrf.mxu0 }
  0xb9   : > { %v264_v59 = vadd.f32 %v457_v37, %v263_v58 }
  0xba   : > { %v314_v62 = vadd.f32 %v313_v60, %v273_v57 }
  0xbb   : > { %v305_v61 = vadd.f32 %v304_v36, %v264_v59 }
  0xbc   : > { %v327_v0 = vmax.f32 %v314_v62, 0.0 }
  0xbd   : > { %v324_v63 = vmax.f32 %v305_v61, 0.0 }
  0xbe   : > { %335 = vst.msk [vmem:[%s595_s9 + $0x28] sm:$0xff] %vm215_vm0, %v327_v0  ;;  %v316_v3 = vpop.f32.mrf.mxu1 }
  0xbf   : > { %332 = vst.msk [vmem:[%s595_s9 + $0x10] sm:$0xff] %vm215_vm0, %v324_v63  ;;  %v275_v1 = vpop.f32.mrf.mxu3 }
  0xc0   : > { %v276_v2 = vadd.f32 %v457_v37, %v275_v1 }
  0xc2   : > { %v317_v4 = vadd.f32 %v316_v3, %v276_v2 }
  0xc4   : > { %v328_v5 = vmax.f32 %v317_v4, 0.0 }
  0xc6   : > { %336 = vst.msk [vmem:[%s595_s9 + $0x30] sm:$0xff] %vm215_vm0, %v328_v5 }
  0xc7   : > { %v278_v6 = vpop.f32.mrf.mxu3 }
  0xc8   : > { %v279_v8 = vadd.f32 %v457_v37, %v278_v6 }
  0xca   : > { %v320_v9 = vadd.f32 %v319_v7, %v279_v8 }
  0xcc   : > { %v329_v10 = vmax.f32 %v320_v9, 0.0 }
  0xce   : > { %337 = vst.msk [vmem:[%s595_s9 + $0x38] sm:$0xff] %vm215_vm0, %v329_v10 }
  0xcf PF: > { %s13_s12 = sadd.s32 1, %s464_s12  }
  0xd0   : > { %p10_p4 = scmp.ge.s32.totalorder %s13_s12, 4  }
  0xd2   :  { %12 = sbr.rel (!%p10_p4) target bundleno = 1 (0x1), region = 62 }

// kernel: transinvnet_forward.28
= control target key start
LH: loop header
LB: loop body
LE: loop exit
PB: predicated region body
PF: predicated region fallthrough
CT: control target
= control target key end

     0   :  { %s822_s12 = smov 0   ;;  %s1118_s0 = inlined_call_operand.vmem [shape: f32[512,144], index: 0, kind: input, shape index: {}]   ;;  %s1119_s1 = inlined_call_operand.vmem [shape: f32[144,16], index: 1, kind: input, shape index: {}]   ;;  %s1120_s2 = inlined_call_operand.vmem [shape: f32[1,16], index: 2, kind: input, shape index: {}]   ;;  %s1121_s3 = inlined_call_operand.vmem [shape: f32[512,16], index: 3, kind: output, shape index: {}]  }
   0x1 LB: > { %s706_s13 = sadd.s32 4294967295, %s800_s12   ;;  %p710_p0 = scmp.ge.s32.totalorder %s800_s12, 1  ;;  %s800_s12 = sphi %s822_s12, %s13_s12  }
   0x2   : > { %p139_p1 = scmp.lt.s32.totalorder %s800_s12, 3 }
   0x4   : > { %p140_p2 = pnand %p710_p0, %p139_p1 }
   0x5   : > { %s711_s18 = sshll.u32 (!%p140_p2), %s706_s13, 5 }
   0x6   : > { %143 = sbr.rel (%p140_p2) target bundleno = 303 (0x12f), region = 32  ;;  %p165_p3 = scmp.lt.s32.totalorder (!%p140_p2), %s711_s18, 63 }
   0xb   : > { %v256_v0 = vld [vmem:[%s1119_s1 + $0x78] sm:$0xff]  ;;  %v255_v1 = vld [vmem:[%s1119_s1 + $0x70] sm:$0xff]  ;;  %v839_v2 = vld [vmem:[%s1119_s1 + $0x88] sm:$0xff]  ;;  %s1123_s18 = smov (!%p165_p3, %s711_s18), 63  ;;  %vm263_vm0 = vcmask 130048  }
   0xc   : > { %360 = vmatpush.msra.mxu0 %v256_v0  ;;  %751 = vmatpush.msra.mxu2 %v256_v0  ;;  %v844_v3 = vld [vmem:[%s1119_s1 + $0x80] sm:$0xff]  ;;  %v254_v4 = vld [vmem:[%s1119_s1 + $0x68] sm:$0xff]  ;;  %s750_s27 = sshll.u32 %s1123_s18, 4  ;;  %v252_v6 = vld [vmem:[%s1119_s1 + $0x58] sm:$0xff]  ;;  %s715_s6 = sshll.u32 %s1123_s18, 3 }
   0xd   : > { %752 = vmatpush.msra.mxu3 %v256_v0  ;;  %487 = vmatpush.msra.mxu1 %v839_v2  ;;  %v253_v5 = vld [vmem:[%s1119_s1 + $0x60] sm:$0xff]  ;;  %s860_s30 = scalar_lea.vmem %s1118_s0, %s750_s27  ;;  %v251_v8 = vld [vmem:[%s1119_s1 + $0x50] sm:$0xff]  ;;  %v250_v9 = vld [vmem:[%s1119_s1 + $0x48] sm:$0xff]  ;;  %s1006_s9 = scalar_lea.vmem %s1121_s3, %s715_s6 }
   0xe   : > { %361 = vmatpush.msra.mxu0 %v255_v1  ;;  %753 = vmatpush.msra.mxu2 %v255_v1  ;;  %v178_v7 = vld [vmem:[%s860_s30 + $0x8] sm:$0xff]  ;;  %v249_v10 = vld [vmem:[%s1119_s1 + $0x40] sm:$0xff]  ;;  %v180_v11 = vld [vmem:[%s860_s30 + $0x18] sm:$0xff] }
   0xf   : > { %754 = vmatpush.msra.mxu3 %v255_v1  ;;  %488 = vmatpush.msra.mxu1 %v844_v3  ;;  %v248_v12 = vld [vmem:[%s1119_s1 + $0x38] sm:$0xff]  ;;  %v247_v13 = vld [vmem:[%s1119_s1 + $0x30] sm:$0xff]  ;;  %v246_v14 = vld [vmem:[%s1119_s1 + $0x28] sm:$0xff] }
  0x10   : > { %362 = vmatpush.msra.mxu0 %v254_v4  ;;  %755 = vmatpush.msra.mxu2 %v254_v4  ;;  %v245_v15 = vld [vmem:[%s1119_s1 + $0x20] sm:$0xff]  ;;  %v182_v16 = vld [vmem:[%s860_s30 + $0x28] sm:$0xff]  ;;  %v244_v17 = vld [vmem:[%s1119_s1 + $0x18] sm:$0xff] }
  0x11   : > { %756 = vmatpush.msra.mxu3 %v254_v4  ;;  %716 = vmatmul.msk.f32.vlgmr.msra.gmra.mxu1 %vm263_vm0, %v178_v7  ;;  %v243_v18 = vld [vmem:[%s1119_s1 + $0x10] sm:$0xff]  ;;  %v242_v19 = vld [vmem:[%s1119_s1 + $0x8] sm:$0xff]  ;;  %v241_v20 = vld [vmem:[%s1119_s1] sm:$0xff] }
  0x12   : > { %363 = vmatpush.msra.mxu0 %v253_v5  ;;  %757 = vmatpush.msra.mxu2 %v253_v5  ;;  %v177_v21 = vld [vmem:[%s860_s30] sm:$0xff]  ;;  %v207_v22 = vld [vmem:[%s860_s30 + $0xf0] sm:$0xff]  ;;  %v184_v24 = vld [vmem:[%s860_s30 + $0x38] sm:$0xff] }
  0x13   : > { %758 = vmatpush.msra.mxu3 %v253_v5  ;;  %v239_v23 = vld [vmem:[%s860_s30 + $0x1f0] sm:$0xff]  ;;  %v209_v26 = vld [vmem:[%s860_s30 + $0x100] sm:$0xff]  ;;  %v214_v27 = vld [vmem:[%s860_s30 + $0x128] sm:$0xff] }
  0x14   : > { %364 = vmatpush.msra.mxu0 %v252_v6  ;;  %759 = vmatpush.msra.mxu2 %v252_v6  ;;  %v179_v25 = vld [vmem:[%s860_s30 + $0x10] sm:$0xff]  ;;  %v186_v28 = vld [vmem:[%s860_s30 + $0x48] sm:$0xff]  ;;  %v181_v29 = vld [vmem:[%s860_s30 + $0x20] sm:$0xff] }
  0x15   : > { %760 = vmatpush.msra.mxu3 %v252_v6  ;;  %v211_v30 = vld [vmem:[%s860_s30 + $0x110] sm:$0xff]  ;;  %v216_v31 = vld [vmem:[%s860_s30 + $0x138] sm:$0xff]  ;;  %v213_v34 = vld [vmem:[%s860_s30 + $0x120] sm:$0xff] }
  0x16   : > { %365 = vmatpush.msra.mxu0 %v251_v8  ;;  %761 = vmatpush.msra.mxu2 %v251_v8  ;;  %v188_v32 = vld [vmem:[%s860_s30 + $0x58] sm:$0xff]  ;;  %v183_v33 = vld [vmem:[%s860_s30 + $0x30] sm:$0xff]  ;;  %v218_v35 = vld [vmem:[%s860_s30 + $0x148] sm:$0xff] }
  0x17   : > { %762 = vmatpush.msra.mxu3 %v251_v8  ;;  %v190_v36 = vld [vmem:[%s860_s30 + $0x68] sm:$0xff]  ;;  %v185_v37 = vld [vmem:[%s860_s30 + $0x40] sm:$0xff]  ;;  %v215_v38 = vld [vmem:[%s860_s30 + $0x130] sm:$0xff] }
  0x18   : > { %366 = vmatpush.msra.mxu0 %v250_v9  ;;  %763 = vmatpush.msra.mxu2 %v250_v9  ;;  %v220_v39 = vld [vmem:[%s860_s30 + $0x158] sm:$0xff]  ;;  %v187_v41 = vld [vmem:[%s860_s30 + $0x50] sm:$0xff]  ;;  %v217_v42 = vld [vmem:[%s860_s30 + $0x140] sm:$0xff] }
  0x19   : > { %764 = vmatpush.msra.mxu3 %v250_v9  ;;  %717 = vmatmul.msk.f32.gmra.mxu1 %vm263_vm0, %v180_v11  ;;  %v192_v40 = vld [vmem:[%s860_s30 + $0x78] sm:$0xff]  ;;  %v222_v43 = vld [vmem:[%s860_s30 + $0x168] sm:$0xff]  ;;  %v189_v45 = vld [vmem:[%s860_s30 + $0x60] sm:$0xff] }
  0x1a   : > { %367 = vmatpush.msra.mxu0 %v249_v10  ;;  %765 = vmatpush.msra.mxu2 %v249_v10  ;;  %v194_v44 = vld [vmem:[%s860_s30 + $0x88] sm:$0xff]  ;;  %v219_v46 = vld [vmem:[%s860_s30 + $0x150] sm:$0xff]  ;;  %v224_v47 = vld [vmem:[%s860_s30 + $0x178] sm:$0xff] }
  0x1b   : > { %766 = vmatpush.msra.mxu3 %v249_v10  ;;  %v196_v48 = vld [vmem:[%s860_s30 + $0x98] sm:$0xff]  ;;  %v191_v49 = vld [vmem:[%s860_s30 + $0x70] sm:$0xff]  ;;  %v221_v50 = vld [vmem:[%s860_s30 + $0x160] sm:$0xff] }
  0x1c   : > { %368 = vmatpush.msra.mxu0 %v248_v12  ;;  %767 = vmatpush.msra.mxu2 %v248_v12  ;;  %v226_v51 = vld [vmem:[%s860_s30 + $0x188] sm:$0xff]  ;;  %v193_v53 = vld [vmem:[%s860_s30 + $0x80] sm:$0xff]  ;;  %v223_v54 = vld [vmem:[%s860_s30 + $0x170] sm:$0xff] }
  0x1d   : > { %768 = vmatpush.msra.mxu3 %v248_v12  ;;  %v198_v52 = vld [vmem:[%s860_s30 + $0xa8] sm:$0xff]  ;;  %v228_v55 = vld [vmem:[%s860_s30 + $0x198] sm:$0xff]  ;;  %v195_v57 = vld [vmem:[%s860_s30 + $0x90] sm:$0xff] }
  0x1e   : > { %369 = vmatpush.msra.mxu0 %v247_v13  ;;  %769 = vmatpush.msra.mxu2 %v247_v13  ;;  %v200_v56 = vld [vmem:[%s860_s30 + $0xb8] sm:$0xff]  ;;  %v225_v58 = vld [vmem:[%s860_s30 + $0x180] sm:$0xff]  ;;  %v230_v59 = vld [vmem:[%s860_s30 + $0x1a8] sm:$0xff] }
  0x1f   : > { %770 = vmatpush.msra.mxu3 %v247_v13  ;;  %v202_v60 = vld [vmem:[%s860_s30 + $0xc8] sm:$0xff]  ;;  %v197_v61 = vld [vmem:[%s860_s30 + $0xa0] sm:$0xff]  ;;  %v227_v62 = vld [vmem:[%s860_s30 + $0x190] sm:$0xff] }
  0x20   : > { %370 = vmatpush.msra.mxu0 %v246_v14  ;;  %771 = vmatpush.msra.mxu2 %v246_v14  ;;  %v232_v63 = vld [vmem:[%s860_s30 + $0x1b8] sm:$0xff]  ;;  %v199_v1 = vld [vmem:[%s860_s30 + $0xb0] sm:$0xff]  ;;  %v206_v4 = vld [vmem:[%s860_s30 + $0xe8] sm:$0xff] }
  0x21   : > { %772 = vmatpush.msra.mxu3 %v246_v14  ;;  %718 = vmatmul.msk.f32.gmra.mxu1 %vm263_vm0, %v182_v16  ;;  %v204_v0 = vld [vmem:[%s860_s30 + $0xd8] sm:$0xff]  ;;  %v201_v5 = vld [vmem:[%s860_s30 + $0xc0] sm:$0xff]  ;;  %v231_v6 = vld [vmem:[%s860_s30 + $0x1b0] sm:$0xff] }
  0x22   : > { %371 = vmatpush.msra.mxu0 %v245_v15  ;;  %773 = vmatpush.msra.mxu2 %v245_v15  ;;  %v236_v7 = vld [vmem:[%s860_s30 + $0x1d8] sm:$0xff]  ;;  %v203_v10 = vld [vmem:[%s860_s30 + $0xd0] sm:$0xff]  ;;  %v233_v11 = vld [vmem:[%s860_s30 + $0x1c0] sm:$0xff] }
  0x23   : > { %774 = vmatpush.msra.mxu3 %v245_v15  ;;  %v208_v8 = vld [vmem:[%s860_s30 + $0xf8] sm:$0xff]  ;;  %v238_v12 = vld [vmem:[%s860_s30 + $0x1e8] sm:$0xff]  ;;  %v205_v15 = vld [vmem:[%s860_s30 + $0xe0] sm:$0xff] }
  0x24   : > { %372 = vmatpush.msra.mxu0 %v244_v17  ;;  %775 = vmatpush.msra.mxu2 %v244_v17  ;;  %v210_v13 = vld [vmem:[%s860_s30 + $0x108] sm:$0xff]  ;;  %v235_v16 = vld [vmem:[%s860_s30 + $0x1d0] sm:$0xff] }
  0x25   : > { %776 = vmatpush.msra.mxu3 %v244_v17  ;;  %v240_v17 = vld [vmem:[%s860_s30 + $0x1f8] sm:$0xff] }
  0x26   : > { %373 = vmatpush.msra.mxu0 %v243_v18  ;;  %777 = vmatpush.msra.mxu2 %v243_v18 }
  0x27   : > { %778 = vmatpush.msra.mxu3 %v243_v18  ;;  %v212_v18 = vld [vmem:[%s860_s30 + $0x118] sm:$0xff] }
  0x28   : > { %374 = vmatpush.msra.mxu0 %v242_v19  ;;  %779 = vmatpush.msra.mxu2 %v242_v19 }
  0x29   : > { %780 = vmatpush.msra.mxu3 %v242_v19  ;;  %719 = vmatmul.msk.f32.gmra.mxu1 %vm263_vm0, %v184_v24 }
  0x2a   : > { %375 = vmatpush.msra.mxu0 %v241_v20  ;;  %781 = vmatpush.msra.mxu2 %v241_v20 }
  0x2b   : > { %782 = vmatpush.msra.mxu3 %v241_v20  ;;  %376 = vmatmul.f32.vlgmr.msra.gmra.mxu0 %v177_v21  ;;  %v237_v20 = vld [vmem:[%s860_s30 + $0x1e0] sm:$0xff] }
  0x2c   : > { %421 = vmatmul.f32.vlgmr.msra.gmra.mxu2 %v207_v22  ;;  %469 = vmatmul.f32.vlgmr.msra.gmra.mxu3 %v239_v23  ;;  %v999_v21 = vld [vmem:[%s1120_s2] ss:$0 sm:$0xff] }
  0x2d   : > { %783 = vmatpush.msrb.mxu3 %v839_v2  ;;  %v229_v2 = vld [vmem:[%s860_s30 + $0x1a0] sm:$0xff] }
  0x2f   : > { %784 = vmatpush.msrb.mxu3 %v844_v3  ;;  %v234_v3 = vld [vmem:[%s860_s30 + $0x1c8] sm:$0xff] }
  0x31   : > { %720 = vmatmul.msk.f32.gmra.mxu1 %vm263_vm0, %v186_v28 }
  0x33   : > { %379 = vmatmul.f32.gmra.mxu0 %v179_v25 }
  0x34   : > { %424 = vmatmul.f32.gmra.mxu2 %v209_v26  ;;  %734 = vmatmul.msk.f32.vlgmr.msrb.gmra.mxu3 %vm263_vm0, %v214_v27 }
  0x39   : > { %721 = vmatmul.msk.f32.gmra.mxu1 %vm263_vm0, %v188_v32 }
  0x3b   : > { %382 = vmatmul.f32.gmra.mxu0 %v181_v29 }
  0x3c   : > { %427 = vmatmul.f32.gmra.mxu2 %v211_v30  ;;  %735 = vmatmul.msk.f32.gmra.mxu3 %vm263_vm0, %v216_v31 }
  0x41   : > { %722 = vmatmul.msk.f32.gmra.mxu1 %vm263_vm0, %v190_v36 }
  0x43   : > { %385 = vmatmul.f32.gmra.mxu0 %v183_v33 }
  0x44   : > { %430 = vmatmul.f32.gmra.mxu2 %v213_v34  ;;  %736 = vmatmul.msk.f32.gmra.mxu3 %vm263_vm0, %v218_v35 }
  0x49   : > { %723 = vmatmul.msk.f32.gmra.mxu1 %vm263_vm0, %v192_v40 }
  0x4b   : > { %388 = vmatmul.f32.gmra.mxu0 %v185_v37 }
  0x4c   : > { %433 = vmatmul.f32.gmra.mxu2 %v215_v38  ;;  %737 = vmatmul.msk.f32.gmra.mxu3 %vm263_vm0, %v220_v39 }
  0x51   : > { %724 = vmatmul.msk.f32.gmra.mxu1 %vm263_vm0, %v194_v44 }
  0x53   : > { %391 = vmatmul.f32.gmra.mxu0 %v187_v41 }
  0x54   : > { %436 = vmatmul.f32.gmra.mxu2 %v217_v42  ;;  %738 = vmatmul.msk.f32.gmra.mxu3 %vm263_vm0, %v222_v43 }
  0x59   : > { %725 = vmatmul.msk.f32.gmra.mxu1 %vm263_vm0, %v196_v48 }
  0x5b   : > { %394 = vmatmul.f32.gmra.mxu0 %v189_v45 }
  0x5c   : > { %439 = vmatmul.f32.gmra.mxu2 %v219_v46  ;;  %739 = vmatmul.msk.f32.gmra.mxu3 %vm263_vm0, %v224_v47 }
  0x61   : > { %726 = vmatmul.msk.f32.gmra.mxu1 %vm263_vm0, %v198_v52 }
  0x63   : > { %397 = vmatmul.f32.gmra.mxu0 %v191_v49 }
  0x64   : > { %442 = vmatmul.f32.gmra.mxu2 %v221_v50  ;;  %740 = vmatmul.msk.f32.gmra.mxu3 %vm263_vm0, %v226_v51 }
  0x69   : > { %727 = vmatmul.msk.f32.gmra.mxu1 %vm263_vm0, %v200_v56 }
  0x6b   : > { %400 = vmatmul.f32.gmra.mxu0 %v193_v53 }
  0x6c   : > { %445 = vmatmul.f32.gmra.mxu2 %v223_v54  ;;  %741 = vmatmul.msk.f32.gmra.mxu3 %vm263_vm0, %v228_v55 }
  0x71   : > { %728 = vmatmul.msk.f32.gmra.mxu1 %vm263_vm0, %v202_v60 }
  0x73   : > { %403 = vmatmul.f32.gmra.mxu0 %v195_v57 }
  0x74   : > { %448 = vmatmul.f32.gmra.mxu2 %v225_v58  ;;  %742 = vmatmul.msk.f32.gmra.mxu3 %vm263_vm0, %v230_v59 }
  0x79   : > { %729 = vmatmul.msk.f32.gmra.mxu1 %vm263_vm0, %v204_v0 }
  0x7b   : > { %406 = vmatmul.f32.gmra.mxu0 %v197_v61 }
  0x7c   : > { %451 = vmatmul.f32.gmra.mxu2 %v227_v62  ;;  %743 = vmatmul.msk.f32.gmra.mxu3 %vm263_vm0, %v232_v63 }
  0x81   : > { %730 = vmatmul.msk.f32.gmra.mxu1 %vm263_vm0, %v206_v4 }
  0x83   : > { %409 = vmatmul.f32.gmra.mxu0 %v199_v1 }
  0x84   : > { %454 = vmatmul.f32.gmra.mxu2 %v229_v2  ;;  %744 = vmatmul.msk.f32.gmra.mxu3 %vm263_vm0, %v234_v3 }
  0x89   : > { %731 = vmatmul.msk.f32.gmra.mxu1 %vm263_vm0, %v208_v8 }
  0x8b   : > { %412 = vmatmul.f32.gmra.mxu0 %v201_v5 }
  0x8c   : > { %457 = vmatmul.f32.gmra.mxu2 %v231_v6  ;;  %745 = vmatmul.msk.f32.gmra.mxu3 %vm263_vm0, %v236_v7 }
  0x8e   : > { %v490_v9 = vpop.f32.mrf.mxu1 }
  0x91   : > { %732 = vmatmul.msk.f32.gmra.mxu1 %vm263_vm0, %v210_v13 }
  0x93   : > { %415 = vmatmul.f32.gmra.mxu0 %v203_v10 }
  0x94   : > { %460 = vmatmul.f32.gmra.mxu2 %v233_v11  ;;  %746 = vmatmul.msk.f32.gmra.mxu3 %vm263_vm0, %v238_v12 }
  0x96   : > { %v493_v14 = vpop.f32.mrf.mxu1 }
  0x99   : > { %733 = vmatmul.msk.f32.gmra.mxu1 %vm263_vm0, %v212_v18 }
  0x9b   : > { %418 = vmatmul.f32.gmra.mxu0 %v205_v15 }
  0x9c   : > { %463 = vmatmul.f32.gmra.mxu2 %v235_v16  ;;  %747 = vmatmul.msk.f32.gmra.mxu3 %vm263_vm0, %v240_v17 }
  0x9e   : > { %v496_v19 = vpop.f32.mrf.mxu1 }
  0xa4   : > { %466 = vmatmul.f32.gmra.mxu2 %v237_v20 }
  0xa6   : > { %v499_v24 = vpop.f32.mrf.mxu1 }
  0xa8   : > { %v377_v22 = vpop.f32.mrf.mxu0 }
  0xa9   : > { %v378_v23 = vadd.f32 %v999_v21, %v377_v22 }
  0xab   : > { %v491_v25 = vadd.f32 %v490_v9, %v378_v23 }
  0xad   : > { %v586_v26 = vmax.f32 %v491_v25, 0.0 }
  0xae   : > { %v502_v31 = vpop.f32.mrf.mxu1 }
  0xaf   : > { %618 = vst.msk [vmem:[%s1006_s9] sm:$0xff] %vm263_vm0, %v586_v26  ;;  %v1010_v27 = vpop.f32.mrf.mxu2  ;;  %v1012_v28 = vpop.f32.mrf.mxu3 }
  0xb0   : > { %v380_v29 = vpop.f32.mrf.mxu0 }
  0xb1   : > { %v381_v30 = vadd.f32 %v999_v21, %v380_v29 }
  0xb3   : > { %v494_v32 = vadd.f32 %v493_v14, %v381_v30 }
  0xb5   : > { %v587_v33 = vmax.f32 %v494_v32, 0.0 }
  0xb6   : > { %v505_v38 = vpop.f32.mrf.mxu1 }
  0xb7   : > { %619 = vst.msk [vmem:[%s1006_s9 + $0x8] sm:$0xff] %vm263_vm0, %v587_v33  ;;  %v1017_v34 = vpop.f32.mrf.mxu2  ;;  %v544_v35 = vpop.f32.mrf.mxu3 }
  0xb8   : > { %v383_v36 = vpop.f32.mrf.mxu0 }
  0xb9   : > { %v384_v37 = vadd.f32 %v999_v21, %v383_v36 }
  0xbb   : > { %v497_v39 = vadd.f32 %v496_v19, %v384_v37 }
  0xbd   : > { %v588_v40 = vmax.f32 %v497_v39, 0.0 }
  0xbe   : > { %v508_v45 = vpop.f32.mrf.mxu1 }
  0xbf   : > { %620 = vst.msk [vmem:[%s1006_s9 + $0x10] sm:$0xff] %vm263_vm0, %v588_v40  ;;  %v1022_v41 = vpop.f32.mrf.mxu2  ;;  %v547_v42 = vpop.f32.mrf.mxu3 }
  0xc0   : > { %v386_v43 = vpop.f32.mrf.mxu0 }
  0xc1   : > { %v387_v44 = vadd.f32 %v999_v21, %v386_v43 }
  0xc3   : > { %v500_v46 = vadd.f32 %v499_v24, %v387_v44 }
  0xc5   : > { %v589_v47 = vmax.f32 %v500_v46, 0.0 }
  0xc6   : > { %v511_v54 = vpop.f32.mrf.mxu1 }
  0xc7   : > { %621 = vst.msk [vmem:[%s1006_s9 + $0x18] sm:$0xff] %vm263_vm0, %v589_v47  ;;  %v431_v48 = vpop.f32.mrf.mxu2  ;;  %v550_v49 = vpop.f32.mrf.mxu3 }
  0xc8   : > { %v432_v50 = vadd.f32 %v999_v21, %v431_v48  ;;  %v389_v51 = vpop.f32.mrf.mxu0 }
  0xc9   : > { %v390_v52 = vadd.f32 %v999_v21, %v389_v51 }
  0xca   : > { %v545_v53 = vadd.f32 %v544_v35, %v432_v50 }
  0xcb   : > { %v503_v55 = vadd.f32 %v502_v31, %v390_v52 }
  0xcc   : > { %v604_v56 = vmax.f32 %v545_v53, 0.0 }
  0xcd   : > { %v590_v57 = vmax.f32 %v503_v55, 0.0 }
  0xce   : > { %636 = vst.msk [vmem:[%s1006_s9 + $0x90] sm:$0xff] %vm263_vm0, %v604_v56  ;;  %v514_v0 = vpop.f32.mrf.mxu1 }
  0xcf   : > { %622 = vst.msk [vmem:[%s1006_s9 + $0x20] sm:$0xff] %vm263_vm0, %v590_v57  ;;  %v434_v58 = vpop.f32.mrf.mxu2  ;;  %v553_v59 = vpop.f32.mrf.mxu3 }
  0xd0   : > { %v435_v60 = vadd.f32 %v999_v21, %v434_v58  ;;  %v392_v61 = vpop.f32.mrf.mxu0 }
  0xd1   : > { %v393_v62 = vadd.f32 %v999_v21, %v392_v61 }
  0xd2   : > { %v548_v63 = vadd.f32 %v547_v42, %v435_v60 }
  0xd3   : > { %v506_v1 = vadd.f32 %v505_v38, %v393_v62 }
  0xd4   : > { %v605_v2 = vmax.f32 %v548_v63, 0.0 }
  0xd5   : > { %v591_v3 = vmax.f32 %v506_v1, 0.0 }
  0xd6   : > { %637 = vst.msk [vmem:[%s1006_s9 + $0x98] sm:$0xff] %vm263_vm0, %v605_v2  ;;  %v517_v10 = vpop.f32.mrf.mxu1 }
  0xd7   : > { %623 = vst.msk [vmem:[%s1006_s9 + $0x28] sm:$0xff] %vm263_vm0, %v591_v3  ;;  %v437_v4 = vpop.f32.mrf.mxu2  ;;  %v556_v5 = vpop.f32.mrf.mxu3 }
  0xd8   : > { %v438_v6 = vadd.f32 %v999_v21, %v437_v4  ;;  %v395_v7 = vpop.f32.mrf.mxu0 }
  0xd9   : > { %v396_v8 = vadd.f32 %v999_v21, %v395_v7 }
  0xda   : > { %v551_v9 = vadd.f32 %v550_v49, %v438_v6 }
  0xdb   : > { %v509_v11 = vadd.f32 %v508_v45, %v396_v8 }
  0xdc   : > { %v606_v12 = vmax.f32 %v551_v9, 0.0  ;;  %v423_v9 = vadd.f32 %v999_v21, %v1010_v27 }
  0xdd   : > { %v592_v13 = vmax.f32 %v509_v11, 0.0 }
  0xde   : > { %638 = vst.msk [vmem:[%s1006_s9 + $0xa0] sm:$0xff] %vm263_vm0, %v606_v12  ;;  %v520_v20 = vpop.f32.mrf.mxu1 }
  0xdf   : > { %624 = vst.msk [vmem:[%s1006_s9 + $0x30] sm:$0xff] %vm263_vm0, %v592_v13  ;;  %v440_v14 = vpop.f32.mrf.mxu2  ;;  %v559_v15 = vpop.f32.mrf.mxu3 }
  0xe0   : > { %v441_v16 = vadd.f32 %v999_v21, %v440_v14  ;;  %v398_v17 = vpop.f32.mrf.mxu0 }
  0xe1   : > { %v399_v18 = vadd.f32 %v999_v21, %v398_v17 }
  0xe2   : > { %v554_v19 = vadd.f32 %v553_v59, %v441_v16 }
  0xe3   : > { %v512_v22 = vadd.f32 %v511_v54, %v399_v18 }
  0xe4   : > { %v607_v23 = vmax.f32 %v554_v19, 0.0 }
  0xe5   : > { %v593_v24 = vmax.f32 %v512_v22, 0.0  ;;  %v426_v22 = vadd.f32 %v999_v21, %v1017_v34 }
  0xe6   : > { %639 = vst.msk [vmem:[%s1006_s9 + $0xa8] sm:$0xff] %vm263_vm0, %v607_v23  ;;  %v523_v33 = vpop.f32.mrf.mxu1 }
  0xe7   : > { %625 = vst.msk [vmem:[%s1006_s9 + $0x38] sm:$0xff] %vm263_vm0, %v593_v24  ;;  %v443_v25 = vpop.f32.mrf.mxu2  ;;  %v562_v26 = vpop.f32.mrf.mxu3 }
  0xe8   : > { %v444_v29 = vadd.f32 %v999_v21, %v443_v25  ;;  %v401_v30 = vpop.f32.mrf.mxu0 }
  0xe9   : > { %v402_v31 = vadd.f32 %v999_v21, %v401_v30 }
  0xea   : > { %v557_v32 = vadd.f32 %v556_v5, %v444_v29 }
  0xeb   : > { %v515_v35 = vadd.f32 %v514_v0, %v402_v31 }
  0xec   : > { %v608_v36 = vmax.f32 %v557_v32, 0.0 }
  0xed   : > { %v594_v37 = vmax.f32 %v515_v35, 0.0 }
  0xee   : > { %640 = vst.msk [vmem:[%s1006_s9 + $0xb0] sm:$0xff] %vm263_vm0, %v608_v36  ;;  %v526_v45 = vpop.f32.mrf.mxu1 }
  0xef   : > { %626 = vst.msk [vmem:[%s1006_s9 + $0x40] sm:$0xff] %vm263_vm0, %v594_v37  ;;  %v446_v38 = vpop.f32.mrf.mxu2  ;;  %v565_v39 = vpop.f32.mrf.mxu3  ;;  %v429_v37 = vadd.f32 %v999_v21, %v1022_v41 }
  0xf0   : > { %v447_v40 = vadd.f32 %v999_v21, %v446_v38  ;;  %v404_v42 = vpop.f32.mrf.mxu0 }
  0xf1   : > { %v405_v43 = vadd.f32 %v999_v21, %v404_v42 }
  0xf2   : > { %v560_v44 = vadd.f32 %v559_v15, %v447_v40 }
  0xf3   : > { %v518_v46 = vadd.f32 %v517_v10, %v405_v43 }
  0xf4   : > { %v609_v47 = vmax.f32 %v560_v44, 0.0 }
  0xf5   : > { %v595_v48 = vmax.f32 %v518_v46, 0.0 }
  0xf6   : > { %641 = vst.msk [vmem:[%s1006_s9 + $0xb8] sm:$0xff] %vm263_vm0, %v609_v47  ;;  %v529_v55 = vpop.f32.mrf.mxu1  ;;  %v471_v47 = vadd.f32 %v999_v21, %v1012_v28 }
  0xf7   : > { %627 = vst.msk [vmem:[%s1006_s9 + $0x48] sm:$0xff] %vm263_vm0, %v595_v48  ;;  %v449_v49 = vpop.f32.mrf.mxu2  ;;  %v568_v50 = vpop.f32.mrf.mxu3 }
  0xf8   : > { %v450_v51 = vadd.f32 %v999_v21, %v449_v49  ;;  %v407_v52 = vpop.f32.mrf.mxu0 }
  0xf9   : > { %v408_v53 = vadd.f32 %v999_v21, %v407_v52 }
  0xfa   : > { %v563_v54 = vadd.f32 %v562_v26, %v450_v51 }
  0xfb   : > { %v521_v56 = vadd.f32 %v520_v20, %v408_v53 }
  0xfc   : > { %v610_v57 = vmax.f32 %v563_v54, 0.0 }
  0xfd   : > { %v596_v58 = vmax.f32 %v521_v56, 0.0 }
  0xfe   : > { %642 = vst.msk [vmem:[%s1006_s9 + $0xc0] sm:$0xff] %vm263_vm0, %v610_v57  ;;  %v532_v1 = vpop.f32.mrf.mxu1 }
  0xff   : > { %628 = vst.msk [vmem:[%s1006_s9 + $0x50] sm:$0xff] %vm263_vm0, %v596_v58  ;;  %v452_v59 = vpop.f32.mrf.mxu2  ;;  %v571_v60 = vpop.f32.mrf.mxu3 }
 0x100   : > { %v453_v61 = vadd.f32 %v999_v21, %v452_v59  ;;  %v410_v62 = vpop.f32.mrf.mxu0 }
 0x101   : > { %v411_v63 = vadd.f32 %v999_v21, %v410_v62 }
 0x102   : > { %v566_v0 = vadd.f32 %v565_v39, %v453_v61 }
 0x103   : > { %v524_v2 = vadd.f32 %v523_v33, %v411_v63 }
 0x104   : > { %v611_v3 = vmax.f32 %v566_v0, 0.0 }
 0x105   : > { %v597_v4 = vmax.f32 %v524_v2, 0.0 }
 0x106   : > { %643 = vst.msk [vmem:[%s1006_s9 + $0xc8] sm:$0xff] %vm263_vm0, %v611_v3  ;;  %v535_v12 = vpop.f32.mrf.mxu1 }
 0x107   : > { %629 = vst.msk [vmem:[%s1006_s9 + $0x58] sm:$0xff] %vm263_vm0, %v597_v4  ;;  %v455_v5 = vpop.f32.mrf.mxu2  ;;  %v574_v6 = vpop.f32.mrf.mxu3  ;;  %v536_v14 = vadd.f32 %v535_v12, %v423_v9 }
 0x108   : > { %v456_v7 = vadd.f32 %v999_v21, %v455_v5  ;;  %v413_v8 = vpop.f32.mrf.mxu0 }
 0x109   : > { %v414_v10 = vadd.f32 %v999_v21, %v413_v8  ;;  %v601_v17 = vmax.f32 %v536_v14, 0.0 }
 0x10a   : > { %v569_v11 = vadd.f32 %v568_v50, %v456_v7 }
 0x10b   : > { %v527_v13 = vadd.f32 %v526_v45, %v414_v10  ;;  %633 = vst.msk [vmem:[%s1006_s9 + $0x78] sm:$0xff] %vm263_vm0, %v601_v17 }
 0x10c   : > { %v612_v15 = vmax.f32 %v569_v11, 0.0 }
 0x10d   : > { %v598_v16 = vmax.f32 %v527_v13, 0.0 }
 0x10e   : > { %644 = vst.msk [vmem:[%s1006_s9 + $0xd0] sm:$0xff] %vm263_vm0, %v612_v15  ;;  %v538_v25 = vpop.f32.mrf.mxu1 }
 0x10f   : > { %630 = vst.msk [vmem:[%s1006_s9 + $0x60] sm:$0xff] %vm263_vm0, %v598_v16  ;;  %v458_v18 = vpop.f32.mrf.mxu2  ;;  %v577_v19 = vpop.f32.mrf.mxu3  ;;  %v539_v29 = vadd.f32 %v538_v25, %v426_v22 }
 0x110   : > { %v459_v27 = vadd.f32 %v999_v21, %v458_v18  ;;  %v416_v20 = vpop.f32.mrf.mxu0 }
 0x111   : > { %v417_v23 = vadd.f32 %v999_v21, %v416_v20  ;;  %v602_v32 = vmax.f32 %v539_v29, 0.0 }
 0x112   : > { %v572_v24 = vadd.f32 %v571_v60, %v459_v27 }
 0x113   : > { %v530_v26 = vadd.f32 %v529_v55, %v417_v23  ;;  %634 = vst.msk [vmem:[%s1006_s9 + $0x80] sm:$0xff] %vm263_vm0, %v602_v32 }
 0x114   : > { %v613_v30 = vmax.f32 %v572_v24, 0.0 }
 0x115   : > { %v599_v31 = vmax.f32 %v530_v26, 0.0 }
 0x116   : > { %645 = vst.msk [vmem:[%s1006_s9 + $0xd8] sm:$0xff] %vm263_vm0, %v613_v30  ;;  %v541_v40 = vpop.f32.mrf.mxu1 }
 0x117   : > { %631 = vst.msk [vmem:[%s1006_s9 + $0x68] sm:$0xff] %vm263_vm0, %v599_v31  ;;  %v461_v33 = vpop.f32.mrf.mxu2  ;;  %v580_v35 = vpop.f32.mrf.mxu3  ;;  %v542_v43 = vadd.f32 %v541_v40, %v429_v37 }
 0x118   : > { %v462_v34 = vadd.f32 %v999_v21, %v461_v33  ;;  %v419_v36 = vpop.f32.mrf.mxu0 }
 0x119   : > { %v420_v38 = vadd.f32 %v999_v21, %v419_v36  ;;  %v603_v46 = vmax.f32 %v542_v43, 0.0 }
 0x11a   : > { %v575_v39 = vadd.f32 %v574_v6, %v462_v34 }
 0x11b   : > { %v533_v42 = vadd.f32 %v532_v1, %v420_v38  ;;  %635 = vst.msk [vmem:[%s1006_s9 + $0x88] sm:$0xff] %vm263_vm0, %v603_v46 }
 0x11c   : > { %v614_v44 = vmax.f32 %v575_v39, 0.0 }
 0x11d   : > { %v600_v45 = vmax.f32 %v533_v42, 0.0 }
 0x11e   : > { %646 = vst.msk [vmem:[%s1006_s9 + $0xe0] sm:$0xff] %vm263_vm0, %v614_v44 }
 0x11f   : > { %632 = vst.msk [vmem:[%s1006_s9 + $0x70] sm:$0xff] %vm263_vm0, %v600_v45  ;;  %v464_v41 = vpop.f32.mrf.mxu2  ;;  %v583_v48 = vpop.f32.mrf.mxu3 }
 0x120   : > { %v465_v49 = vadd.f32 %v999_v21, %v464_v41  ;;  %v584_v50 = vadd.f32 %v583_v48, %v471_v47 }
 0x122   : > { %v578_v51 = vadd.f32 %v577_v19, %v465_v49  ;;  %v617_v52 = vmax.f32 %v584_v50, 0.0 }
 0x124   : > { %v615_v53 = vmax.f32 %v578_v51, 0.0  ;;  %649 = vst.msk [vmem:[%s1006_s9 + $0xf8] sm:$0xff] %vm263_vm0, %v617_v52 }
 0x126   : > { %647 = vst.msk [vmem:[%s1006_s9 + $0xe8] sm:$0xff] %vm263_vm0, %v615_v53 }
 0x127   : > { %v467_v28 = vpop.f32.mrf.mxu2 }
 0x128   : > { %v468_v54 = vadd.f32 %v999_v21, %v467_v28 }
 0x12a   : > { %v581_v55 = vadd.f32 %v580_v35, %v468_v54 }
 0x12c   : > { %v616_v56 = vmax.f32 %v581_v55, 0.0 }
 0x12e   : > { %648 = vst.msk [vmem:[%s1006_s9 + $0xf0] sm:$0xff] %vm263_vm0, %v616_v56 }
 0x12f PF: > { %s13_s12 = sadd.s32 1, %s800_s12  }
 0x130   : > { %p10_p4 = scmp.ge.s32.totalorder %s13_s12, 4  }
 0x132   :  { %12 = sbr.rel (!%p10_p4) target bundleno = 1 (0x1), region = 62 }

// kernel: transinvnet_forward.29
= control target key start
LH: loop header
LB: loop body
LE: loop exit
PB: predicated region body
PF: predicated region fallthrough
CT: control target
= control target key end

     0   :  { %s796_s14 = smov 0   ;;  %s1089_s0 = inlined_call_operand.vmem [shape: f32[512,144], index: 0, kind: input, shape index: {}]   ;;  %s1090_s1 = inlined_call_operand.vmem [shape: f32[144,1], index: 1, kind: input, shape index: {}]   ;;  %s1091_s2 = inlined_call_operand.<no memory space> [shape: f32[1,1], index: 2, kind: input, shape index: {}]   ;;  %s1092_s3 = inlined_call_operand.vmem [shape: f32[512,1], index: 3, kind: output, shape index: {}]  }
   0x1   :  { %v8_v0 = vstv %s1091_s2 }
   0x2   :  { %9 = vst [vmem:[#allocation2] sm:$0x1] %v8_v0 }
   0x3 LB: > { %s677_s15 = sadd.s32 4294967295, %s771_s14   ;;  %p681_p0 = scmp.ge.s32.totalorder %s771_s14, 1  ;;  %s771_s14 = sphi %s796_s14, %s15_s14  }
   0x4   : > { %p141_p1 = scmp.lt.s32.totalorder %s771_s14, 3 }
   0x6   : > { %p142_p2 = pnand %p681_p0, %p141_p1 }
   0x7   : > { %s682_s19 = sshll.u32 (!%p142_p2), %s677_s15, 5 }
   0x8   : > { %145 = sbr.rel (%p142_p2) target bundleno = 303 (0x12f), region = 32  ;;  %p167_p3 = scmp.lt.s32.totalorder (!%p142_p2), %s682_s19, 63 }
   0xd   : > { %v258_v1 = vld [vmem:[%s1090_s1 + $0x78] sm:$0xff]  ;;  %v257_v2 = vld [vmem:[%s1090_s1 + $0x70] sm:$0xff]  ;;  %v813_v3 = vld [vmem:[%s1090_s1 + $0x88] sm:$0xff]  ;;  %s1094_s19 = smov (!%p167_p3, %s682_s19), 63  ;;  %vm265_vm0 = vcmask 130048   ;;  %vm588_vm1 = vcmask 7168  }
   0xe   : > { %362 = vmatpush.msra.mxu0 %v258_v1  ;;  %722 = vmatpush.msra.mxu2 %v258_v1  ;;  %v818_v4 = vld [vmem:[%s1090_s1 + $0x80] sm:$0xff]  ;;  %v256_v5 = vld [vmem:[%s1090_s1 + $0x68] sm:$0xff]  ;;  %s721_s28 = sshll.u32 %s1094_s19, 4  ;;  %v254_v7 = vld [vmem:[%s1090_s1 + $0x58] sm:$0xff]  ;;  %s686_s30 = sshll.u32 %s1094_s19, 3 }
   0xf   : > { %723 = vmatpush.msra.mxu3 %v258_v1  ;;  %489 = vmatpush.msra.mxu1 %v813_v3  ;;  %v255_v6 = vld [vmem:[%s1090_s1 + $0x60] sm:$0xff]  ;;  %s834_s4 = scalar_lea.vmem %s1089_s0, %s721_s28  ;;  %v253_v9 = vld [vmem:[%s1090_s1 + $0x50] sm:$0xff]  ;;  %v252_v10 = vld [vmem:[%s1090_s1 + $0x48] sm:$0xff]  ;;  %s977_s7 = scalar_lea.vmem %s1092_s3, %s686_s30 }
  0x10   : > { %363 = vmatpush.msra.mxu0 %v257_v2  ;;  %724 = vmatpush.msra.mxu2 %v257_v2  ;;  %v180_v8 = vld [vmem:[%s834_s4 + $0x8] sm:$0xff]  ;;  %v251_v11 = vld [vmem:[%s1090_s1 + $0x40] sm:$0xff]  ;;  %v182_v12 = vld [vmem:[%s834_s4 + $0x18] sm:$0xff] }
  0x11   : > { %725 = vmatpush.msra.mxu3 %v257_v2  ;;  %490 = vmatpush.msra.mxu1 %v818_v4  ;;  %v250_v13 = vld [vmem:[%s1090_s1 + $0x38] sm:$0xff]  ;;  %v249_v14 = vld [vmem:[%s1090_s1 + $0x30] sm:$0xff]  ;;  %v248_v15 = vld [vmem:[%s1090_s1 + $0x28] sm:$0xff] }
  0x12   : > { %364 = vmatpush.msra.mxu0 %v256_v5  ;;  %726 = vmatpush.msra.mxu2 %v256_v5  ;;  %v247_v16 = vld [vmem:[%s1090_s1 + $0x20] sm:$0xff]  ;;  %v184_v17 = vld [vmem:[%s834_s4 + $0x28] sm:$0xff]  ;;  %v246_v18 = vld [vmem:[%s1090_s1 + $0x18] sm:$0xff] }
  0x13   : > { %727 = vmatpush.msra.mxu3 %v256_v5  ;;  %687 = vmatmul.msk.f32.vlgmr.msra.gmra.mxu1 %vm265_vm0, %v180_v8  ;;  %v245_v19 = vld [vmem:[%s1090_s1 + $0x10] sm:$0xff]  ;;  %v244_v20 = vld [vmem:[%s1090_s1 + $0x8] sm:$0xff]  ;;  %v243_v21 = vld [vmem:[%s1090_s1] sm:$0xff] }
  0x14   : > { %365 = vmatpush.msra.mxu0 %v255_v6  ;;  %728 = vmatpush.msra.mxu2 %v255_v6  ;;  %v179_v22 = vld [vmem:[%s834_s4] sm:$0xff]  ;;  %v209_v23 = vld [vmem:[%s834_s4 + $0xf0] sm:$0xff]  ;;  %v186_v25 = vld [vmem:[%s834_s4 + $0x38] sm:$0xff] }
  0x15   : > { %729 = vmatpush.msra.mxu3 %v255_v6  ;;  %v241_v24 = vld [vmem:[%s834_s4 + $0x1f0] sm:$0xff]  ;;  %v211_v27 = vld [vmem:[%s834_s4 + $0x100] sm:$0xff]  ;;  %v216_v28 = vld [vmem:[%s834_s4 + $0x128] sm:$0xff] }
  0x16   : > { %366 = vmatpush.msra.mxu0 %v254_v7  ;;  %730 = vmatpush.msra.mxu2 %v254_v7  ;;  %v181_v26 = vld [vmem:[%s834_s4 + $0x10] sm:$0xff]  ;;  %v188_v29 = vld [vmem:[%s834_s4 + $0x48] sm:$0xff]  ;;  %v183_v30 = vld [vmem:[%s834_s4 + $0x20] sm:$0xff] }
  0x17   : > { %731 = vmatpush.msra.mxu3 %v254_v7  ;;  %v213_v31 = vld [vmem:[%s834_s4 + $0x110] sm:$0xff]  ;;  %v218_v32 = vld [vmem:[%s834_s4 + $0x138] sm:$0xff]  ;;  %v215_v35 = vld [vmem:[%s834_s4 + $0x120] sm:$0xff] }
  0x18   : > { %367 = vmatpush.msra.mxu0 %v253_v9  ;;  %732 = vmatpush.msra.mxu2 %v253_v9  ;;  %v190_v33 = vld [vmem:[%s834_s4 + $0x58] sm:$0xff]  ;;  %v185_v34 = vld [vmem:[%s834_s4 + $0x30] sm:$0xff]  ;;  %v220_v36 = vld [vmem:[%s834_s4 + $0x148] sm:$0xff] }
  0x19   : > { %733 = vmatpush.msra.mxu3 %v253_v9  ;;  %v192_v37 = vld [vmem:[%s834_s4 + $0x68] sm:$0xff]  ;;  %v187_v38 = vld [vmem:[%s834_s4 + $0x40] sm:$0xff]  ;;  %v217_v39 = vld [vmem:[%s834_s4 + $0x130] sm:$0xff] }
  0x1a   : > { %368 = vmatpush.msra.mxu0 %v252_v10  ;;  %734 = vmatpush.msra.mxu2 %v252_v10  ;;  %v222_v40 = vld [vmem:[%s834_s4 + $0x158] sm:$0xff]  ;;  %v189_v42 = vld [vmem:[%s834_s4 + $0x50] sm:$0xff]  ;;  %v219_v43 = vld [vmem:[%s834_s4 + $0x140] sm:$0xff] }
  0x1b   : > { %735 = vmatpush.msra.mxu3 %v252_v10  ;;  %688 = vmatmul.msk.f32.gmra.mxu1 %vm265_vm0, %v182_v12  ;;  %v194_v41 = vld [vmem:[%s834_s4 + $0x78] sm:$0xff]  ;;  %v224_v44 = vld [vmem:[%s834_s4 + $0x168] sm:$0xff]  ;;  %v191_v46 = vld [vmem:[%s834_s4 + $0x60] sm:$0xff] }
  0x1c   : > { %369 = vmatpush.msra.mxu0 %v251_v11  ;;  %736 = vmatpush.msra.mxu2 %v251_v11  ;;  %v196_v45 = vld [vmem:[%s834_s4 + $0x88] sm:$0xff]  ;;  %v221_v47 = vld [vmem:[%s834_s4 + $0x150] sm:$0xff]  ;;  %v226_v48 = vld [vmem:[%s834_s4 + $0x178] sm:$0xff] }
  0x1d   : > { %737 = vmatpush.msra.mxu3 %v251_v11  ;;  %v198_v49 = vld [vmem:[%s834_s4 + $0x98] sm:$0xff]  ;;  %v193_v50 = vld [vmem:[%s834_s4 + $0x70] sm:$0xff]  ;;  %v223_v51 = vld [vmem:[%s834_s4 + $0x160] sm:$0xff] }
  0x1e   : > { %370 = vmatpush.msra.mxu0 %v250_v13  ;;  %738 = vmatpush.msra.mxu2 %v250_v13  ;;  %v228_v52 = vld [vmem:[%s834_s4 + $0x188] sm:$0xff]  ;;  %v195_v54 = vld [vmem:[%s834_s4 + $0x80] sm:$0xff]  ;;  %v225_v55 = vld [vmem:[%s834_s4 + $0x170] sm:$0xff] }
  0x1f   : > { %739 = vmatpush.msra.mxu3 %v250_v13  ;;  %v200_v53 = vld [vmem:[%s834_s4 + $0xa8] sm:$0xff]  ;;  %v230_v56 = vld [vmem:[%s834_s4 + $0x198] sm:$0xff]  ;;  %v197_v58 = vld [vmem:[%s834_s4 + $0x90] sm:$0xff] }
  0x20   : > { %371 = vmatpush.msra.mxu0 %v249_v14  ;;  %740 = vmatpush.msra.mxu2 %v249_v14  ;;  %v202_v57 = vld [vmem:[%s834_s4 + $0xb8] sm:$0xff]  ;;  %v227_v59 = vld [vmem:[%s834_s4 + $0x180] sm:$0xff]  ;;  %v232_v60 = vld [vmem:[%s834_s4 + $0x1a8] sm:$0xff] }
  0x21   : > { %741 = vmatpush.msra.mxu3 %v249_v14  ;;  %v204_v61 = vld [vmem:[%s834_s4 + $0xc8] sm:$0xff]  ;;  %v199_v62 = vld [vmem:[%s834_s4 + $0xa0] sm:$0xff]  ;;  %v229_v63 = vld [vmem:[%s834_s4 + $0x190] sm:$0xff] }
  0x22   : > { %372 = vmatpush.msra.mxu0 %v248_v15  ;;  %742 = vmatpush.msra.mxu2 %v248_v15  ;;  %v234_v0 = vld [vmem:[%s834_s4 + $0x1b8] sm:$0xff]  ;;  %v201_v2 = vld [vmem:[%s834_s4 + $0xb0] sm:$0xff]  ;;  %v208_v5 = vld [vmem:[%s834_s4 + $0xe8] sm:$0xff] }
  0x23   : > { %743 = vmatpush.msra.mxu3 %v248_v15  ;;  %689 = vmatmul.msk.f32.gmra.mxu1 %vm265_vm0, %v184_v17  ;;  %v206_v1 = vld [vmem:[%s834_s4 + $0xd8] sm:$0xff]  ;;  %v203_v6 = vld [vmem:[%s834_s4 + $0xc0] sm:$0xff]  ;;  %v233_v7 = vld [vmem:[%s834_s4 + $0x1b0] sm:$0xff] }
  0x24   : > { %373 = vmatpush.msra.mxu0 %v247_v16  ;;  %744 = vmatpush.msra.mxu2 %v247_v16  ;;  %v238_v8 = vld [vmem:[%s834_s4 + $0x1d8] sm:$0xff]  ;;  %v205_v11 = vld [vmem:[%s834_s4 + $0xd0] sm:$0xff]  ;;  %v235_v12 = vld [vmem:[%s834_s4 + $0x1c0] sm:$0xff] }
  0x25   : > { %745 = vmatpush.msra.mxu3 %v247_v16  ;;  %v210_v9 = vld [vmem:[%s834_s4 + $0xf8] sm:$0xff]  ;;  %v240_v13 = vld [vmem:[%s834_s4 + $0x1e8] sm:$0xff]  ;;  %v207_v16 = vld [vmem:[%s834_s4 + $0xe0] sm:$0xff] }
  0x26   : > { %374 = vmatpush.msra.mxu0 %v246_v18  ;;  %746 = vmatpush.msra.mxu2 %v246_v18  ;;  %v212_v14 = vld [vmem:[%s834_s4 + $0x108] sm:$0xff]  ;;  %v237_v17 = vld [vmem:[%s834_s4 + $0x1d0] sm:$0xff] }
  0x27   : > { %747 = vmatpush.msra.mxu3 %v246_v18  ;;  %v242_v18 = vld [vmem:[%s834_s4 + $0x1f8] sm:$0xff] }
  0x28   : > { %375 = vmatpush.msra.mxu0 %v245_v19  ;;  %748 = vmatpush.msra.mxu2 %v245_v19 }
  0x29   : > { %749 = vmatpush.msra.mxu3 %v245_v19  ;;  %v214_v19 = vld [vmem:[%s834_s4 + $0x118] sm:$0xff] }
  0x2a   : > { %376 = vmatpush.msra.mxu0 %v244_v20  ;;  %750 = vmatpush.msra.mxu2 %v244_v20 }
  0x2b   : > { %751 = vmatpush.msra.mxu3 %v244_v20  ;;  %690 = vmatmul.msk.f32.gmra.mxu1 %vm265_vm0, %v186_v25 }
  0x2c   : > { %377 = vmatpush.msra.mxu0 %v243_v21  ;;  %752 = vmatpush.msra.mxu2 %v243_v21 }
  0x2d   : > { %753 = vmatpush.msra.mxu3 %v243_v21  ;;  %378 = vmatmul.f32.vlgmr.msra.gmra.mxu0 %v179_v22  ;;  %v239_v21 = vld [vmem:[%s834_s4 + $0x1e0] sm:$0xff] }
  0x2e   : > { %423 = vmatmul.f32.vlgmr.msra.gmra.mxu2 %v209_v23  ;;  %471 = vmatmul.f32.vlgmr.msra.gmra.mxu3 %v241_v24  ;;  %v970_v22 = vld [vmem:[#allocation2] ss:$0 sm:$0xff] }
  0x2f   : > { %754 = vmatpush.msrb.mxu3 %v813_v3  ;;  %v231_v3 = vld [vmem:[%s834_s4 + $0x1a0] sm:$0xff] }
  0x31   : > { %755 = vmatpush.msrb.mxu3 %v818_v4  ;;  %v236_v4 = vld [vmem:[%s834_s4 + $0x1c8] sm:$0xff] }
  0x33   : > { %691 = vmatmul.msk.f32.gmra.mxu1 %vm265_vm0, %v188_v29 }
  0x35   : > { %381 = vmatmul.f32.gmra.mxu0 %v181_v26 }
  0x36   : > { %426 = vmatmul.f32.gmra.mxu2 %v211_v27  ;;  %705 = vmatmul.msk.f32.vlgmr.msrb.gmra.mxu3 %vm265_vm0, %v216_v28 }
  0x3b   : > { %692 = vmatmul.msk.f32.gmra.mxu1 %vm265_vm0, %v190_v33 }
  0x3d   : > { %384 = vmatmul.f32.gmra.mxu0 %v183_v30 }
  0x3e   : > { %429 = vmatmul.f32.gmra.mxu2 %v213_v31  ;;  %706 = vmatmul.msk.f32.gmra.mxu3 %vm265_vm0, %v218_v32 }
  0x43   : > { %693 = vmatmul.msk.f32.gmra.mxu1 %vm265_vm0, %v192_v37 }
  0x45   : > { %387 = vmatmul.f32.gmra.mxu0 %v185_v34 }
  0x46   : > { %432 = vmatmul.f32.gmra.mxu2 %v215_v35  ;;  %707 = vmatmul.msk.f32.gmra.mxu3 %vm265_vm0, %v220_v36 }
  0x4b   : > { %694 = vmatmul.msk.f32.gmra.mxu1 %vm265_vm0, %v194_v41 }
  0x4d   : > { %390 = vmatmul.f32.gmra.mxu0 %v187_v38 }
  0x4e   : > { %435 = vmatmul.f32.gmra.mxu2 %v217_v39  ;;  %708 = vmatmul.msk.f32.gmra.mxu3 %vm265_vm0, %v222_v40 }
  0x53   : > { %695 = vmatmul.msk.f32.gmra.mxu1 %vm265_vm0, %v196_v45 }
  0x55   : > { %393 = vmatmul.f32.gmra.mxu0 %v189_v42 }
  0x56   : > { %438 = vmatmul.f32.gmra.mxu2 %v219_v43  ;;  %709 = vmatmul.msk.f32.gmra.mxu3 %vm265_vm0, %v224_v44 }
  0x5b   : > { %696 = vmatmul.msk.f32.gmra.mxu1 %vm265_vm0, %v198_v49 }
  0x5d   : > { %396 = vmatmul.f32.gmra.mxu0 %v191_v46 }
  0x5e   : > { %441 = vmatmul.f32.gmra.mxu2 %v221_v47  ;;  %710 = vmatmul.msk.f32.gmra.mxu3 %vm265_vm0, %v226_v48 }
  0x63   : > { %697 = vmatmul.msk.f32.gmra.mxu1 %vm265_vm0, %v200_v53 }
  0x65   : > { %399 = vmatmul.f32.gmra.mxu0 %v193_v50 }
  0x66   : > { %444 = vmatmul.f32.gmra.mxu2 %v223_v51  ;;  %711 = vmatmul.msk.f32.gmra.mxu3 %vm265_vm0, %v228_v52 }
  0x6b   : > { %698 = vmatmul.msk.f32.gmra.mxu1 %vm265_vm0, %v202_v57 }
  0x6d   : > { %402 = vmatmul.f32.gmra.mxu0 %v195_v54 }
  0x6e   : > { %447 = vmatmul.f32.gmra.mxu2 %v225_v55  ;;  %712 = vmatmul.msk.f32.gmra.mxu3 %vm265_vm0, %v230_v56 }
  0x73   : > { %699 = vmatmul.msk.f32.gmra.mxu1 %vm265_vm0, %v204_v61 }
  0x75   : > { %405 = vmatmul.f32.gmra.mxu0 %v197_v58 }
  0x76   : > { %450 = vmatmul.f32.gmra.mxu2 %v227_v59  ;;  %713 = vmatmul.msk.f32.gmra.mxu3 %vm265_vm0, %v232_v60 }
  0x7b   : > { %700 = vmatmul.msk.f32.gmra.mxu1 %vm265_vm0, %v206_v1 }
  0x7d   : > { %408 = vmatmul.f32.gmra.mxu0 %v199_v62 }
  0x7e   : > { %453 = vmatmul.f32.gmra.mxu2 %v229_v63  ;;  %714 = vmatmul.msk.f32.gmra.mxu3 %vm265_vm0, %v234_v0 }
  0x83   : > { %701 = vmatmul.msk.f32.gmra.mxu1 %vm265_vm0, %v208_v5 }
  0x85   : > { %411 = vmatmul.f32.gmra.mxu0 %v201_v2 }
  0x86   : > { %456 = vmatmul.f32.gmra.mxu2 %v231_v3  ;;  %715 = vmatmul.msk.f32.gmra.mxu3 %vm265_vm0, %v236_v4 }
  0x8b   : > { %702 = vmatmul.msk.f32.gmra.mxu1 %vm265_vm0, %v210_v9 }
  0x8d   : > { %414 = vmatmul.f32.gmra.mxu0 %v203_v6 }
  0x8e   : > { %459 = vmatmul.f32.gmra.mxu2 %v233_v7  ;;  %716 = vmatmul.msk.f32.gmra.mxu3 %vm265_vm0, %v238_v8 }
  0x90   : > { %v492_v10 = vpop.f32.mrf.mxu1 }
  0x93   : > { %703 = vmatmul.msk.f32.gmra.mxu1 %vm265_vm0, %v212_v14 }
  0x95   : > { %417 = vmatmul.f32.gmra.mxu0 %v205_v11 }
  0x96   : > { %462 = vmatmul.f32.gmra.mxu2 %v235_v12  ;;  %717 = vmatmul.msk.f32.gmra.mxu3 %vm265_vm0, %v240_v13 }
  0x98   : > { %v495_v15 = vpop.f32.mrf.mxu1 }
  0x9b   : > { %704 = vmatmul.msk.f32.gmra.mxu1 %vm265_vm0, %v214_v19 }
  0x9d   : > { %420 = vmatmul.f32.gmra.mxu0 %v207_v16 }
  0x9e   : > { %465 = vmatmul.f32.gmra.mxu2 %v237_v17  ;;  %718 = vmatmul.msk.f32.gmra.mxu3 %vm265_vm0, %v242_v18 }
  0xa0   : > { %v498_v20 = vpop.f32.mrf.mxu1 }
  0xa6   : > { %468 = vmatmul.f32.gmra.mxu2 %v239_v21 }
  0xa8   : > { %v501_v25 = vpop.f32.mrf.mxu1 }
  0xaa   : > { %v379_v23 = vpop.f32.mrf.mxu0 }
  0xab   : > { %v380_v24 = vadd.f32 %v970_v22, %v379_v23 }
  0xad   : > { %v493_v26 = vadd.f32 %v492_v10, %v380_v24 }
  0xaf   : > { %589 = vst.msk [vmem:[%s977_s7] sm:$0xff] %vm588_vm1, %v493_v26 }
  0xb0   : > { %v504_v31 = vpop.f32.mrf.mxu1 }
  0xb1   : > { %v981_v27 = vpop.f32.mrf.mxu2  ;;  %v983_v28 = vpop.f32.mrf.mxu3 }
  0xb2   : > { %v382_v29 = vpop.f32.mrf.mxu0 }
  0xb3   : > { %v383_v30 = vadd.f32 %v970_v22, %v382_v29 }
  0xb5   : > { %v496_v32 = vadd.f32 %v495_v15, %v383_v30 }
  0xb7   : > { %590 = vst.msk [vmem:[%s977_s7 + $0x8] sm:$0xff] %vm588_vm1, %v496_v32 }
  0xb8   : > { %v507_v37 = vpop.f32.mrf.mxu1 }
  0xb9   : > { %v988_v33 = vpop.f32.mrf.mxu2  ;;  %v546_v34 = vpop.f32.mrf.mxu3 }
  0xba   : > { %v385_v35 = vpop.f32.mrf.mxu0 }
  0xbb   : > { %v386_v36 = vadd.f32 %v970_v22, %v385_v35 }
  0xbd   : > { %v499_v38 = vadd.f32 %v498_v20, %v386_v36 }
  0xbf   : > { %591 = vst.msk [vmem:[%s977_s7 + $0x10] sm:$0xff] %vm588_vm1, %v499_v38 }
  0xc0   : > { %v510_v43 = vpop.f32.mrf.mxu1 }
  0xc1   : > { %v993_v39 = vpop.f32.mrf.mxu2  ;;  %v549_v40 = vpop.f32.mrf.mxu3 }
  0xc2   : > { %v388_v41 = vpop.f32.mrf.mxu0 }
  0xc3   : > { %v389_v42 = vadd.f32 %v970_v22, %v388_v41 }
  0xc5   : > { %v502_v44 = vadd.f32 %v501_v25, %v389_v42 }
  0xc7   : > { %592 = vst.msk [vmem:[%s977_s7 + $0x18] sm:$0xff] %vm588_vm1, %v502_v44 }
  0xc8   : > { %v513_v51 = vpop.f32.mrf.mxu1 }
  0xc9   : > { %v433_v45 = vpop.f32.mrf.mxu2  ;;  %v552_v46 = vpop.f32.mrf.mxu3 }
  0xca   : > { %v434_v47 = vadd.f32 %v970_v22, %v433_v45  ;;  %v391_v48 = vpop.f32.mrf.mxu0 }
  0xcb   : > { %v392_v49 = vadd.f32 %v970_v22, %v391_v48 }
  0xcc   : > { %v547_v50 = vadd.f32 %v546_v34, %v434_v47 }
  0xcd   : > { %v505_v52 = vadd.f32 %v504_v31, %v392_v49 }
  0xce   : > { %607 = vst.msk [vmem:[%s977_s7 + $0x90] sm:$0xff] %vm588_vm1, %v547_v50 }
  0xcf   : > { %593 = vst.msk [vmem:[%s977_s7 + $0x20] sm:$0xff] %vm588_vm1, %v505_v52 }
  0xd0   : > { %v516_v59 = vpop.f32.mrf.mxu1 }
  0xd1   : > { %v436_v53 = vpop.f32.mrf.mxu2  ;;  %v555_v54 = vpop.f32.mrf.mxu3 }
  0xd2   : > { %v437_v55 = vadd.f32 %v970_v22, %v436_v53  ;;  %v394_v56 = vpop.f32.mrf.mxu0 }
  0xd3   : > { %v395_v57 = vadd.f32 %v970_v22, %v394_v56 }
  0xd4   : > { %v550_v58 = vadd.f32 %v549_v40, %v437_v55 }
  0xd5   : > { %v508_v60 = vadd.f32 %v507_v37, %v395_v57 }
  0xd6   : > { %608 = vst.msk [vmem:[%s977_s7 + $0x98] sm:$0xff] %vm588_vm1, %v550_v58 }
  0xd7   : > { %594 = vst.msk [vmem:[%s977_s7 + $0x28] sm:$0xff] %vm588_vm1, %v508_v60 }
  0xd8   : > { %v519_v3 = vpop.f32.mrf.mxu1 }
  0xd9   : > { %v439_v61 = vpop.f32.mrf.mxu2  ;;  %v558_v62 = vpop.f32.mrf.mxu3 }
  0xda   : > { %v440_v63 = vadd.f32 %v970_v22, %v439_v61  ;;  %v397_v0 = vpop.f32.mrf.mxu0 }
  0xdb   : > { %v398_v1 = vadd.f32 %v970_v22, %v397_v0 }
  0xdc   : > { %v553_v2 = vadd.f32 %v552_v46, %v440_v63  ;;  %v428_v63 = vadd.f32 %v970_v22, %v988_v33 }
  0xdd   : > { %v511_v4 = vadd.f32 %v510_v43, %v398_v1 }
  0xde   : > { %609 = vst.msk [vmem:[%s977_s7 + $0xa0] sm:$0xff] %vm588_vm1, %v553_v2 }
  0xdf   : > { %595 = vst.msk [vmem:[%s977_s7 + $0x30] sm:$0xff] %vm588_vm1, %v511_v4 }
  0xe0   : > { %v522_v11 = vpop.f32.mrf.mxu1 }
  0xe1   : > { %v442_v5 = vpop.f32.mrf.mxu2  ;;  %v561_v6 = vpop.f32.mrf.mxu3 }
  0xe2   : > { %v443_v7 = vadd.f32 %v970_v22, %v442_v5  ;;  %v400_v8 = vpop.f32.mrf.mxu0 }
  0xe3   : > { %v401_v9 = vadd.f32 %v970_v22, %v400_v8  ;;  %v431_v8 = vadd.f32 %v970_v22, %v993_v39 }
  0xe4   : > { %v556_v10 = vadd.f32 %v555_v54, %v443_v7  ;;  %v425_v54 = vadd.f32 %v970_v22, %v981_v27 }
  0xe5   : > { %v514_v12 = vadd.f32 %v513_v51, %v401_v9 }
  0xe6   : > { %610 = vst.msk [vmem:[%s977_s7 + $0xa8] sm:$0xff] %vm588_vm1, %v556_v10 }
  0xe7   : > { %596 = vst.msk [vmem:[%s977_s7 + $0x38] sm:$0xff] %vm588_vm1, %v514_v12 }
  0xe8   : > { %v525_v19 = vpop.f32.mrf.mxu1 }
  0xe9   : > { %v445_v13 = vpop.f32.mrf.mxu2  ;;  %v564_v14 = vpop.f32.mrf.mxu3 }
  0xea   : > { %v446_v15 = vadd.f32 %v970_v22, %v445_v13  ;;  %v403_v16 = vpop.f32.mrf.mxu0 }
  0xeb   : > { %v404_v17 = vadd.f32 %v970_v22, %v403_v16 }
  0xec   : > { %v559_v18 = vadd.f32 %v558_v62, %v446_v15 }
  0xed   : > { %v517_v20 = vadd.f32 %v516_v59, %v404_v17 }
  0xee   : > { %611 = vst.msk [vmem:[%s977_s7 + $0xb0] sm:$0xff] %vm588_vm1, %v559_v18 }
  0xef   : > { %597 = vst.msk [vmem:[%s977_s7 + $0x40] sm:$0xff] %vm588_vm1, %v517_v20 }
  0xf0   : > { %v528_v30 = vpop.f32.mrf.mxu1 }
  0xf1   : > { %v448_v21 = vpop.f32.mrf.mxu2  ;;  %v567_v23 = vpop.f32.mrf.mxu3 }
  0xf2   : > { %v449_v24 = vadd.f32 %v970_v22, %v448_v21  ;;  %v406_v25 = vpop.f32.mrf.mxu0 }
  0xf3   : > { %v407_v26 = vadd.f32 %v970_v22, %v406_v25 }
  0xf4   : > { %v562_v29 = vadd.f32 %v561_v6, %v449_v24 }
  0xf5   : > { %v520_v31 = vadd.f32 %v519_v3, %v407_v26 }
  0xf6   : > { %612 = vst.msk [vmem:[%s977_s7 + $0xb8] sm:$0xff] %vm588_vm1, %v562_v29 }
  0xf7   : > { %598 = vst.msk [vmem:[%s977_s7 + $0x48] sm:$0xff] %vm588_vm1, %v520_v31 }
  0xf8   : > { %v531_v40 = vpop.f32.mrf.mxu1 }
  0xf9   : > { %v451_v32 = vpop.f32.mrf.mxu2  ;;  %v570_v34 = vpop.f32.mrf.mxu3 }
  0xfa   : > { %v452_v35 = vadd.f32 %v970_v22, %v451_v32  ;;  %v409_v36 = vpop.f32.mrf.mxu0 }
  0xfb   : > { %v410_v37 = vadd.f32 %v970_v22, %v409_v36 }
  0xfc   : > { %v565_v38 = vadd.f32 %v564_v14, %v452_v35  ;;  %v473_v14 = vadd.f32 %v970_v22, %v983_v28 }
  0xfd   : > { %v523_v41 = vadd.f32 %v522_v11, %v410_v37 }
  0xfe   : > { %613 = vst.msk [vmem:[%s977_s7 + $0xc0] sm:$0xff] %vm588_vm1, %v565_v38 }
  0xff   : > { %599 = vst.msk [vmem:[%s977_s7 + $0x50] sm:$0xff] %vm588_vm1, %v523_v41 }
 0x100   : > { %v534_v48 = vpop.f32.mrf.mxu1 }
 0x101   : > { %v454_v42 = vpop.f32.mrf.mxu2  ;;  %v573_v43 = vpop.f32.mrf.mxu3 }
 0x102   : > { %v455_v44 = vadd.f32 %v970_v22, %v454_v42  ;;  %v412_v45 = vpop.f32.mrf.mxu0 }
 0x103   : > { %v413_v46 = vadd.f32 %v970_v22, %v412_v45 }
 0x104   : > { %v568_v47 = vadd.f32 %v567_v23, %v455_v44 }
 0x105   : > { %v526_v49 = vadd.f32 %v525_v19, %v413_v46 }
 0x106   : > { %614 = vst.msk [vmem:[%s977_s7 + $0xc8] sm:$0xff] %vm588_vm1, %v568_v47 }
 0x107   : > { %600 = vst.msk [vmem:[%s977_s7 + $0x58] sm:$0xff] %vm588_vm1, %v526_v49 }
 0x108   : > { %v537_v57 = vpop.f32.mrf.mxu1 }
 0x109   : > { %v457_v50 = vpop.f32.mrf.mxu2  ;;  %v576_v51 = vpop.f32.mrf.mxu3  ;;  %v538_v59 = vadd.f32 %v537_v57, %v425_v54 }
 0x10a   : > { %v458_v52 = vadd.f32 %v970_v22, %v457_v50  ;;  %v415_v53 = vpop.f32.mrf.mxu0 }
 0x10b   : > { %v416_v55 = vadd.f32 %v970_v22, %v415_v53  ;;  %604 = vst.msk [vmem:[%s977_s7 + $0x78] sm:$0xff] %vm588_vm1, %v538_v59 }
 0x10c   : > { %v571_v56 = vadd.f32 %v570_v34, %v458_v52 }
 0x10d   : > { %v529_v58 = vadd.f32 %v528_v30, %v416_v55 }
 0x10e   : > { %615 = vst.msk [vmem:[%s977_s7 + $0xd0] sm:$0xff] %vm588_vm1, %v571_v56 }
 0x10f   : > { %601 = vst.msk [vmem:[%s977_s7 + $0x60] sm:$0xff] %vm588_vm1, %v529_v58 }
 0x110   : > { %v540_v2 = vpop.f32.mrf.mxu1 }
 0x111   : > { %v460_v60 = vpop.f32.mrf.mxu2  ;;  %v579_v61 = vpop.f32.mrf.mxu3  ;;  %v541_v4 = vadd.f32 %v540_v2, %v428_v63 }
 0x112   : > { %v461_v62 = vadd.f32 %v970_v22, %v460_v60  ;;  %v418_v27 = vpop.f32.mrf.mxu0 }
 0x113   : > { %v419_v0 = vadd.f32 %v970_v22, %v418_v27  ;;  %605 = vst.msk [vmem:[%s977_s7 + $0x80] sm:$0xff] %vm588_vm1, %v541_v4 }
 0x114   : > { %v574_v1 = vadd.f32 %v573_v43, %v461_v62 }
 0x115   : > { %v532_v3 = vadd.f32 %v531_v40, %v419_v0 }
 0x116   : > { %616 = vst.msk [vmem:[%s977_s7 + $0xd8] sm:$0xff] %vm588_vm1, %v574_v1 }
 0x117   : > { %602 = vst.msk [vmem:[%s977_s7 + $0x68] sm:$0xff] %vm588_vm1, %v532_v3 }
 0x118   : > { %v543_v11 = vpop.f32.mrf.mxu1 }
 0x119   : > { %v463_v5 = vpop.f32.mrf.mxu2  ;;  %v582_v6 = vpop.f32.mrf.mxu3  ;;  %v544_v13 = vadd.f32 %v543_v11, %v431_v8 }
 0x11a   : > { %v464_v7 = vadd.f32 %v970_v22, %v463_v5  ;;  %v421_v33 = vpop.f32.mrf.mxu0 }
 0x11b   : > { %v422_v9 = vadd.f32 %v970_v22, %v421_v33  ;;  %606 = vst.msk [vmem:[%s977_s7 + $0x88] sm:$0xff] %vm588_vm1, %v544_v13 }
 0x11c   : > { %v577_v10 = vadd.f32 %v576_v51, %v464_v7 }
 0x11d   : > { %v535_v12 = vadd.f32 %v534_v48, %v422_v9 }
 0x11e   : > { %617 = vst.msk [vmem:[%s977_s7 + $0xe0] sm:$0xff] %vm588_vm1, %v577_v10 }
 0x11f   : > { %603 = vst.msk [vmem:[%s977_s7 + $0x70] sm:$0xff] %vm588_vm1, %v535_v12 }
 0x121   : > { %v466_v15 = vpop.f32.mrf.mxu2  ;;  %v585_v16 = vpop.f32.mrf.mxu3 }
 0x122   : > { %v467_v39 = vadd.f32 %v970_v22, %v466_v15  ;;  %v586_v17 = vadd.f32 %v585_v16, %v473_v14 }
 0x124   : > { %v580_v18 = vadd.f32 %v579_v61, %v467_v39  ;;  %620 = vst.msk [vmem:[%s977_s7 + $0xf8] sm:$0xff] %vm588_vm1, %v586_v17 }
 0x126   : > { %618 = vst.msk [vmem:[%s977_s7 + $0xe8] sm:$0xff] %vm588_vm1, %v580_v18 }
 0x129   : > { %v469_v19 = vpop.f32.mrf.mxu2 }
 0x12a   : > { %v470_v20 = vadd.f32 %v970_v22, %v469_v19 }
 0x12c   : > { %v583_v21 = vadd.f32 %v582_v6, %v470_v20 }
 0x12e   : > { %619 = vst.msk [vmem:[%s977_s7 + $0xf0] sm:$0xff] %vm588_vm1, %v583_v21 }
 0x12f PF: > { %s15_s14 = sadd.s32 1, %s771_s14  }
 0x130   : > { %p12_p4 = scmp.ge.s32.totalorder %s15_s14, 4  }
 0x132   :  { %14 = sbr.rel (!%p12_p4) target bundleno = 3 (0x3), region = 62 }

</bundles_post_ra>
